<compile_context>
chip_gen: v6e
topology: v6e:2x2x1
jax: 0.10.0
libtpu: 0.0.40
codegen_flags: <defaults>
</compile_context>

<pallas_src>
import functools
import math

import jax
import jax.numpy as jnp
from jax import lax
from jax.experimental import pallas as pl
from jax.experimental.pallas import tpu as pltpu

LANE = 128


def _round_up(x, m):
    return (x + m - 1) // m * m


def bottleneck_kernel(x_ref, w1_ref, s1_ref, b1_ref,
                      w2_ref, s2_ref, b2_ref,
                      w3_ref, s3_ref, b3_ref,
                      out_ref, h1pad_ref, *, H, W):
    """One batch element per grid step.

    x_ref:     (H*W, Cin)       f32   input, true (unpadded) channel width
    w1_ref:    (Cin, Pp)        bf16
    w2_ref:    (9, Pp, Pp)      bf16  one (I, O) matrix per 3x3 tap
    w3_ref:    (Pp, Cout)       bf16
    s*/b*:     (1, Pp | Cout)   f32   folded BN scale / bias
    out_ref:   (H*W, Cout)      f32
    h1pad_ref: ((H+2)*W, Pp)    f32   scratch: conv2 input with one zero image
                                      row of padding above and below.
    """
    HW = H * W
    Pp = w1_ref.shape[1]

    # ---- conv1 (1x1) as a channel matmul (bf16 operands, f32 acc) + bn1 + relu
    h1 = jnp.dot(x_ref[...].astype(jnp.bfloat16), w1_ref[...],
                 preferred_element_type=jnp.float32)
    h1 = jnp.maximum(h1 * s1_ref[...] + b1_ref[...], 0.0)          # (HW, Pp) f32

    # ---- stage conv2 input: zero only the 2*W border rows (cheap, per-step,
    # correct on dual-TC chips), then an aligned interior store (start = W,
    # a multiple of 8 -> clean tiled store, no relayout).
    zero_rows = jnp.zeros((W, Pp), jnp.float32)
    h1pad_ref[pl.ds(0, W), :] = zero_rows
    h1pad_ref[pl.ds((H + 1) * W, W), :] = zero_rows
    h1pad_ref[pl.ds(W, HW), :] = h1

    # ---- conv2 (3x3, stride 1) as 9 accumulating matmuls --------------------
    #   dy taps: aligned row slices of the padded buffer (offsets 0/W/2W, all
    #            multiples of 8); the zero border rows provide the y edge.
    #   dx taps: pltpu.roll by +-1 row (XLU) + x-boundary mask (VPU select);
    #            wrapped / cross-row rows are exactly the masked ones.
    xcol = lax.broadcasted_iota(jnp.int32, (HW, 1), 0) % W
    mask_l = xcol >= 1            # valid output columns for dx = -1
    mask_r = xcol < (W - 1)       # valid output columns for dx = +1

    acc = jnp.zeros((HW, Pp), jnp.float32)
    for ky in range(3):                                   # static unroll: 9 taps
        src = h1pad_ref[pl.ds(ky * W, HW), :]             # (HW, Pp) f32, aligned
        for kx in range(3):
            dx = kx - 1
            if dx == 0:
                tap = src
            else:
                shifted = pltpu.roll(src, shift=(-dx) % HW, axis=0)
                tap = jnp.where(mask_l if dx < 0 else mask_r, shifted, 0.0)
            acc = acc + jnp.dot(tap.astype(jnp.bfloat16), w2_ref[ky * 3 + kx],
                                preferred_element_type=jnp.float32)
    h2 = jnp.maximum(acc * s2_ref[...] + b2_ref[...], 0.0)          # (HW, Pp) f32

    # ---- conv3 (1x1) + bn3 + identity residual + relu -----------------------
    h3 = jnp.dot(h2.astype(jnp.bfloat16), w3_ref[...],
                 preferred_element_type=jnp.float32)                 # (HW, Cout)
    out_ref[...] = jnp.maximum(h3 * s3_ref[...] + b3_ref[...] + x_ref[...], 0.0)


def bottleneck_forward(x_nhwc, packed, dims):
    """x_nhwc: (N, H, W, Cin) float32; packed/dims from pack_params()."""
    w1, s1, b1, w2, s2, b2, w3, s3, b3 = packed
    Cin, Cout, Pp = dims
    N, H, W, C = x_nhwc.shape
    assert C == Cin
    # Identity residual path: requires inplanes == planes*4, stride=1, no downsample.
    assert Cin == Cout, "identity residual requires inplanes == planes * 4"
    assert W % 8 == 0, "W must be a multiple of 8 (sublane-aligned row slices)"
    HW = H * W

    # Channels stay at their true width in HBM (no 8x DMA inflation); spatial
    # dims are pre-flattened so the kernel sees an (HW, C) tile directly.
    x_flat = x_nhwc.reshape(N, HW, Cin)

    flops = 2 * N * HW * (Cin * Pp + 9 * Pp * Pp + Pp * Cout)
    bytes_accessed = (x_flat.size + N * HW * Cout) * 4 + sum(
        int(a.size) * a.dtype.itemsize for a in packed)
    cost = pl.CostEstimate(flops=flops, transcendentals=0,
                           bytes_accessed=bytes_accessed)

    def const_spec(a):
        nd = a.ndim
        return pl.BlockSpec(a.shape, lambda n, _nd=nd: (0,) * _nd)

    out_flat = pl.pallas_call(
        functools.partial(bottleneck_kernel, H=H, W=W),
        out_shape=jax.ShapeDtypeStruct((N, HW, Cout), jnp.float32),
        grid=(N,),
        in_specs=[
            pl.BlockSpec((None, HW, Cin), lambda n: (n, 0, 0)),
            const_spec(w1), const_spec(s1), const_spec(b1),
            const_spec(w2), const_spec(s2), const_spec(b2),
            const_spec(w3), const_spec(s3), const_spec(b3),
        ],
        out_specs=pl.BlockSpec((None, HW, Cout), lambda n: (n, 0, 0)),
        scratch_shapes=[
            pltpu.VMEM(((H + 2) * W, Pp), jnp.float32),   # row-padded conv2 input
        ],
        compiler_params=pltpu.CompilerParams(
            dimension_semantics=("parallel",),   # v7x: 2 TensorCores split batch
            vmem_limit_bytes=32 * 1024 * 1024),
        cost_estimate=cost,
    )(x_flat, w1, s1, b1, w2, s2, b2, w3, s3, b3)

    return out_flat.reshape(N, H, W, Cout)


def init_params(key, inplanes, planes, eps=1e-5):
    """Deterministic synthetic parameters in PyTorch layouts (OIHW convs,
    eval-mode BN folded to scale/bias)."""
    P = planes
    keys = jax.random.split(key, 15)

    c1 = jax.random.normal(keys[0], (P, inplanes, 1, 1), jnp.float32) / math.sqrt(inplanes)
    c2 = jax.random.normal(keys[1], (P, P, 3, 3), jnp.float32) / math.sqrt(9 * P)
    c3 = jax.random.normal(keys[2], (4 * P, P, 1, 1), jnp.float32) / math.sqrt(P)

    def bn(k0, k1, k2, k3, c):
        gamma = 1.0 + 0.1 * jax.random.normal(k0, (c,), jnp.float32)
        beta = 0.1 * jax.random.normal(k1, (c,), jnp.float32)
        mean = 0.1 * jax.random.normal(k2, (c,), jnp.float32)
        var = jnp.abs(jax.random.normal(k3, (c,), jnp.float32)) + 0.5
        scale = gamma / jnp.sqrt(var + eps)                  # eval-mode BN folded
        bias = beta - mean * scale
        return scale, bias

    s1, b1 = bn(*keys[3:7], P)
    s2, b2 = bn(*keys[7:11], P)
    s3, b3 = bn(*keys[11:15], 4 * P)
    return (c1, c2, c3, (s1, b1), (s2, b2), (s3, b3))


def pack_params(raw):
    """Kernel-side layouts: channel-matmul weights (bf16) with the *internal*
    planes dimension padded to 128 lanes, the 3x3 conv as 9 per-tap (I, O)
    matrices, and f32 scale/bias rows.  Padded planes use zero weight/scale/
    bias so they stay exactly zero end-to-end."""
    c1, c2, c3, (s1, b1), (s2, b2), (s3, b3) = raw
    P, Cin = c1.shape[0], c1.shape[1]
    Cout = c3.shape[0]
    Pp = _round_up(P, LANE)

    w1 = jnp.pad(jnp.transpose(c1[:, :, 0, 0]),
                 ((0, 0), (0, Pp - P))).astype(jnp.bfloat16)            # (Cin, Pp)
    w2t = jnp.transpose(c2, (2, 3, 1, 0)).reshape(9, P, P)              # (tap, I, O)
    w2 = jnp.pad(w2t, ((0, 0), (0, Pp - P), (0, Pp - P))).astype(jnp.bfloat16)  # (9, Pp, Pp)
    w3 = jnp.pad(jnp.transpose(c3[:, :, 0, 0]),
                 ((0, Pp - P), (0, 0))).astype(jnp.bfloat16)            # (Pp, Cout)

    def row(v, width):
        return jnp.pad(v, (0, width - v.shape[0])).reshape(1, width)

    packed = (w1, row(s1, Pp), row(b1, Pp),
              w2, row(s2, Pp), row(b2, Pp),
              w3, row(s3, Cout), row(b3, Cout))
    dims = (Cin, Cout, Pp)
    return packed, dims


def ref_forward(x_nhwc, raw):
    """Independent pure-JAX (XLA conv, f32 HIGHEST) reference."""
    c1, c2, c3, (s1, b1), (s2, b2), (s3, b3) = raw

    def conv(x, w_oihw, pad):
        w = jnp.transpose(w_oihw, (2, 3, 1, 0))              # OIHW -> HWIO
        return jax.lax.conv_general_dilated(
            x, w, window_strides=(1, 1), padding=[(pad, pad), (pad, pad)],
            dimension_numbers=('NHWC', 'HWIO', 'NHWC'),
            precision=jax.lax.Precision.HIGHEST)

    h = jnp.maximum(conv(x_nhwc, c1, 0) * s1 + b1, 0.0)
    h = jnp.maximum(conv(h, c2, 1) * s2 + b2, 0.0)
    h = conv(h, c3, 0) * s3 + b3
    return jnp.maximum(h + x_nhwc, 0.0)


if __name__ == "__main__":
    key = jax.random.PRNGKey(0)
    N, inplanes, planes, H, W = 2, 16, 4, 16, 16   # inplanes == planes*4 (identity residual)

    kx, kp = jax.random.split(key)
    x_nchw = jax.random.normal(kx, (N, inplanes, H, W), jnp.float32)  # PyTorch-style input
    raw = init_params(kp, inplanes, planes)
    packed, dims = pack_params(raw)

    x_nhwc = jnp.transpose(x_nchw, (0, 2, 3, 1))           # NCHW -> NHWC (glue)
    out_nhwc = jax.block_until_ready(bottleneck_forward(x_nhwc, packed, dims))

    ref = ref_forward(x_nhwc, raw)
    assert out_nhwc.shape == (N, H, W, 4 * planes)
    # Tolerance reflects bf16 matmul operands (f32 accumulation) vs the
    # f32/HIGHEST XLA reference (h1/h2 are rounded to bf16 before conv2/conv3).
    if not jnp.allclose(out_nhwc, ref, rtol=2e-2, atol=2e-2):
        max_err = float(jnp.max(jnp.abs(out_nhwc - ref)))
        raise AssertionError(f"Pallas output mismatch vs reference, max_err={max_err}")

    out_nchw = jnp.transpose(out_nhwc, (0, 3, 1, 2))       # back to PyTorch NCHW layout
    jax.block_until_ready(out_nchw)
    print("KERNEL_OK")
</pallas_src>

<mosaic_0001>
module attributes {stable_mosaic.version = 11 : i64} {
  func.func @bottleneck_kernel(%arg0: i32, %arg1: memref<1x256x16xf32, #tpu.memory_space<vmem>>, %arg2: memref<16x128xbf16, #tpu.memory_space<vmem>>, %arg3: memref<1x128xf32, #tpu.memory_space<vmem>>, %arg4: memref<1x128xf32, #tpu.memory_space<vmem>>, %arg5: memref<9x128x128xbf16, #tpu.memory_space<vmem>>, %arg6: memref<1x128xf32, #tpu.memory_space<vmem>>, %arg7: memref<1x128xf32, #tpu.memory_space<vmem>>, %arg8: memref<128x16xbf16, #tpu.memory_space<vmem>>, %arg9: memref<1x16xf32, #tpu.memory_space<vmem>>, %arg10: memref<1x16xf32, #tpu.memory_space<vmem>>, %arg11: memref<1x256x16xf32, #tpu.memory_space<vmem>>, %arg12: memref<288x128xf32, #tpu.memory_space<vmem>>) attributes {dimension_semantics = [#tpu.dimension_semantics<parallel>], iteration_bounds = array<i64: 2>, scalar_prefetch = 0 : i64, scratch_operands = 1 : i64, tpu.core_type = #tpu.core_type<tc>, window_params = [{transform_indices = @transform_0, window_bounds = array<i64: 1, 256, 16>}, {pipeline_mode = #tpu.pipeline_mode<synchronous>, transform_indices = @transform_1, window_bounds = array<i64: 16, 128>}, {pipeline_mode = #tpu.pipeline_mode<synchronous>, transform_indices = @transform_2, window_bounds = array<i64: 1, 128>}, {pipeline_mode = #tpu.pipeline_mode<synchronous>, transform_indices = @transform_3, window_bounds = array<i64: 1, 128>}, {pipeline_mode = #tpu.pipeline_mode<synchronous>, transform_indices = @transform_4, window_bounds = array<i64: 9, 128, 128>}, {pipeline_mode = #tpu.pipeline_mode<synchronous>, transform_indices = @transform_5, window_bounds = array<i64: 1, 128>}, {pipeline_mode = #tpu.pipeline_mode<synchronous>, transform_indices = @transform_6, window_bounds = array<i64: 1, 128>}, {pipeline_mode = #tpu.pipeline_mode<synchronous>, transform_indices = @transform_7, window_bounds = array<i64: 128, 16>}, {pipeline_mode = #tpu.pipeline_mode<synchronous>, transform_indices = @transform_8, window_bounds = array<i64: 1, 16>}, {pipeline_mode = #tpu.pipeline_mode<synchronous>, transform_indices = @transform_9, window_bounds = array<i64: 1, 16>}, {transform_indices = @transform_10, window_bounds = array<i64: 1, 256, 16>}]} {
    %c0 = arith.constant 0 : index
    %c0_0 = arith.constant 0 : index
    %c0_1 = arith.constant 0 : index
    %0 = vector.load %arg1[%c0, %c0_0, %c0_1] : memref<1x256x16xf32, #tpu.memory_space<vmem>>, vector<1x256x16xf32>
    %1 = vector.shape_cast %0 : vector<1x256x16xf32> to vector<256x16xf32>
    %2 = arith.truncf %1 : vector<256x16xf32> to vector<256x16xbf16>
    %c0_2 = arith.constant 0 : index
    %c0_3 = arith.constant 0 : index
    %3 = vector.load %arg2[%c0_2, %c0_3] : memref<16x128xbf16, #tpu.memory_space<vmem>>, vector<16x128xbf16>
    %cst = arith.constant dense<0.000000e+00> : vector<256x128xf32>
    %4 = tpu.matmul %2, %3, %cst {dimension_numbers = #tpu.dot_dimension_numbers<[1], [0], [0], [1], [0, 0, 1, 1], [], []>} : vector<256x16xbf16>, vector<16x128xbf16>, vector<256x128xf32> -> vector<256x128xf32>
    %c0_4 = arith.constant 0 : index
    %c0_5 = arith.constant 0 : index
    %5 = vector.load %arg3[%c0_4, %c0_5] : memref<1x128xf32, #tpu.memory_space<vmem>>, vector<1x128xf32>
    %6 = vector.broadcast %5 : vector<1x128xf32> to vector<256x128xf32>
    %7 = arith.mulf %4, %6 : vector<256x128xf32>
    %c0_6 = arith.constant 0 : index
    %c0_7 = arith.constant 0 : index
    %8 = vector.load %arg4[%c0_6, %c0_7] : memref<1x128xf32, #tpu.memory_space<vmem>>, vector<1x128xf32>
    %9 = vector.broadcast %8 : vector<1x128xf32> to vector<256x128xf32>
    %10 = arith.addf %7, %9 : vector<256x128xf32>
    %cst_8 = arith.constant 0.000000e+00 : f32
    %11 = vector.broadcast %cst_8 : f32 to vector<256x128xf32>
    %12 = arith.maximumf %10, %11 : vector<256x128xf32>
    %cst_9 = arith.constant 0.000000e+00 : f32
    %13 = vector.broadcast %cst_9 : f32 to vector<16x128xf32>
    %c0_10 = arith.constant 0 : index
    %c0_11 = arith.constant 0 : index
    %14 = vector.load %arg12[%c0_10, %c0_11] : memref<288x128xf32, #tpu.memory_space<vmem>>, vector<16x128xf32>
    tpu.vector_store %arg12[%c0_10, %c0_11], %13 {strides = array<i32>} : memref<288x128xf32, #tpu.memory_space<vmem>>, vector<16x128xf32>,
    %c272 = arith.constant 272 : index
    %c0_12 = arith.constant 0 : index
    %15 = vector.load %arg12[%c272, %c0_12] : memref<288x128xf32, #tpu.memory_space<vmem>>, vector<16x128xf32>
    tpu.vector_store %arg12[%c272, %c0_12], %13 {strides = array<i32>} : memref<288x128xf32, #tpu.memory_space<vmem>>, vector<16x128xf32>,
    %c16 = arith.constant 16 : index
    %c0_13 = arith.constant 0 : index
    %16 = vector.load %arg12[%c16, %c0_13] : memref<288x128xf32, #tpu.memory_space<vmem>>, vector<256x128xf32>
    tpu.vector_store %arg12[%c16, %c0_13], %12 {strides = array<i32>} : memref<288x128xf32, #tpu.memory_space<vmem>>, vector<256x128xf32>,
    %17 = tpu.iota {dimensions = array<i32: 0>} : vector<256x1xi32>
    %c16_i32 = arith.constant 16 : i32
    %c0_i32 = arith.constant 0 : i32
    %18 = arith.cmpi eq, %c16_i32, %c0_i32 : i32
    %c1_i32 = arith.constant 1 : i32
    %19 = arith.select %18, %c1_i32, %c16_i32 : i32
    %20 = vector.broadcast %19 : i32 to vector<256x1xi32>
    %21 = arith.remsi %17, %20 : vector<256x1xi32>
    %c0_i32_14 = arith.constant 0 : i32
    %22 = vector.broadcast %c0_i32_14 : i32 to vector<256x1xi32>
    %23 = arith.cmpi ne, %21, %22 : vector<256x1xi32>
    %c0_i32_15 = arith.constant 0 : i32
    %24 = vector.broadcast %c0_i32_15 : i32 to vector<256x1xi32>
    %25 = arith.cmpi slt, %21, %24 : vector<256x1xi32>
    %c0_i32_16 = arith.constant 0 : i32
    %26 = arith.cmpi slt, %19, %c0_i32_16 : i32
    %27 = vector.broadcast %26 : i1 to vector<256x1xi1>
    %28 = vector.broadcast %27 : vector<256x1xi1> to vector<256x1xi1>
    %29 = arith.xori %25, %28 : vector<256x1xi1>
    %30 = arith.andi %29, %23 : vector<256x1xi1>
    %31 = vector.broadcast %19 : i32 to vector<256x1xi32>
    %32 = arith.addi %21, %31 : vector<256x1xi32>
    %33 = arith.select %30, %32, %21 : vector<256x1xi1>, vector<256x1xi32>
    %c1_i32_17 = arith.constant 1 : i32
    %34 = vector.broadcast %c1_i32_17 : i32 to vector<256x1xi32>
    %35 = arith.cmpi sge, %33, %34 : vector<256x1xi32>
    %c15_i32 = arith.constant 15 : i32
    %36 = vector.broadcast %c15_i32 : i32 to vector<256x1xi32>
    %37 = arith.cmpi slt, %33, %36 : vector<256x1xi32>
    %cst_18 = arith.constant 0.000000e+00 : f32
    %38 = vector.broadcast %cst_18 : f32 to vector<256x128xf32>
    %c0_19 = arith.constant 0 : index
    %c0_20 = arith.constant 0 : index
    %39 = vector.load %arg12[%c0_19, %c0_20] : memref<288x128xf32, #tpu.memory_space<vmem>>, vector<256x128xf32>
    %c1_i32_21 = arith.constant 1 : i32
    %40 = tpu.dynamic_rotate %39 by %c1_i32_21 dim 0 : vector<256x128xf32>, i32 -> vector<256x128xf32>
    %cst_22 = arith.constant 0.000000e+00 : f32
    %41 = vector.shape_cast %35 : vector<256x1xi1> to vector<256x1xi1>
    %42 = vector.broadcast %41 : vector<256x1xi1> to vector<256x128xi1>
    %43 = vector.broadcast %cst_22 : f32 to vector<256x128xf32>
    %44 = arith.select %42, %40, %43 : vector<256x128xi1>, vector<256x128xf32>
    %45 = arith.truncf %44 : vector<256x128xf32> to vector<256x128xbf16>
    %c0_23 = arith.constant 0 : index
    %c0_24 = arith.constant 0 : index
    %c0_25 = arith.constant 0 : index
    %46 = vector.load %arg5[%c0_23, %c0_24, %c0_25] : memref<9x128x128xbf16, #tpu.memory_space<vmem>>, vector<1x128x128xbf16>
    %47 = vector.shape_cast %46 : vector<1x128x128xbf16> to vector<128x128xbf16>
    %cst_26 = arith.constant dense<0.000000e+00> : vector<256x128xf32>
    %48 = tpu.matmul %45, %47, %cst_26 {dimension_numbers = #tpu.dot_dimension_numbers<[1], [0], [0], [1], [0, 0, 1, 1], [], []>} : vector<256x128xbf16>, vector<128x128xbf16>, vector<256x128xf32> -> vector<256x128xf32>
    %49 = arith.addf %38, %48 : vector<256x128xf32>
    %50 = arith.truncf %39 : vector<256x128xf32> to vector<256x128xbf16>
    %c1 = arith.constant 1 : index
    %c0_27 = arith.constant 0 : index
    %c0_28 = arith.constant 0 : index
    %51 = vector.load %arg5[%c1, %c0_27, %c0_28] : memref<9x128x128xbf16, #tpu.memory_space<vmem>>, vector<1x128x128xbf16>
    %52 = vector.shape_cast %51 : vector<1x128x128xbf16> to vector<128x128xbf16>
    %cst_29 = arith.constant dense<0.000000e+00> : vector<256x128xf32>
    %53 = tpu.matmul %50, %52, %cst_29 {dimension_numbers = #tpu.dot_dimension_numbers<[1], [0], [0], [1], [0, 0, 1, 1], [], []>} : vector<256x128xbf16>, vector<128x128xbf16>, vector<256x128xf32> -> vector<256x128xf32>
    %54 = arith.addf %49, %53 : vector<256x128xf32>
    %c255_i32 = arith.constant 255 : i32
    %55 = tpu.dynamic_rotate %39 by %c255_i32 dim 0 : vector<256x128xf32>, i32 -> vector<256x128xf32>
    %cst_30 = arith.constant 0.000000e+00 : f32
    %56 = vector.shape_cast %37 : vector<256x1xi1> to vector<256x1xi1>
    %57 = vector.broadcast %56 : vector<256x1xi1> to vector<256x128xi1>
    %58 = vector.broadcast %cst_30 : f32 to vector<256x128xf32>
    %59 = arith.select %57, %55, %58 : vector<256x128xi1>, vector<256x128xf32>
    %60 = arith.truncf %59 : vector<256x128xf32> to vector<256x128xbf16>
    %c2 = arith.constant 2 : index
    %c0_31 = arith.constant 0 : index
    %c0_32 = arith.constant 0 : index
    %61 = vector.load %arg5[%c2, %c0_31, %c0_32] : memref<9x128x128xbf16, #tpu.memory_space<vmem>>, vector<1x128x128xbf16>
    %62 = vector.shape_cast %61 : vector<1x128x128xbf16> to vector<128x128xbf16>
    %cst_33 = arith.constant dense<0.000000e+00> : vector<256x128xf32>
    %63 = tpu.matmul %60, %62, %cst_33 {dimension_numbers = #tpu.dot_dimension_numbers<[1], [0], [0], [1], [0, 0, 1, 1], [], []>} : vector<256x128xbf16>, vector<128x128xbf16>, vector<256x128xf32> -> vector<256x128xf32>
    %64 = arith.addf %54, %63 : vector<256x128xf32>
    %c16_34 = arith.constant 16 : index
    %c0_35 = arith.constant 0 : index
    %65 = vector.load %arg12[%c16_34, %c0_35] : memref<288x128xf32, #tpu.memory_space<vmem>>, vector<256x128xf32>
    %c1_i32_36 = arith.constant 1 : i32
    %66 = tpu.dynamic_rotate %65 by %c1_i32_36 dim 0 : vector<256x128xf32>, i32 -> vector<256x128xf32>
    %cst_37 = arith.constant 0.000000e+00 : f32
    %67 = vector.shape_cast %35 : vector<256x1xi1> to vector<256x1xi1>
    %68 = vector.broadcast %67 : vector<256x1xi1> to vector<256x128xi1>
    %69 = vector.broadcast %cst_37 : f32 to vector<256x128xf32>
    %70 = arith.select %68, %66, %69 : vector<256x128xi1>, vector<256x128xf32>
    %71 = arith.truncf %70 : vector<256x128xf32> to vector<256x128xbf16>
    %c3 = arith.constant 3 : index
    %c0_38 = arith.constant 0 : index
    %c0_39 = arith.constant 0 : index
    %72 = vector.load %arg5[%c3, %c0_38, %c0_39] : memref<9x128x128xbf16, #tpu.memory_space<vmem>>, vector<1x128x128xbf16>
    %73 = vector.shape_cast %72 : vector<1x128x128xbf16> to vector<128x128xbf16>
    %cst_40 = arith.constant dense<0.000000e+00> : vector<256x128xf32>
    %74 = tpu.matmul %71, %73, %cst_40 {dimension_numbers = #tpu.dot_dimension_numbers<[1], [0], [0], [1], [0, 0, 1, 1], [], []>} : vector<256x128xbf16>, vector<128x128xbf16>, vector<256x128xf32> -> vector<256x128xf32>
    %75 = arith.addf %64, %74 : vector<256x128xf32>
    %76 = arith.truncf %65 : vector<256x128xf32> to vector<256x128xbf16>
    %c4 = arith.constant 4 : index
    %c0_41 = arith.constant 0 : index
    %c0_42 = arith.constant 0 : index
    %77 = vector.load %arg5[%c4, %c0_41, %c0_42] : memref<9x128x128xbf16, #tpu.memory_space<vmem>>, vector<1x128x128xbf16>
    %78 = vector.shape_cast %77 : vector<1x128x128xbf16> to vector<128x128xbf16>
    %cst_43 = arith.constant dense<0.000000e+00> : vector<256x128xf32>
    %79 = tpu.matmul %76, %78, %cst_43 {dimension_numbers = #tpu.dot_dimension_numbers<[1], [0], [0], [1], [0, 0, 1, 1], [], []>} : vector<256x128xbf16>, vector<128x128xbf16>, vector<256x128xf32> -> vector<256x128xf32>
    %80 = arith.addf %75, %79 : vector<256x128xf32>
    %c255_i32_44 = arith.constant 255 : i32
    %81 = tpu.dynamic_rotate %65 by %c255_i32_44 dim 0 : vector<256x128xf32>, i32 -> vector<256x128xf32>
    %cst_45 = arith.constant 0.000000e+00 : f32
    %82 = vector.shape_cast %37 : vector<256x1xi1> to vector<256x1xi1>
    %83 = vector.broadcast %82 : vector<256x1xi1> to vector<256x128xi1>
    %84 = vector.broadcast %cst_45 : f32 to vector<256x128xf32>
    %85 = arith.select %83, %81, %84 : vector<256x128xi1>, vector<256x128xf32>
    %86 = arith.truncf %85 : vector<256x128xf32> to vector<256x128xbf16>
    %c5 = arith.constant 5 : index
    %c0_46 = arith.constant 0 : index
    %c0_47 = arith.constant 0 : index
    %87 = vector.load %arg5[%c5, %c0_46, %c0_47] : memref<9x128x128xbf16, #tpu.memory_space<vmem>>, vector<1x128x128xbf16>
    %88 = vector.shape_cast %87 : vector<1x128x128xbf16> to vector<128x128xbf16>
    %cst_48 = arith.constant dense<0.000000e+00> : vector<256x128xf32>
    %89 = tpu.matmul %86, %88, %cst_48 {dimension_numbers = #tpu.dot_dimension_numbers<[1], [0], [0], [1], [0, 0, 1, 1], [], []>} : vector<256x128xbf16>, vector<128x128xbf16>, vector<256x128xf32> -> vector<256x128xf32>
    %90 = arith.addf %80, %89 : vector<256x128xf32>
    %c32 = arith.constant 32 : index
    %c0_49 = arith.constant 0 : index
    %91 = vector.load %arg12[%c32, %c0_49] : memref<288x128xf32, #tpu.memory_space<vmem>>, vector<256x128xf32>
    %c1_i32_50 = arith.constant 1 : i32
    %92 = tpu.dynamic_rotate %91 by %c1_i32_50 dim 0 : vector<256x128xf32>, i32 -> vector<256x128xf32>
    %cst_51 = arith.constant 0.000000e+00 : f32
    %93 = vector.shape_cast %35 : vector<256x1xi1> to vector<256x1xi1>
    %94 = vector.broadcast %93 : vector<256x1xi1> to vector<256x128xi1>
    %95 = vector.broadcast %cst_51 : f32 to vector<256x128xf32>
    %96 = arith.select %94, %92, %95 : vector<256x128xi1>, vector<256x128xf32>
    %97 = arith.truncf %96 : vector<256x128xf32> to vector<256x128xbf16>
    %c6 = arith.constant 6 : index
    %c0_52 = arith.constant 0 : index
    %c0_53 = arith.constant 0 : index
    %98 = vector.load %arg5[%c6, %c0_52, %c0_53] : memref<9x128x128xbf16, #tpu.memory_space<vmem>>, vector<1x128x128xbf16>
    %99 = vector.shape_cast %98 : vector<1x128x128xbf16> to vector<128x128xbf16>
    %cst_54 = arith.constant dense<0.000000e+00> : vector<256x128xf32>
    %100 = tpu.matmul %97, %99, %cst_54 {dimension_numbers = #tpu.dot_dimension_numbers<[1], [0], [0], [1], [0, 0, 1, 1], [], []>} : vector<256x128xbf16>, vector<128x128xbf16>, vector<256x128xf32> -> vector<256x128xf32>
    %101 = arith.addf %90, %100 : vector<256x128xf32>
    %102 = arith.truncf %91 : vector<256x128xf32> to vector<256x128xbf16>
    %c7 = arith.constant 7 : index
    %c0_55 = arith.constant 0 : index
    %c0_56 = arith.constant 0 : index
    %103 = vector.load %arg5[%c7, %c0_55, %c0_56] : memref<9x128x128xbf16, #tpu.memory_space<vmem>>, vector<1x128x128xbf16>
    %104 = vector.shape_cast %103 : vector<1x128x128xbf16> to vector<128x128xbf16>
    %cst_57 = arith.constant dense<0.000000e+00> : vector<256x128xf32>
    %105 = tpu.matmul %102, %104, %cst_57 {dimension_numbers = #tpu.dot_dimension_numbers<[1], [0], [0], [1], [0, 0, 1, 1], [], []>} : vector<256x128xbf16>, vector<128x128xbf16>, vector<256x128xf32> -> vector<256x128xf32>
    %106 = arith.addf %101, %105 : vector<256x128xf32>
    %c255_i32_58 = arith.constant 255 : i32
    %107 = tpu.dynamic_rotate %91 by %c255_i32_58 dim 0 : vector<256x128xf32>, i32 -> vector<256x128xf32>
    %cst_59 = arith.constant 0.000000e+00 : f32
    %108 = vector.shape_cast %37 : vector<256x1xi1> to vector<256x1xi1>
    %109 = vector.broadcast %108 : vector<256x1xi1> to vector<256x128xi1>
    %110 = vector.broadcast %cst_59 : f32 to vector<256x128xf32>
    %111 = arith.select %109, %107, %110 : vector<256x128xi1>, vector<256x128xf32>
    %112 = arith.truncf %111 : vector<256x128xf32> to vector<256x128xbf16>
    %c8 = arith.constant 8 : index
    %c0_60 = arith.constant 0 : index
    %c0_61 = arith.constant 0 : index
    %113 = vector.load %arg5[%c8, %c0_60, %c0_61] : memref<9x128x128xbf16, #tpu.memory_space<vmem>>, vector<1x128x128xbf16>
    %114 = vector.shape_cast %113 : vector<1x128x128xbf16> to vector<128x128xbf16>
    %cst_62 = arith.constant dense<0.000000e+00> : vector<256x128xf32>
    %115 = tpu.matmul %112, %114, %cst_62 {dimension_numbers = #tpu.dot_dimension_numbers<[1], [0], [0], [1], [0, 0, 1, 1], [], []>} : vector<256x128xbf16>, vector<128x128xbf16>, vector<256x128xf32> -> vector<256x128xf32>
    %116 = arith.addf %106, %115 : vector<256x128xf32>
    %c0_63 = arith.constant 0 : index
    %c0_64 = arith.constant 0 : index
    %117 = vector.load %arg6[%c0_63, %c0_64] : memref<1x128xf32, #tpu.memory_space<vmem>>, vector<1x128xf32>
    %118 = vector.broadcast %117 : vector<1x128xf32> to vector<256x128xf32>
    %119 = arith.mulf %116, %118 : vector<256x128xf32>
    %c0_65 = arith.constant 0 : index
    %c0_66 = arith.constant 0 : index
    %120 = vector.load %arg7[%c0_65, %c0_66] : memref<1x128xf32, #tpu.memory_space<vmem>>, vector<1x128xf32>
    %121 = vector.broadcast %120 : vector<1x128xf32> to vector<256x128xf32>
    %122 = arith.addf %119, %121 : vector<256x128xf32>
    %cst_67 = arith.constant 0.000000e+00 : f32
    %123 = vector.broadcast %cst_67 : f32 to vector<256x128xf32>
    %124 = arith.maximumf %122, %123 : vector<256x128xf32>
    %125 = arith.truncf %124 : vector<256x128xf32> to vector<256x128xbf16>
    %c0_68 = arith.constant 0 : index
    %c0_69 = arith.constant 0 : index
    %126 = vector.load %arg8[%c0_68, %c0_69] : memref<128x16xbf16, #tpu.memory_space<vmem>>, vector<128x16xbf16>
    %cst_70 = arith.constant dense<0.000000e+00> : vector<256x16xf32>
    %127 = tpu.matmul %125, %126, %cst_70 {dimension_numbers = #tpu.dot_dimension_numbers<[1], [0], [0], [1], [0, 0, 1, 1], [], []>} : vector<256x128xbf16>, vector<128x16xbf16>, vector<256x16xf32> -> vector<256x16xf32>
    %c0_71 = arith.constant 0 : index
    %c0_72 = arith.constant 0 : index
    %128 = vector.load %arg9[%c0_71, %c0_72] : memref<1x16xf32, #tpu.memory_space<vmem>>, vector<1x16xf32>
    %129 = vector.broadcast %128 : vector<1x16xf32> to vector<256x16xf32>
    %130 = arith.mulf %127, %129 : vector<256x16xf32>
    %c0_73 = arith.constant 0 : index
    %c0_74 = arith.constant 0 : index
    %131 = vector.load %arg10[%c0_73, %c0_74] : memref<1x16xf32, #tpu.memory_space<vmem>>, vector<1x16xf32>
    %132 = vector.broadcast %131 : vector<1x16xf32> to vector<256x16xf32>
    %133 = arith.addf %130, %132 : vector<256x16xf32>
    %c0_75 = arith.constant 0 : index
    %c0_76 = arith.constant 0 : index
    %c0_77 = arith.constant 0 : index
    %134 = vector.load %arg1[%c0_75, %c0_76, %c0_77] : memref<1x256x16xf32, #tpu.memory_space<vmem>>, vector<1x256x16xf32>
    %135 = vector.shape_cast %134 : vector<1x256x16xf32> to vector<256x16xf32>
    %136 = arith.addf %133, %135 : vector<256x16xf32>
    %cst_78 = arith.constant 0.000000e+00 : f32
    %137 = vector.broadcast %cst_78 : f32 to vector<256x16xf32>
    %138 = arith.maximumf %136, %137 : vector<256x16xf32>
    %c0_79 = arith.constant 0 : index
    %c0_80 = arith.constant 0 : index
    %c0_81 = arith.constant 0 : index
    %139 = vector.load %arg11[%c0_79, %c0_80, %c0_81] : memref<1x256x16xf32, #tpu.memory_space<vmem>>, vector<1x256x16xf32>
    %140 = vector.shape_cast %139 : vector<1x256x16xf32> to vector<256x16xf32>
    %141 = vector.shape_cast %138 : vector<256x16xf32> to vector<1x256x16xf32>
    tpu.vector_store %arg11[%c0_79, %c0_80, %c0_81], %141 {strides = array<i32>} : memref<1x256x16xf32, #tpu.memory_space<vmem>>, vector<1x256x16xf32>,
    return
  }
  func.func @transform_0(%arg0: i32) -> (i32, i32, i32) {
    %c0_i32 = arith.constant 0 : i32
    %c0_i32_0 = arith.constant 0 : i32
    %c0_i32_1 = arith.constant 0 : i32
    return %arg0, %c0_i32, %c0_i32_0 : i32, i32, i32
  }
  func.func @transform_1(%arg0: i32) -> (i32, i32) {
    %c0_i32 = arith.constant 0 : i32
    %c0_i32_0 = arith.constant 0 : i32
    %c0_i32_1 = arith.constant 0 : i32
    return %c0_i32, %c0_i32_0 : i32, i32
  }
  func.func @transform_2(%arg0: i32) -> (i32, i32) {
    %c0_i32 = arith.constant 0 : i32
    %c0_i32_0 = arith.constant 0 : i32
    %c0_i32_1 = arith.constant 0 : i32
    return %c0_i32, %c0_i32_0 : i32, i32
  }
  func.func @transform_3(%arg0: i32) -> (i32, i32) {
    %c0_i32 = arith.constant 0 : i32
    %c0_i32_0 = arith.constant 0 : i32
    %c0_i32_1 = arith.constant 0 : i32
    return %c0_i32, %c0_i32_0 : i32, i32
  }
  func.func @transform_4(%arg0: i32) -> (i32, i32, i32) {
    %c0_i32 = arith.constant 0 : i32
    %c0_i32_0 = arith.constant 0 : i32
    %c0_i32_1 = arith.constant 0 : i32
    %c0_i32_2 = arith.constant 0 : i32
    return %c0_i32, %c0_i32_0, %c0_i32_1 : i32, i32, i32
  }
  func.func @transform_5(%arg0: i32) -> (i32, i32) {
    %c0_i32 = arith.constant 0 : i32
    %c0_i32_0 = arith.constant 0 : i32
    %c0_i32_1 = arith.constant 0 : i32
    return %c0_i32, %c0_i32_0 : i32, i32
  }
  func.func @transform_6(%arg0: i32) -> (i32, i32) {
    %c0_i32 = arith.constant 0 : i32
    %c0_i32_0 = arith.constant 0 : i32
    %c0_i32_1 = arith.constant 0 : i32
    return %c0_i32, %c0_i32_0 : i32, i32
  }
  func.func @transform_7(%arg0: i32) -> (i32, i32) {
    %c0_i32 = arith.constant 0 : i32
    %c0_i32_0 = arith.constant 0 : i32
    %c0_i32_1 = arith.constant 0 : i32
    return %c0_i32, %c0_i32_0 : i32, i32
  }
  func.func @transform_8(%arg0: i32) -> (i32, i32) {
    %c0_i32 = arith.constant 0 : i32
    %c0_i32_0 = arith.constant 0 : i32
    %c0_i32_1 = arith.constant 0 : i32
    return %c0_i32, %c0_i32_0 : i32, i32
  }
  func.func @transform_9(%arg0: i32) -> (i32, i32) {
    %c0_i32 = arith.constant 0 : i32
    %c0_i32_0 = arith.constant 0 : i32
    %c0_i32_1 = arith.constant 0 : i32
    return %c0_i32, %c0_i32_0 : i32, i32
  }
  func.func @transform_10(%arg0: i32) -> (i32, i32, i32) {
    %c0_i32 = arith.constant 0 : i32
    %c0_i32_0 = arith.constant 0 : i32
    %c0_i32_1 = arith.constant 0 : i32
    return %arg0, %c0_i32, %c0_i32_0 : i32, i32, i32
  }
}

</mosaic_0001>

<bundles_post_ra>
// kernel: tpu_custom_call.1
= control target key start
LH: loop header
LB: loop body
LE: loop exit
PB: predicated region body
PF: predicated region fallthrough
CT: control target
= control target key end

     0   :  { %s6532_s13 = smov 0   ;;  %s8988_s0 = inlined_call_operand.vmem [shape: f32[2,256,16], index: 0, kind: input, shape index: {}]   ;;  %s8989_s1 = inlined_call_operand.vmem [shape: bf16[16,128], index: 1, kind: input, shape index: {}]   ;;  %s8990_s2 = inlined_call_operand.vmem [shape: f32[1,128], index: 2, kind: input, shape index: {}]   ;;  %s8991_s3 = inlined_call_operand.vmem [shape: f32[1,128], index: 3, kind: input, shape index: {}]   ;;  %s8992_s4 = inlined_call_operand.vmem [shape: bf16[9,128,128], index: 4, kind: input, shape index: {}]   ;;  %s8993_s5 = inlined_call_operand.vmem [shape: f32[1,128], index: 5, kind: input, shape index: {}]   ;;  %s8994_s6 = inlined_call_operand.vmem [shape: f32[1,128], index: 6, kind: input, shape index: {}]   ;;  %s8995_s7 = inlined_call_operand.vmem [shape: bf16[128,16], index: 7, kind: input, shape index: {}]   ;;  %s8996_s8 = inlined_call_operand.vmem [shape: f32[1,16], index: 8, kind: input, shape index: {}]   ;;  %s8997_s9 = inlined_call_operand.vmem [shape: f32[1,16], index: 9, kind: input, shape index: {}]   ;;  %s8998_s10 = inlined_call_operand.vmem [shape: f32[2,256,16], index: 10, kind: output, shape index: {}]  }
   0x1 LB: > { %s5069_s14 = sadd.s32 4294967295, %s6472_s13   ;;  %p5073_p0 = scmp.ge.s32.totalorder %s6472_s13, 1  ;;  %s6472_s13 = sphi %s6532_s13, %s20_s13  }
   0x2   : > { %p312_p1 = scmp.lt.s32.totalorder %s6472_s13, 3 }
   0x4   : > { %p313_p2 = pnand %p5073_p0, %p312_p1 }
   0x6   : > { %316 = sbr.rel (%p313_p2) target bundleno = 969 (0x3c9), region = 60 }
   0xb   : > { %v6385_v0 = vld [vmem:[%s8989_s1] sm:$0xff]   ;;  %p350_p3 = scmp.lt.s32.totalorder %s5069_s14, 1  ;;  %v6386_v1 = vld [vmem:[%s8992_s4 + $0x78] sm:$0xff]   ;;  %vm9061_vm0 = vcmask 130048   ;;  %v6387_v20 = vld [vmem:[%s8992_s4 + $0x70] sm:$0xff]   ;;  %v8999_v59 = vmov 0.0|0.0  }
   0xc   : > { %5858 = vmatprep.subr.bf16.mxu0 %v6385_v0  ;;  %6372 = vmatprep.subr.bf16.mxu1 %v6385_v0  ;;  %v6388_v30 = vld [vmem:[%s8992_s4 + $0x68] sm:$0xff]   ;;  %v6389_v34 = vld [vmem:[%s8992_s4 + $0x60] sm:$0xff]   ;;  %v6390_v43 = vld [vmem:[%s8992_s4 + $0x58] sm:$0xff]   ;;  %vm9072_vm6 = vmmov 1  }
   0xd   : > { %s9530_s14 = smov (!%p350_p3, %s5069_s14), 1  ;;  %5859 = vmatpush3.bf16.msra.mxu0 %v6385_v0  ;;  %6373 = vmatpush3.bf16.msra.mxu1 %v6385_v0  ;;  %v6391_v54 = vld [vmem:[%s8992_s4 + $0x50] sm:$0xff]   ;;  %v6392_v55 = vld [vmem:[%s8992_s4 + $0x48] sm:$0xff]   ;;  %v6393_v56 = vld [vmem:[%s8992_s4 + $0x40] sm:$0xff]  }
   0xe   : > { %s5599_s19 = sshll.u32 %s9530_s14, 8  ;;  %5892 = vmatprep.subr.bf16.mxu1 %v6386_v1  ;;  %v6394_v57 = vld [vmem:[%s8992_s4 + $0x38] sm:$0xff]   ;;  %v6396_v58 = vld [vmem:[%s8992_s4 + $0x30] sm:$0xff]   ;;  %v6397_v61 = vld [vmem:[%s8992_s4 + $0x28] sm:$0xff]  }
   0xf   : > { %s6554_s22 = scalar_lea.vmem %s8988_s0, %s5599_s19  ;;  %5940 = vmatprep.subr.bf16.mxu0 %v6394_v57  ;;  %v6395_v60 = vld [vmem:[%s8992_s4 + $0xb8] sm:$0xff]   ;;  %v6399_v62 = vld [vmem:[%s8992_s4 + $0x20] sm:$0xff]   ;;  %v6402_v0 = vld [vmem:[%s8992_s4 + $0x10] sm:$0xff]   ;;  %s8830_s17 = scalar_lea.vmem %s8998_s10, %s5599_s19 }
  0x10   : > { %v361_v2 = vld [vmem:[%s6554_s22] sm:$0xff]  ;;  %v362_v3 = vld [vmem:[%s6554_s22 + $0x8] sm:$0xff]  ;;  %v363_v7 = vld [vmem:[%s6554_s22 + $0x10] sm:$0xff] }
  0x11   : > { %v377_v4 = vld [vmem:[%s6554_s22 + $0x80] sm:$0xff]  ;;  %v393_v5 = vpack.c.bf16 %v362_v3, %v361_v2  ;;  %v378_v6 = vld [vmem:[%s6554_s22 + $0x88] sm:$0xff]  ;;  %v364_v8 = vld [vmem:[%s6554_s22 + $0x18] sm:$0xff] }
  0x12   : > { %v401_v9 = vpack.c.bf16 %v378_v6, %v377_v4  ;;  %v394_v10 = vpack.c.bf16 %v364_v8, %v363_v7  ;;  %v379_v11 = vld [vmem:[%s6554_s22 + $0x90] sm:$0xff]  ;;  %v380_v12 = vld [vmem:[%s6554_s22 + $0x98] sm:$0xff]  ;;  %v365_v13 = vld [vmem:[%s6554_s22 + $0x20] sm:$0xff] }
  0x13   : > { %5860 = vmatprep.mubr.msk.bf16.mxu0 %vm9061_vm0, %v393_v5  ;;  %v402_v14 = vpack.c.bf16 %v380_v12, %v379_v11  ;;  %v366_v15 = vld [vmem:[%s6554_s22 + $0x28] sm:$0xff]  ;;  %v381_v16 = vld [vmem:[%s6554_s22 + $0xa0] sm:$0xff]  ;;  %v367_v21 = vld [vmem:[%s6554_s22 + $0x30] sm:$0xff] }
  0x14   : > { %v382_v17 = vld [vmem:[%s6554_s22 + $0xa8] sm:$0xff]  ;;  %5876 = vmatprep.mubr.msk.bf16.mxu1 %vm9061_vm0, %v401_v9  ;;  %5861 = vmatmul.mubr.msk.bf16.vlgmr.msra.gmra.mxu0 %vm9061_vm0, %v394_v10  ;;  %v395_v18 = vpack.c.bf16 %v366_v15, %v365_v13  ;;  %v368_v22 = vld [vmem:[%s6554_s22 + $0x38] sm:$0xff]  ;;  %v383_v23 = vld [vmem:[%s6554_s22 + $0xb0] sm:$0xff] }
  0x15   : > { %v403_v19 = vpack.c.bf16 %v382_v17, %v381_v16  ;;  %5877 = vmatmul.mubr.msk.bf16.vlgmr.msra.gmra.mxu1 %vm9061_vm0, %v402_v14  ;;  %v384_v24 = vld [vmem:[%s6554_s22 + $0xb8] sm:$0xff]  ;;  %v369_v25 = vld [vmem:[%s6554_s22 + $0x40] sm:$0xff]  ;;  %v370_v26 = vld [vmem:[%s6554_s22 + $0x48] sm:$0xff]  ;;  %v396_v29 = vpack.c.bf16 %v368_v22, %v367_v21  ;;  %5941 = vmatpush3.bf16.msra.mxu0 %v6394_v57 }
  0x16   : > { %5864 = vmatprep.mubr.msk.bf16.mxu0 %vm9061_vm0, %v395_v18  ;;  %v385_v27 = vld [vmem:[%s6554_s22 + $0xc0] sm:$0xff]  ;;  %v386_v28 = vld [vmem:[%s6554_s22 + $0xc8] sm:$0xff]  ;;  %5893 = vmatpush3.bf16.msra.mxu1 %v6386_v1  ;;  %v404_v31 = vpack.c.bf16 %v384_v24, %v383_v23  ;;  %v397_v32 = vpack.c.bf16 %v370_v26, %v369_v25  ;;  %v371_v35 = vld [vmem:[%s6554_s22 + $0x50] sm:$0xff] }
  0x17   : > { %5880 = vmatprep.mubr.msk.bf16.mxu1 %vm9061_vm0, %v403_v19  ;;  %5894 = vmatprep.subr.bf16.mxu1 %v6387_v20  ;;  %v405_v33 = vpack.c.bf16 %v386_v28, %v385_v27  ;;  %v372_v36 = vld [vmem:[%s6554_s22 + $0x58] sm:$0xff]  ;;  %v387_v37 = vld [vmem:[%s6554_s22 + $0xd0] sm:$0xff]  ;;  %v373_v39 = vld [vmem:[%s6554_s22 + $0x60] sm:$0xff] }
  0x18   : > { %v388_v38 = vld [vmem:[%s6554_s22 + $0xd8] sm:$0xff]  ;;  %v374_v40 = vld [vmem:[%s6554_s22 + $0x68] sm:$0xff]  ;;  %v389_v41 = vld [vmem:[%s6554_s22 + $0xe0] sm:$0xff]  ;;  %v398_v44 = vpack.c.bf16 %v372_v36, %v371_v35  ;;  %5942 = vmatprep.subr.bf16.mxu0 %v6396_v58 }
  0x19   : > { %v390_v42 = vld [vmem:[%s6554_s22 + $0xe8] sm:$0xff]  ;;  %v406_v45 = vpack.c.bf16 %v388_v38, %v387_v37  ;;  %v399_v46 = vpack.c.bf16 %v374_v40, %v373_v39  ;;  %v375_v48 = vld [vmem:[%s6554_s22 + $0x70] sm:$0xff]  ;;  %v376_v49 = vld [vmem:[%s6554_s22 + $0x78] sm:$0xff]  ;;  %5943 = vmatpush3.bf16.msra.mxu0 %v6396_v58 }
  0x1a   : > { %5895 = vmatpush3.bf16.msra.mxu1 %v6387_v20  ;;  %v407_v47 = vpack.c.bf16 %v390_v42, %v389_v41  ;;  %v391_v50 = vld [vmem:[%s6554_s22 + $0xf0] sm:$0xff]  ;;  %v392_v51 = vld [vmem:[%s6554_s22 + $0xf8] sm:$0xff]  ;;  %v400_v52 = vpack.c.bf16 %v376_v49, %v375_v48  ;;  %5944 = vmatprep.subr.bf16.mxu0 %v6397_v61  ;;  %v6403_v1 = vld [vmem:[%s8992_s4 + $0x8] sm:$0xff]  }
  0x1b   : > { %5896 = vmatprep.subr.bf16.mxu1 %v6388_v30  ;;  %v408_v53 = vpack.c.bf16 %v392_v51, %v391_v50  ;;  %v6400_v63 = vld [vmem:[%s8992_s4 + $0x18] sm:$0xff]   ;;  %v6405_v2 = vld [vmem:[%s8992_s4] sm:$0xff]   ;;  %v6401_v40 = vld [vmem:[%s8992_s4 + $0xa8] sm:$0xff]  }
  0x1c   : > { %5865 = vmatmul.mubr.msk.bf16.gmra.mxu0 %vm9061_vm0, %v396_v29  ;;  %v6656_v3 = vld [vmem:[%s8992_s4 + $0xf8] sm:$0xff]   ;;  %v6666_v9 = vld [vmem:[%s8990_s2] ss:$0 sm:$0xff] }
  0x1d   : > { %5881 = vmatmul.mubr.msk.bf16.gmra.mxu1 %vm9061_vm0, %v404_v31  ;;  %5868 = vmatprep.mubr.msk.bf16.mxu0 %vm9061_vm0, %v397_v32  ;;  %v6676_v15 = vld [vmem:[%s8991_s3] ss:$0 sm:$0xff] }
  0x1e   : > { %5884 = vmatprep.mubr.msk.bf16.mxu1 %vm9061_vm0, %v405_v33  ;;  %5897 = vmatpush3.bf16.msra.mxu1 %v6388_v30  ;;  %v6398_v33 = vld [vmem:[%s8992_s4 + $0xb0] sm:$0xff]   ;;  %v6404_v51 = vld [vmem:[%s8992_s4 + $0xa0] sm:$0xff]  }
  0x1f   : > { %5898 = vmatprep.subr.bf16.mxu1 %v6389_v34  ;;  %5945 = vmatpush3.bf16.msra.mxu0 %v6397_v61 }
  0x20   : > { %5946 = vmatprep.subr.bf16.mxu0 %v6399_v62 }
  0x22   : > { %5899 = vmatpush3.bf16.msra.mxu1 %v6389_v34 }
  0x23   : > { %5900 = vmatprep.subr.bf16.mxu1 %v6390_v43  ;;  %5947 = vmatpush3.bf16.msra.mxu0 %v6399_v62 }
  0x24   : > { %5869 = vmatmul.mubr.msk.bf16.gmra.mxu0 %vm9061_vm0, %v398_v44  ;;  %5948 = vmatprep.subr.bf16.mxu0 %v6400_v63 }
  0x25   : > { %5885 = vmatmul.mubr.msk.bf16.gmra.mxu1 %vm9061_vm0, %v406_v45  ;;  %5872 = vmatprep.mubr.msk.bf16.mxu0 %vm9061_vm0, %v399_v46 }
  0x26   : > { %5888 = vmatprep.mubr.msk.bf16.mxu1 %vm9061_vm0, %v407_v47  ;;  %5901 = vmatpush3.bf16.msra.mxu1 %v6390_v43 }
  0x27   : > { %5902 = vmatprep.subr.bf16.mxu1 %v6391_v54  ;;  %5949 = vmatpush3.bf16.msra.mxu0 %v6400_v63 }
  0x28   : > { %5950 = vmatprep.subr.bf16.mxu0 %v6402_v0 }
  0x2a   : > { %5903 = vmatpush3.bf16.msra.mxu1 %v6391_v54 }
  0x2b   : > { %5904 = vmatprep.subr.bf16.mxu1 %v6392_v55  ;;  %5951 = vmatpush3.bf16.msra.mxu0 %v6402_v0 }
  0x2c   : > { %5873 = vmatmul.mubr.msk.bf16.gmra.mxu0 %vm9061_vm0, %v400_v52  ;;  %5952 = vmatprep.subr.bf16.mxu0 %v6403_v1  ;;  %v773_v52 = vlaneseq }
  0x2d   : > { %5889 = vmatmul.mubr.msk.bf16.gmra.mxu1 %vm9061_vm0, %v408_v53 }
  0x2e   : > { %5905 = vmatpush3.bf16.msra.mxu1 %v6392_v55  ;;  %5908 = vmatprep.mubr.bf16.mxu1 %v8999_v59  ;;  %v6740_v61 = vshrl.u32 %v773_v52, 7  ;;  %v9188_v59 = vmov 0 }
  0x2f   : > { %5906 = vmatprep.subr.bf16.mxu1 %v6393_v56  ;;  %5953 = vmatpush3.bf16.msra.mxu0 %v6403_v1 }
  0x30   : > { %5954 = vmatprep.subr.bf16.mxu0 %v6405_v2  ;;  %9138 = vst [vmem:[#allocation5_spill] sm:$0xff] %v6740_v61  ;;  %v6786_v52 = vadd.s32 64, %v6740_v61  ;;  %vm9067_vm1 = vcmp.lt.s32.totalorder %v6740_v61, 1  ;;  %vm9062_vm14 = vcmp.lt.s32.totalorder %v6740_v61, 7 }
  0x32   : > { %5907 = vmatpush3.bf16.msra.mxu1 %v6393_v56 }
  0x33   : > { %5988 = vmatprep.subr.bf16.mxu1 %v6395_v60  ;;  %5955 = vmatpush3.bf16.msra.mxu0 %v6405_v2 }
  0x34   : > { %6036 = vmatprep.subr.bf16.mxu0 %v6656_v3 }
  0xd4   : > { %v5862_v4 = vpop.f32.mrf.mxu0 }
  0xd5   : > { %v6659_v5 = vpop.f32.mrf.mxu1  ;;  %v636_v25 = vmul.f32 %v5862_v4, %v6666_v9 }
  0xd6   : > { %v500_v6 = vpop.f32.mrf.mxu0 }
  0xd7   : > { %v6661_v7 = vpop.f32.mrf.mxu1  ;;  %v634_v11 = vmul.f32 %v6666_v9, %v500_v6  ;;  %v675_v35 = vadd.f32 %v6676_v15, %v636_v25 }
  0xd8   : > { %v5863_v8 = vpop.f32.mrf.mxu0 }
  0xd9   : > { %v6668_v10 = vpop.f32.mrf.mxu1  ;;  %v673_v17 = vadd.f32 %v6676_v15, %v634_v11  ;;  %v637_v21 = vmul.f32 %v5863_v8, %v6666_v9  ;;  %v6718_v44 = vmax.f32 %v675_v35, 0.0  ;;  %v776_v8 = vadd.s32 16, %v6740_v61 }
  0xda   : > { %v503_v12 = vpop.f32.mrf.mxu0  ;;  %v810_v35 = vand.u32 15, %v6740_v61 }
  0xdb   : > { %v6671_v13 = vpop.f32.mrf.mxu1  ;;  %v635_v18 = vmul.f32 %v6666_v9, %v503_v12  ;;  %v6689_v26 = vmax.f32 %v673_v17, 0.0  ;;  %v676_v30 = vadd.f32 %v6676_v15, %v637_v21  ;;  %v6475_v21 = vmov 0.0  }
  0xdc   : > { %v5866_v14 = vpop.f32.mrf.mxu0  ;;  %vm6812_vm2 = vcmp.ge.s32.totalorder %v810_v35, 1 }
  0xdd   : > { %v6678_v16 = vpop.f32.mrf.mxu1  ;;  %v674_v22 = vadd.f32 %v6676_v15, %v635_v18  ;;  %v6709_v38 = vmax.f32 %v676_v30, 0.0  ;;  %v640_v55 = vmul.f32 %v5866_v14, %v6666_v9  ;;  %v6407_v14 = vld [vmem:[%s8992_s4 + $0x90] sm:$0xff]   ;;  %v6767_v30 = vrot.slane %v6475_v21, 7  ;;  %vm6935_vm7 = vmpackc.low %vm9072_vm6, %vm6812_vm2 }
  0xde   : > { %v516_v19 = vpop.f32.mrf.mxu0 }
  0xdf   : > { %v6682_v20 = vpop.f32.mrf.mxu1  ;;  %v6691_v27 = vmax.f32 %v674_v22, 0.0  ;;  %v638_v41 = vmul.f32 %v6666_v9, %v516_v19  ;;  %v6726_v49 = vpack.c.bf16 %v6709_v38, %v6718_v44  ;;  %v679_v0 = vadd.f32 %v6676_v15, %v640_v55  ;;  %9142 = vst [vmem:[#allocation9_spill] sm:$0xff] %v6767_v30 }
  0xe0   : > { %v5867_v23 = vpop.f32.mrf.mxu0  ;;  %v778_v19 = vadd.s32 32, %v6740_v61  ;;  %v6761_v22 = vrot.slane %v6475_v21, 1 }
  0xe1   : > { %v6686_v24 = vpop.f32.mrf.mxu1  ;;  %v6698_v31 = vpack.c.bf16 %v6691_v27, %v6689_v26  ;;  %v641_v48 = vmul.f32 %v5867_v23, %v6666_v9  ;;  %9137 = vst [vmem:[#allocation4_spill] sm:$0xff] %v6726_v49  ;;  %v677_v53 = vadd.f32 %v6676_v15, %v638_v41  ;;  %v6763_v23 = vmax.f32 %v679_v0, 0.0 }
  0xe2   : > { %v519_v28 = vpop.f32.mrf.mxu0  ;;  %9140 = vst [vmem:[#allocation7_spill] sm:$0xff] %v6761_v22 }
  0xe3   : > { %v6693_v29 = vpop.f32.mrf.mxu1  ;;  %9136 = vst [vmem:[#allocation3_spill] sm:$0xff] %v6698_v31  ;;  %5909 = vmatmul.mubr.bf16.vlgmr.msra.gmra.mxu1 %v6698_v31  ;;  %v639_v42 = vmul.f32 %v6666_v9, %v519_v28  ;;  %v680_v57 = vadd.f32 %v6676_v15, %v641_v48  ;;  %v6742_v62 = vmax.f32 %v677_v53, 0.0  ;;  %9141 = vst [vmem:[#allocation8_spill] sm:$0xff] %v6763_v23  ;;  %v838_v48 = vand.u32 15, %v778_v19 }
  0xe4   : > { %v5870_v32 = vpop.f32.mrf.mxu0  ;;  %5989 = vmatpush3.bf16.msra.mxu1 %v6395_v60  ;;  %5912 = vmatprep.mubr.bf16.mxu1 %v6726_v49  ;;  %v6406_v60 = vld [vmem:[%s8992_s4 + $0x98] sm:$0xff]   ;;  %v6789_v53 = vadd.s32 80, %v6740_v61  ;;  %v9169_v49 = vrot.slane %v6709_v38, 7 }
  0xe5   : > { %v6703_v34 = vpop.f32.mrf.mxu1  ;;  %5990 = vmatprep.subr.bf16.mxu1 %v6398_v33  ;;  %v678_v46 = vadd.f32 %v6676_v15, %v639_v42  ;;  %v6753_v11 = vmax.f32 %v680_v57, 0.0  ;;  %v644_v25 = vmul.f32 %v5870_v32, %v6666_v9  ;;  %vm6832_vm4 = vcmp.ge.s32.totalorder %v838_v48, 1 }
  0xe6   : > { %v532_v36 = vpop.f32.mrf.mxu0  ;;  %vm6973_vm9 = vmpackc.low %vm9072_vm6, %vm6832_vm4  ;;  %v1292_v31 = vrot.slane %v6742_v62, 7 }
  0xe7   : > { %v6707_v37 = vpop.f32.mrf.mxu1  ;;  %v6734_v56 = vmax.f32 %v678_v46, 0.0  ;;  %v642_v1 = vmul.f32 %v6666_v9, %v532_v36  ;;  %v824_v36 = vand.u32 15, %v776_v8  ;;  %v6776_v41 = vpack.c.bf16 %v6753_v11, %v6763_v23 }
  0xe8   : > { %v5871_v39 = vpop.f32.mrf.mxu0  ;;  %5991 = vmatpush3.bf16.msra.mxu1 %v6398_v33 }
  0xe9   : > { %v6716_v43 = vpop.f32.mrf.mxu1  ;;  %5992 = vmatprep.subr.bf16.mxu1 %v6401_v40  ;;  %v645_v2 = vmul.f32 %v5871_v39, %v6666_v9  ;;  %v6750_v6 = vpack.c.bf16 %v6734_v56, %v6742_v62  ;;  %v681_v28 = vadd.f32 %v6676_v15, %v642_v1  ;;  %9143 = vst [vmem:[#allocation10_spill] sm:$0xff] %v6776_v41  ;;  %vm6828_vm3 = vcmp.ge.s32.totalorder %v824_v36, 1 }
  0xea   : > { %v535_v45 = vpop.f32.mrf.mxu0  ;;  %v653_v36 = vmul.f32 %v6668_v10, %v6666_v9  ;;  %vm6954_vm8 = vmpackc.low %vm9072_vm6, %vm6828_vm3 }
  0xeb   : > { %v6721_v47 = vpop.f32.mrf.mxu1  ;;  %v643_v4 = vmul.f32 %v6666_v9, %v535_v45  ;;  %9139 = vst [vmem:[#allocation6_spill] sm:$0xff] %v6750_v6  ;;  %5913 = vmatmul.mubr.bf16.gmra.mxu1 %v6750_v6  ;;  %v684_v33 = vadd.f32 %v6676_v15, %v645_v2  ;;  %v6408_v45 = vld [vmem:[%s8992_s4 + $0x88] sm:$0xff]   ;;  %v6792_v55 = vmax.f32 %v681_v28, 0.0  ;;  %v657_v6 = vmul.f32 %v6686_v24, %v6666_v9 }
  0xec   : > { %v5874_v50 = vpop.f32.mrf.mxu0  ;;  %5993 = vmatpush3.bf16.msra.mxu1 %v6401_v40  ;;  %5916 = vmatprep.mubr.bf16.mxu1 %v6776_v41  ;;  %v9166_v41 = vmov 0  ;;  %v9171_v28 = vmov 0 }
  0xed   : > { %v5890_v54 = vpop.f32.mrf.mxu1  ;;  %5994 = vmatprep.subr.bf16.mxu1 %v6404_v51  ;;  %v682_v17 = vadd.f32 %v6676_v15, %v643_v4  ;;  %v648_v57 = vmul.f32 %v5874_v50, %v6666_v9  ;;  %v6804_v4 = vmax.f32 %v684_v33, 0.0  ;;  %v9167_v41 = vsel %vm6954_vm8, 4294967295, %v9166_v41 }
  0xee   : > { %v548_v58 = vpop.f32.mrf.mxu0  ;;  %v664_v40 = vmul.f32 %v5890_v54, %v6666_v9  ;;  %v683_v54 = vadd.f32 %v6676_v15, %v644_v25  ;;  %9168 = vst [vmem:[#allocation23_spill] sm:$0xff] %v9167_v41  ;;  %v9172_v28 = vsel %vm6973_vm9, 4294967295, %v9171_v28  ;;  %v9206_v41 = vmov 0 }
  0xef   : > { %v612_v63 = vpop.f32.mrf.mxu1  ;;  %v6771_v39 = vmax.f32 %v682_v17, 0.0  ;;  %v646_v32 = vmul.f32 %v6666_v9, %v548_v58  ;;  %9173 = vst [vmem:[#allocation25_spill] sm:$0xff] %v9172_v28  ;;  %v7031_v28 = vadd.s32 144, %v6740_v61 }
  0xf0   : > { %5995 = vmatpush3.bf16.msra.mxu1 %v6404_v51  ;;  %v5875_v12 = vpop.f32.mrf.mxu0  ;;  %v6783_v51 = vadd.s32 48, %v6740_v61  ;;  %v6796_v58 = vadd.f32 %v6676_v15, %v664_v40  ;;  %v6825_v25 = vmax.f32 %v683_v54, 0.0  ;;  %v652_v40 = vmul.f32 %v6659_v5, %v6666_v9  ;;  %v6855_v5 = vld [vmem:[%s8992_s4 + $0x138] sm:$0xff]  }
  0xf1   : > { %5996 = vmatprep.subr.bf16.mxu1 %v6406_v60  ;;  %v5891_v18 = vpop.f32.mrf.mxu1  ;;  %v649_v0 = vmul.f32 %v5875_v12, %v6666_v9  ;;  %v685_v50 = vadd.f32 %v6676_v15, %v646_v32  ;;  %v6810_v17 = vpack.c.bf16 %v6771_v39, %v6792_v55  ;;  %v687_v32 = vadd.f32 %v6676_v15, %v648_v57 }
  0xf2   : > { %v551_v42 = vpop.f32.mrf.mxu0  ;;  %v665_v1 = vmul.f32 %v5891_v18, %v6666_v9  ;;  %v852_v35 = vand.u32 15, %v6783_v51  ;;  %v6849_v54 = vpack.c.bf16 %v6804_v4, %v6825_v25  ;;  %v866_v51 = vand.u32 15, %v6786_v52  ;;  %9152 = vst [vmem:[#allocation13_spill] sm:$0xff] %v6855_v5 }
  0xf3   : > { %v615_v46 = vpop.f32.mrf.mxu1  ;;  %v647_v2 = vmul.f32 %v6666_v9, %v551_v42  ;;  %9144 = vst [vmem:[#allocation11_spill] sm:$0xff] %v6810_v17  ;;  %5917 = vmatmul.mubr.bf16.gmra.mxu1 %v6810_v17  ;;  %v6857_v57 = vmax.f32 %v685_v50, 0.0  ;;  %v1289_v52 = vrot.slane %v6691_v27, 7  ;;  %v691_v50 = vadd.f32 %v6676_v15, %v652_v40 }
  0xf4   : > { %5997 = vmatpush3.bf16.msra.mxu1 %v6406_v60  ;;  %v662_v60 = vmul.f32 %v6666_v9, %v612_v63  ;;  %v663_v8 = vmul.f32 %v6666_v9, %v615_v46  ;;  %v6409_v63 = vld [vmem:[%s8992_s4 + $0x80] sm:$0xff]   ;;  %v704_v18 = vadd.f32 %v6676_v15, %v665_v1  ;;  %9151 = vst [vmem:[#allocation12_spill] sm:$0xff] %v6849_v54  ;;  %v6894_v40 = vadd.s32 112, %v6740_v61 }
  0xf5   : > { %5998 = vmatprep.subr.bf16.mxu1 %v6407_v14  ;;  %v686_v21 = vadd.f32 %v6676_v15, %v647_v2  ;;  %v651_v1 = vmul.f32 %v6666_v9, %v6671_v13  ;;  %5920 = vmatprep.mubr.bf16.mxu1 %v6849_v54  ;;  %v692_v13 = vadd.f32 %v6676_v15, %v653_v36  ;;  %vm6908_vm5 = vcmp.ge.s32.totalorder %v852_v35, 1 }
  0xf6   : > { %v6820_v12 = vadd.f32 %v6676_v15, %v662_v60  ;;  %v6840_v42 = vmax.f32 %v704_v18, 0.0  ;;  %v702_v48 = vadd.f32 %v6676_v15, %v663_v8  ;;  %v6863_v60 = vadd.s32 96, %v6740_v61  ;;  %vm7060_vm12 = vmpackc.low %vm9072_vm6, %vm6908_vm5 }
  0xf7   : > { %v6842_v46 = vmax.f32 %v686_v21, 0.0  ;;  %v6875_v8 = vmax.f32 %v687_v32, 0.0  ;;  %v6898_v32 = vrot.slane %v6718_v44, 7  ;;  %v6921_v54 = vadd.s32 128, %v6740_v61 }
  0xf8   : > { %5999 = vmatpush3.bf16.msra.mxu1 %v6407_v14  ;;  %v688_v14 = vadd.f32 %v6676_v15, %v649_v0  ;;  %v650_v0 = vmul.f32 %v6666_v9, %v6661_v7  ;;  %v6871_v2 = vrot.slane %v6840_v42, 7  ;;  %v6884_v7 = vrot.slane %v6689_v26, 7 }
  0xf9   : > { %6000 = vmatprep.subr.bf16.mxu1 %v6408_v45  ;;  %9154 = vst [vmem:[#allocation15_spill] sm:$0xff] %v6875_v8  ;;  %v6881_v18 = vpack.c.bf16 %v6842_v46, %v6857_v57  ;;  %v6923_v17 = vmax.f32 %v691_v50, 0.0  ;;  %v656_v35 = vmul.f32 %v6678_v16, %v6666_v9  ;;  %v1346_v50 = vsel %vm9067_vm1, %v1289_v52, %v6898_v32 }
  0xfa   : > { %9153 = vst [vmem:[#allocation14_spill] sm:$0xff] %v6871_v2  ;;  %9156 = vst [vmem:[#allocation17_spill] sm:$0xff] %v6884_v7  ;;  %v6891_v21 = vsel %vm9067_vm1, %v6871_v2, %v6767_v30  ;;  %v689_v10 = vadd.f32 %v6676_v15, %v650_v0  ;;  %v1348_v16 = vsel %vm9067_vm1, %v6767_v30, %v6884_v7  ;;  %vm6993_vm10 = vcmp.ge.s32.totalorder %v866_v51, 1 }
  0xfb   : > { %9155 = vst [vmem:[#allocation16_spill] sm:$0xff] %v6881_v18  ;;  %9157 = vst [vmem:[#allocation18_spill] sm:$0xff] %v6891_v21  ;;  %v6916_v21 = vsel %vm9067_vm1, %v6884_v7, %v1289_v52  ;;  %5921 = vmatmul.mubr.bf16.gmra.mxu1 %v6881_v18  ;;  %v654_v18 = vmul.f32 %v6666_v9, %v6682_v20  ;;  %v6968_v20 = vsel %vm9067_vm1, %v6898_v32, %v9169_v49  ;;  %v6412_v49 = vld [vmem:[%s8992_s4 + $0xf0] sm:$0xff]  }
  0xfc   : > { %6001 = vmatpush3.bf16.msra.mxu1 %v6408_v45  ;;  %v6859_v45 = vmax.f32 %v688_v14, 0.0  ;;  %v6877_v14 = vmax.f32 %v702_v48, 0.0  ;;  %9162 = vst [vmem:[#allocation21_spill] sm:$0xff] %v6916_v21  ;;  %v5133_v52 = vpack.c.bf16 %v6916_v21, %v1348_v16  ;;  %9170 = vst [vmem:[#allocation24_spill] sm:$0xff] %v6968_v20  ;;  %v6985_v16 = vpack.c.bf16 %v6968_v20, %v1346_v50 }
  0xfd   : > { %6002 = vmatprep.subr.bf16.mxu1 %v6409_v63  ;;  %v695_v33 = vadd.f32 %v6676_v15, %v656_v35  ;;  %v1294_v50 = vrot.slane %v6763_v23, 7  ;;  %v660_v21 = vmul.f32 %v6703_v34, %v6666_v9  ;;  %v9182_v7 = vrot.slane %v6709_v38, 7  ;;  %vm7077_vm13 = vmpackc.low %vm9072_vm6, %vm6993_vm10 }
  0xfe   : > { %v6902_v48 = vrot.slane %v6877_v14, 7  ;;  %v6906_v36 = vpack.c.bf16 %v6859_v45, %v6875_v8  ;;  %9174 = vst [vmem:[#allocation26_spill] sm:$0xff] %v6985_v16  ;;  %v9189_v59 = vsel %vm7077_vm13, 4294967295, %v9188_v59 }
  0xff   : > { %9190 = vst [vmem:[#allocation31_spill] sm:$0xff] %v9189_v59  ;;  %v9200_v59 = vrot.slane %v6753_v11, 7 }
 0x100   : > { %6003 = vmatpush3.bf16.msra.mxu1 %v6409_v63  ;;  %9158 = vst [vmem:[#allocation19_spill] sm:$0xff] %v6902_v48  ;;  %9159 = vst [vmem:[#allocation20_spill] sm:$0xff] %v6906_v36  ;;  %v690_v63 = vadd.f32 %v6676_v15, %v651_v1  ;;  %5924 = vmatprep.mubr.bf16.mxu1 %v6906_v36  ;;  %v1350_v0 = vsel %vm9067_vm1, %v6902_v48, %v6767_v30  ;;  %v9163_v1 = vmov 0  ;;  %v6946_v36 = vmax.f32 %v692_v13, 0.0 }
 0x101   : > { %6084 = vmatprep.subr.bf16.mxu1 %v6855_v5  ;;  %v9164_v1 = vsel %vm6935_vm7, 4294967295, %v9163_v1  ;;  %v5130_v19 = vpack.c.bf16 %v6767_v30, %v1350_v0  ;;  %v655_v13 = vmul.f32 %v6666_v9, %v6693_v29  ;;  %v6977_v0 = vmax.f32 %v689_v10, 0.0  ;;  %v6415_v10 = vld [vmem:[%s8992_s4 + $0xe0] sm:$0xff]  }
 0x102   : > { %9165 = vst [vmem:[#allocation22_spill] sm:$0xff] %v9164_v1  ;;  %v6979_v24 = vmax.f32 %v690_v63, 0.0  ;;  %v1293_v29 = vrot.slane %v6734_v56, 7  ;;  %v894_v63 = vand.u32 15, %v6863_v60  ;;  %v693_v1 = vadd.f32 %v6676_v15, %v654_v18 }
 0x103   : > { %5956 = vmatprep.mubr.msk.bf16.mxu0 %vm6935_vm7, %v5130_v19  ;;  %v908_v19 = vand.u32 15, %v6894_v40  ;;  %v696_v60 = vadd.f32 %v6676_v15, %v657_v6  ;;  %v694_v40 = vadd.f32 %v6676_v15, %v655_v13  ;;  %v9179_v18 = vand.u32 15, %v6789_v53  ;;  %v6413_v53 = vld [vmem:[%s8992_s4 + $0xe8] sm:$0xff]  }
 0x104   : > { %5957 = vmatmul.mubr.msk.bf16.vlgmr.msra.gmra.mxu0 %vm6954_vm8, %v5133_v52  ;;  %v7007_v51 = vpack.c.bf16 %v6979_v24, %v6977_v0  ;;  %v7014_v52 = vpack.c.bf16 %v6946_v36, %v6923_v17  ;;  %v1343_v35 = vsel %vm9067_vm1, %v1292_v31, %v1293_v29  ;;  %v922_v6 = vand.u32 15, %v6921_v54 }
 0x105   : > { %5960 = vmatprep.mubr.msk.bf16.mxu0 %vm6973_vm9, %v6985_v16  ;;  %vm7018_vm11 = vcmp.ge.s32.totalorder %v9179_v18, 1  ;;  %6037 = vmatpush3.bf16.msra.mxu0 %v6656_v3  ;;  %v7028_v13 = vadd.s32 8, %v6740_v61  ;;  %v7036_v18 = vmax.f32 %v695_v33, 0.0  ;;  %v1342_v3 = vsel %vm9067_vm1, %v1293_v29, %v1294_v50 }
 0x106   : > { %9177 = vst [vmem:[#allocation27_spill] sm:$0xff] %v7007_v51  ;;  %9178 = vst [vmem:[#allocation28_spill] sm:$0xff] %v7014_v52  ;;  %5925 = vmatmul.mubr.bf16.gmra.mxu1 %v7007_v51  ;;  %6038 = vmatprep.subr.bf16.mxu0 %v6412_v49  ;;  %v7042_v54 = vadd.s32 160, %v6740_v61  ;;  %v7045_v51 = vadd.s32 24, %v6740_v61  ;;  %v7047_v16 = vmax.f32 %v693_v1, 0.0  ;;  %v661_v33 = vmul.f32 %v6716_v43, %v6666_v9 }
 0x107   : > { %5928 = vmatprep.mubr.bf16.mxu1 %v7014_v52  ;;  %v1344_v52 = vsel %vm9067_vm1, %v9182_v7, %v1292_v31  ;;  %v9183_v29 = vmov 0  ;;  %v7064_v1 = vmax.f32 %v696_v60, 0.0  ;;  %v7066_v5 = vmax.f32 %v694_v40, 0.0  ;;  %vm7160_vm4 = vmpackc.low %vm9072_vm6, %vm7018_vm11 }
 0x108   : > { %v9184_v29 = vsel %vm7060_vm12, 4294967295, %v9183_v29  ;;  %v7068_v34 = vpack.c.bf16 %v1343_v35, %v1344_v52  ;;  %v9187_v43 = vrot.slane %v6753_v11, 7  ;;  %v658_v31 = vmul.f32 %v6666_v9, %v6707_v37  ;;  %v6418_v37 = vld [vmem:[%s8992_s4 + $0xd0] sm:$0xff]  }
 0x109   : > { %9185 = vst [vmem:[#allocation29_spill] sm:$0xff] %v9184_v29  ;;  %6039 = vmatpush3.bf16.msra.mxu0 %v6412_v49  ;;  %v1297_v7 = vrot.slane %v6771_v39, 7  ;;  %v659_v35 = vmul.f32 %v6666_v9, %v6721_v47  ;;  %vm7095_vm15 = vcmp.ge.s32.totalorder %v894_v63, 1  ;;  %v817_v49 = vand.u32 15, %v7028_v13 }
 0x10a   : > { %9186 = vst [vmem:[#allocation30_spill] sm:$0xff] %v7068_v34  ;;  %v1341_v23 = vsel %vm9067_vm1, %v1294_v50, %v9187_v43  ;;  %6040 = vmatprep.subr.bf16.mxu0 %v6413_v53  ;;  %v1296_v50 = vrot.slane %v6792_v55, 7  ;;  %v700_v40 = vadd.f32 %v6676_v15, %v661_v33  ;;  %v7110_v63 = vpack.c.bf16 %v7066_v5, %v7047_v16  ;;  %vm7174_vm5 = vmpackc.low %vm9072_vm6, %vm7095_vm15 }
 0x10b   : > { %v7086_v60 = vpack.c.bf16 %v1341_v23, %v1342_v3  ;;  %v699_v23 = vadd.f32 %v6676_v15, %v660_v21  ;;  %v1298_v52 = vrot.slane %v6825_v25, 7  ;;  %v7116_v3 = vpack.c.bf16 %v7064_v1, %v7036_v18 }
 0x10c   : > { %5961 = vmatmul.mubr.msk.bf16.gmra.mxu0 %vm7060_vm12, %v7068_v34  ;;  %9194 = vst [vmem:[#allocation33_spill] sm:$0xff] %v7110_v63  ;;  %vm7118_vm2 = vcmp.ge.s32.totalorder %v908_v19, 1  ;;  %v697_v43 = vadd.f32 %v6676_v15, %v658_v31  ;;  %v698_v47 = vadd.f32 %v6676_v15, %v659_v35  ;;  %v7126_v9 = vmax.f32 %v6820_v12, 0.0 }
 0x10d   : > { %9191 = vst [vmem:[#allocation32_spill] sm:$0xff] %v7086_v60  ;;  %5964 = vmatprep.mubr.msk.bf16.mxu0 %vm7077_vm13, %v7086_v60  ;;  %9195 = vst [vmem:[#allocation34_spill] sm:$0xff] %v7116_v3  ;;  %6041 = vmatpush3.bf16.msra.mxu0 %v6413_v53  ;;  %v1339_v13 = vsel %vm9067_vm1, %v1296_v50, %v1297_v7  ;;  %vm7131_vm3 = vcmp.ge.s32.totalorder %v922_v6, 1  ;;  %v6416_v53 = vld [vmem:[%s8992_s4 + $0xd8] sm:$0xff]   ;;  %v7139_v31 = vrot.slane %v6689_v26, 1  ;;  %v735_v15 = vmax.f32 %v6796_v58, 0.0 }
 0x10e   : > { %5929 = vmatmul.mubr.bf16.gmra.mxu1 %v7110_v63  ;;  %6042 = vmatprep.subr.bf16.mxu0 %v6415_v10  ;;  %v1338_v12 = vsel %vm9067_vm1, %v1297_v7, %v1298_v52  ;;  %v7146_v6 = vadd.s32 40, %v6740_v61  ;;  %v7148_v35 = vmax.f32 %v699_v23, 0.0  ;;  %v7150_v33 = vmax.f32 %v700_v40, 0.0  ;;  %vm7263_vm11 = vmpackc.low %vm9072_vm6, %vm7118_vm2 }
 0x10f   : > { %5932 = vmatprep.mubr.bf16.mxu1 %v7116_v3  ;;  %v1961_v63 = vrot.slane %v6877_v14, 1  ;;  %v1340_v26 = vsel %vm9067_vm1, %v9200_v59, %v1296_v50  ;;  %v9201_v58 = vmov 0  ;;  %v2427_v7 = vrot.slane %v735_v15, 7  ;;  %vm7284_vm15 = vmpackc.low %vm9072_vm6, %vm7131_vm3 }
 0x110   : > { %v9202_v58 = vsel %vm7160_vm4, 4294967295, %v9201_v58  ;;  %v1301_v23 = vrot.slane %v6842_v46, 7  ;;  %v7165_v3 = vpack.c.bf16 %v1339_v13, %v1340_v26  ;;  %v9205_v40 = vrot.slane %v6804_v4, 7 }
 0x111   : > { %9203 = vst [vmem:[#allocation35_spill] sm:$0xff] %v9202_v58  ;;  %v9207_v41 = vsel %vm7174_vm5, 4294967295, %v9206_v41  ;;  %vm7178_vm10 = vcmp.lt.s32.totalorder %v817_v49, 15  ;;  %6043 = vmatpush3.bf16.msra.mxu0 %v6415_v10  ;;  %v7182_v50 = vmax.f32 %v697_v43, 0.0  ;;  %v7184_v13 = vmax.f32 %v698_v47, 0.0 }
 0x112   : > { %9204 = vst [vmem:[#allocation36_spill] sm:$0xff] %v7165_v3  ;;  %v1337_v29 = vsel %vm9067_vm1, %v1298_v52, %v9205_v40  ;;  %9208 = vst [vmem:[#allocation37_spill] sm:$0xff] %v9207_v41  ;;  %v9048_v26 = vrot.slane %v7126_v9, 1  ;;  %6044 = vmatprep.subr.bf16.mxu0 %v6416_v53  ;;  %v1302_v52 = vrot.slane %v6875_v8, 7  ;;  %v3071_v49 = vrot.slane %v735_v15, 1 }
 0x113   : > { %v7187_v60 = vpack.c.bf16 %v1337_v29, %v1338_v12  ;;  %v1300_v40 = vrot.slane %v6857_v57, 7  ;;  %v3072_v10 = vrot.slane %v6840_v42, 1  ;;  %v1303_v47 = vrot.slane %v6859_v45, 7  ;;  %vm7323_vm2 = vmpackc.low %vm7178_vm10, %vm9072_vm6 }
 0x114   : > { %5965 = vmatmul.mubr.msk.bf16.gmra.mxu0 %vm7160_vm4, %v7165_v3  ;;  %v7204_v29 = vpack.c.bf16 %v7184_v13, %v7182_v50  ;;  %v7208_v43 = vpack.c.bf16 %v7150_v33, %v7148_v35  ;;  %v7214_v12 = vsel %vm9062_vm14, %v9048_v26, %v1961_v63  ;;  %v7221_v41 = vsel %vm9062_vm14, %v1961_v63, %v6761_v22 }
 0x115   : > { %9211 = vst [vmem:[#allocation38_spill] sm:$0xff] %v7187_v60  ;;  %5968 = vmatprep.mubr.msk.bf16.mxu0 %vm7174_vm5, %v7187_v60  ;;  %v1335_v58 = vsel %vm9067_vm1, %v1300_v40, %v1301_v23  ;;  %6045 = vmatpush3.bf16.msra.mxu0 %v6416_v53  ;;  %v2429_v60 = vsel %vm9067_vm1, %v2427_v7, %v6871_v2  ;;  %v1304_v26 = vrot.slane %v6977_v0, 7  ;;  %v6419_v53 = vld [vmem:[%s8992_s4 + $0xc8] sm:$0xff]   ;;  %v9232_v59 = vand.u32 15, %v7042_v54  ;;  %v6414_v54 = vld [vmem:[%s8992_s4 + $0x130] sm:$0xff]  }
 0x116   : > { %9212 = vst [vmem:[#allocation39_spill] sm:$0xff] %v7204_v29  ;;  %9213 = vst [vmem:[#allocation40_spill] sm:$0xff] %v7208_v43  ;;  %v2430_v3 = vsel %vm9067_vm1, %v6902_v48, %v2427_v7  ;;  %5933 = vmatmul.mubr.bf16.gmra.mxu1 %v7204_v29  ;;  %6046 = vmatprep.subr.bf16.mxu0 %v6418_v37  ;;  %v7239_v2 = vpack.c.bf16 %v6840_v42, %v735_v15  ;;  %v9217_v42 = vrot.slane %v6804_v4, 7  ;;  %v9218_v15 = vmov 0 }
 0x117   : > { %v7236_v8 = vpack.c.bf16 %v2429_v60, %v2430_v3  ;;  %5936 = vmatprep.mubr.bf16.mxu1 %v7208_v43  ;;  %v1334_v7 = vsel %vm9067_vm1, %v1301_v23, %v1302_v52  ;;  %v7248_v29 = vsel %vm9067_vm1, %v6767_v30, %v6898_v32  ;;  %v3074_v48 = vsel %vm9062_vm14, %v1961_v63, %v3071_v49 }
 0x118   : > { %9214 = vst [vmem:[#allocation41_spill] sm:$0xff] %v7239_v2  ;;  %9215 = vst [vmem:[#allocation42_spill] sm:$0xff] %v7248_v29  ;;  %v7254_v60 = vsel %vm9062_vm14, %v3071_v49, %v3072_v10  ;;  %v1336_v3 = vsel %vm9067_vm1, %v9217_v42, %v1300_v40  ;;  %v9219_v15 = vsel %vm7263_vm11, 4294967295, %v9218_v15  ;;  %v7270_v63 = vpack.c.bf16 %v3074_v48, %v7214_v12 }
 0x119   : > { %9216 = vst [vmem:[#allocation43_spill] sm:$0xff] %v7254_v60  ;;  %v7275_v23 = vsel %vm9062_vm14, %v3072_v10, %v7139_v31  ;;  %v7277_v49 = vpack.c.bf16 %v1335_v58, %v1336_v3  ;;  %v1333_v21 = vsel %vm9067_vm1, %v1302_v52, %v1303_v47  ;;  %v9222_v40 = vmov 0  ;;  %6047 = vmatpush3.bf16.msra.mxu0 %v6418_v37  ;;  %v6421_v37 = vld [vmem:[%s8992_s4 + $0xc0] sm:$0xff]  }
 0x11a   : > { %9220 = vst [vmem:[#allocation44_spill] sm:$0xff] %v7270_v63  ;;  %9221 = vst [vmem:[#allocation45_spill] sm:$0xff] %v7275_v23  ;;  %v9223_v40 = vsel %vm7284_vm15, 4294967295, %v9222_v40  ;;  %v7293_v42 = vsel %vm9062_vm14, %v3072_v10, %v6761_v22  ;;  %v1305_v58 = vrot.slane %v6979_v24, 7  ;;  %v7296_v3 = vpack.c.bf16 %v1333_v21, %v1334_v7  ;;  %6048 = vmatprep.subr.bf16.mxu0 %v6419_v53 }
 0x11b   : > { %9224 = vst [vmem:[#allocation46_spill] sm:$0xff] %v7293_v42  ;;  %v1992_v19 = vsel %vm9062_vm14, %v6761_v22, %v7139_v31  ;;  %v1306_v10 = vrot.slane %v6923_v17, 7  ;;  %v1307_v48 = vrot.slane %v6946_v36, 7  ;;  %v796_v7 = vadd.s32 176, %v6740_v61 }
 0x11c   : > { %5969 = vmatmul.mubr.msk.bf16.gmra.mxu0 %vm7263_vm11, %v7277_v49  ;;  %v7318_v21 = vpack.c.bf16 %v6877_v14, %v7126_v9  ;;  %v9226_v52 = vmov 0  ;;  %v9229_v32 = vand.u32 15, %v7031_v28  ;;  %v845_v42 = vand.u32 15, %v7146_v6 }
 0x11d   : > { %5972 = vmatprep.mubr.msk.bf16.mxu0 %vm7284_vm15, %v7296_v3  ;;  %v9227_v52 = vsel %vm7323_vm2, 4294967295, %v9226_v52  ;;  %v798_v30 = vadd.s32 192, %v6740_v61  ;;  %v1933_v14 = vrot.slane %v6691_v27, 1  ;;  %v5202_v60 = vpack.c.bf16 %v1992_v19, %v6761_v22  ;;  %6049 = vmatpush3.bf16.msra.mxu0 %v6419_v53  ;;  %v7359_v53 = vld [vmem:[%s8992_s4 + $0x178] sm:$0xff]  }
 0x11e   : > { %9225 = vst [vmem:[#allocation47_spill] sm:$0xff] %v7318_v21  ;;  %9228 = vst [vmem:[#allocation48_spill] sm:$0xff] %v9227_v52  ;;  %vm7329_vm3 = vcmp.ge.s32.totalorder %v9229_v32, 1  ;;  %vm7339_vm10 = vcmp.ge.s32.totalorder %v9232_v59, 1  ;;  %v781_v28 = vadd.s32 56, %v6740_v61  ;;  %5937 = vmatmul.mubr.bf16.gmra.mxu1 %v7318_v21  ;;  %v1331_v6 = vsel %vm9067_vm1, %v1304_v26, %v1305_v58  ;;  %6050 = vmatprep.subr.bf16.mxu0 %v6421_v37 }
 0x11f   : > { %v1332_v27 = vsel %vm9067_vm1, %v1303_v47, %v1304_v26  ;;  %v9235_v19 = vand.u32 15, %v7045_v51  ;;  %v7362_v59 = vrot.slane %v6718_v44, 1  ;;  %6004 = vmatprep.mubr.msk.bf16.mxu1 %vm7323_vm2, %v5202_v60  ;;  %v1329_v26 = vsel %vm9067_vm1, %v1306_v10, %v1307_v48  ;;  %vm7374_vm14 = vmpackc.low %vm9072_vm6, %vm7329_vm3 }
 0x120   : > { %v1330_v51 = vsel %vm9067_vm1, %v1305_v58, %v1306_v10  ;;  %v964_v47 = vand.u32 15, %v796_v7  ;;  %v9239_v32 = vmov 0  ;;  %vm7378_vm15 = vcmp.lt.s32.totalorder %v845_v42, 15  ;;  %vm7394_vm3 = vmpackc.low %vm9072_vm6, %vm7339_vm10 }
 0x121   : > { %vm7352_vm0 = vcmp.lt.s32.totalorder %v9235_v19, 15  ;;  %9238 = vst [vmem:[#allocation49_spill] sm:$0xff] %v7362_v59  ;;  %v1935_v19 = vrot.slane %v6709_v38, 1  ;;  %v9240_v32 = vsel %vm7374_vm14, 4294967295, %v9239_v32  ;;  %v978_v60 = vand.u32 15, %v798_v30  ;;  %6051 = vmatpush3.bf16.msra.mxu0 %v6421_v37 }
 0x122   : > { %v783_v22 = vadd.s32 72, %v6740_v61  ;;  %vm9243_vm1 = vcmp.lt.s32.totalorder %v6740_v61, 7  ;;  %v7389_v34 = vpack.c.bf16 %v1331_v6, %v1332_v27  ;;  %v9245_v42 = vmov 0  ;;  %6132 = vmatprep.subr.bf16.mxu0 %v7359_v53 }
 0x123   : > { %v1990_v58 = vsel %vm9243_vm1, %v1933_v14, %v7362_v59  ;;  %vm9244_vm2 = vmmov %vm9243_vm1  ;;  %v9246_v42 = vsel %vm7394_vm3, 4294967295, %v9245_v42  ;;  %v859_v30 = vand.u32 15, %v781_v28  ;;  %v1308_v10 = vrot.slane %v7047_v16, 7 }
 0x124   : > { %v1991_v38 = vsel %vm9244_vm2, %v7139_v31, %v1933_v14  ;;  %v1309_v7 = vrot.slane %v7066_v5, 7  ;;  %v7400_v63 = vpack.c.bf16 %v1329_v26, %v1330_v51  ;;  %v9247_v29 = vrot.slane %v6742_v62, 1  ;;  %5973 = vmatmul.mubr.msk.bf16.gmra.mxu0 %vm7374_vm14, %v7389_v34  ;;  %vm7415_vm2 = vmpackc.low %vm7352_vm0, %vm9072_vm6 }
 0x125   : > { %v1310_v23 = vrot.slane %v7036_v18, 7  ;;  %v9248_v37 = vmov 0  ;;  %v800_v28 = vadd.s32 208, %v6740_v61  ;;  %vm9251_vm10 = vmmov %vm9243_vm1  ;;  %v9252_v27 = vmov 0 }
 0x126   : > { %v1988_v31 = vsel %vm9243_vm1, %v1935_v19, %v9247_v29  ;;  %v9249_v37 = vsel %vm7415_vm2, 4294967295, %v9248_v37  ;;  %v7420_v29 = vpack.c.bf16 %v1990_v58, %v1991_v38  ;;  %5976 = vmatprep.mubr.msk.bf16.mxu0 %vm7394_vm3, %v7400_v63  ;;  %v1989_v6 = vsel %vm9251_vm10, %v7362_v59, %v1935_v19  ;;  %vm7431_vm1 = vmpackc.low %vm7378_vm15, %vm9072_vm6 }
 0x127   : > { %9250 = vst [vmem:[#allocation50_spill] sm:$0xff] %v9249_v37  ;;  %v9253_v27 = vsel %vm7431_vm1, 4294967295, %v9252_v27  ;;  %v873_v26 = vand.u32 15, %v783_v22  ;;  %v802_v51 = vadd.s32 224, %v6740_v61  ;;  %v1937_v58 = vrot.slane %v6734_v56, 1 }
 0x128   : > { %9254 = vst [vmem:[#allocation51_spill] sm:$0xff] %v9253_v27  ;;  %v7440_v38 = vpack.c.bf16 %v1988_v31, %v1989_v6  ;;  %vm1212_vm0 = vcmp.ge.s32.totalorder %v964_v47, 1  ;;  %vm7442_vm10 = vcmp.ge.s32.totalorder %v978_v60, 1  ;;  %6005 = vmatmul.mubr.msk.bf16.vlgmr.msra.gmra.mxu1 %vm7415_vm2, %v7420_v29  ;;  %vm9257_vm15 = vcmp.lt.s32.totalorder %v6740_v61, 1  ;;  %v9261_v47 = vld [vmem:[#allocation8_spill] sm:$0xff]  ;;  %v9262_v31 = vld [vmem:[#allocation13_spill] sm:$0xff] }
 0x129   : > { %v1327_v22 = vsel %vm9257_vm15, %v1308_v10, %v1309_v7  ;;  %vm9258_vm6 = vmmov %vm9257_vm15  ;;  %vm7454_vm3 = vcmp.lt.s32.totalorder %v859_v30, 15  ;;  %v1938_v60 = vrot.slane %v9261_v47, 1  ;;  %6085 = vmatpush3.bf16.msra.mxu1 %v9262_v31  ;;  %v9263_v6 = vrot.slane %v7064_v1, 7 }
 0x12a   : > { %v1328_v14 = vsel %vm9258_vm6, %v1307_v48, %v1308_v10  ;;  %6008 = vmatprep.mubr.msk.bf16.mxu1 %vm7431_vm1, %v7440_v38  ;;  %vm9264_vm2 = vmmov %vm9258_vm6  ;;  %v785_v30 = vadd.s32 88, %v6740_v61  ;;  %v1939_v10 = vrot.slane %v6753_v11, 1  ;;  %vm9266_vm6 = vmmov 1   ;;  %6086 = vmatprep.subr.bf16.mxu1 %v6414_v54 }
 0x12b   : > { %v1325_v44 = vsel %vm9264_vm2, %v1310_v23, %v9263_v6  ;;  %vm9265_vm15 = vmmov %vm9264_vm2  ;;  %v9267_v47 = vmov 0  ;;  %vm7476_vm11 = vcmp.lt.s32.totalorder %v873_v26, 15  ;;  %v992_v59 = vand.u32 15, %v800_v28 }
 0x12c   : > { %v1326_v48 = vsel %vm9265_vm15, %v1309_v7, %v1310_v23  ;;  %vm7472_vm14 = vmpackc.low %vm9266_vm6, %vm1212_vm0  ;;  %v1006_v20 = vand.u32 15, %v802_v51  ;;  %v6417_v7 = vld [vmem:[%s8992_s4 + $0x128] sm:$0xff]   ;;  %v7483_v23 = vpack.c.bf16 %v1327_v22, %v1328_v14  ;;  %v9271_v11 = vmov 0 }
 0x12d   : > { %v9268_v47 = vsel %vm7472_vm14, 4294967295, %v9267_v47  ;;  %vm7488_vm2 = vmpackc.low %vm9266_vm6, %vm7442_vm10  ;;  %vm9273_vm0 = vcmp.lt.s32.totalorder %v6740_v61, 7  ;;  %v9274_v6 = vrot.slane %v6742_v62, 1  ;;  %v787_v51 = vadd.s32 104, %v6740_v61  ;;  %6087 = vmatpush3.bf16.msra.mxu1 %v6414_v54 }
 0x12e   : > { %v9272_v11 = vsel %vm7488_vm2, 4294967295, %v9271_v11  ;;  %v1986_v26 = vsel %vm9273_vm0, %v1937_v58, %v1938_v60  ;;  %vm9275_vm15 = vmmov %vm9273_vm0  ;;  %v1312_v14 = vrot.slane %v7182_v50, 7  ;;  %v1313_v22 = vrot.slane %v7184_v13, 7  ;;  %5977 = vmatmul.mubr.msk.bf16.gmra.mxu0 %vm7472_vm14, %v7483_v23  ;;  %6088 = vmatprep.subr.bf16.mxu1 %v6417_v7 }
 0x12f   : > { %v1987_v28 = vsel %vm9275_vm15, %v9274_v6, %v1937_v58  ;;  %v7501_v19 = vpack.c.bf16 %v1325_v44, %v1326_v48  ;;  %v9276_v2 = vrot.slane %v6792_v55, 1  ;;  %vm9277_vm10 = vmmov %vm9273_vm0  ;;  %v1314_v43 = vrot.slane %v7148_v35, 7 }
 0x130   : > { %v1315_v62 = vrot.slane %v7150_v33, 7  ;;  %vm7515_vm0 = vmpackc.low %vm7454_vm3, %vm9266_vm6  ;;  %v9278_v58 = vmov 0  ;;  %v887_v44 = vand.u32 15, %v785_v30  ;;  %v9282_v56 = vmov 0  ;;  %v6420_v30 = vld [vmem:[%s8992_s4 + $0x120] sm:$0xff]  }
 0x131   : > { %v1984_v21 = vsel %vm9277_vm10, %v1939_v10, %v9276_v2  ;;  %v9279_v58 = vsel %vm7515_vm0, 4294967295, %v9278_v58  ;;  %5980 = vmatprep.mubr.msk.bf16.mxu0 %vm7488_vm2, %v7501_v19  ;;  %v7522_v2 = vpack.c.bf16 %v1986_v26, %v1987_v28  ;;  %vm9281_vm15 = vmmov %vm9277_vm10  ;;  %v804_v54 = vadd.s32 240, %v6740_v61  ;;  %6089 = vmatpush3.bf16.msra.mxu1 %v6417_v7 }
 0x132   : > { %9280 = vst [vmem:[#allocation8_spill] sm:$0xff] %v9279_v58  ;;  %v1985_v48 = vsel %vm9281_vm15, %v1938_v60, %v1939_v10  ;;  %vm7529_vm10 = vmpackc.low %vm7476_vm11, %vm9266_vm6  ;;  %v1941_v26 = vrot.slane %v6771_v39, 1  ;;  %vm1216_vm3 = vcmp.ge.s32.totalorder %v992_v59, 1  ;;  %v901_v60 = vand.u32 15, %v787_v51  ;;  %6090 = vmatprep.subr.bf16.mxu1 %v6420_v30 }
 0x133   : > { %v9283_v56 = vsel %vm7529_vm10, 4294967295, %v9282_v56  ;;  %v7538_v6 = vpack.c.bf16 %v1984_v21, %v1985_v48  ;;  %v1944_v10 = vrot.slane %v6857_v57, 1  ;;  %6009 = vmatmul.mubr.msk.bf16.gmra.mxu1 %vm7515_vm0, %v7522_v2  ;;  %vm9285_vm11 = vcmp.lt.s32.totalorder %v6740_v61, 1 }
 0x134   : > { %9284 = vst [vmem:[#allocation13_spill] sm:$0xff] %v9283_v56  ;;  %v1323_v31 = vsel %vm9285_vm11, %v1312_v14, %v1313_v22  ;;  %v9286_v28 = vrot.slane %v7064_v1, 7  ;;  %vm9287_vm15 = vmmov %vm9285_vm11  ;;  %vm7550_vm1 = vcmp.ge.s32.totalorder %v1006_v20, 1  ;;  %v1942_v21 = vrot.slane %v6825_v25, 1 }
 0x135   : > { %6012 = vmatprep.mubr.msk.bf16.mxu1 %vm7529_vm10, %v7538_v6  ;;  %vm9290_vm0 = vmmov %vm9285_vm11  ;;  %vm7562_vm2 = vcmp.lt.s32.totalorder %v887_v44, 15  ;;  %v1943_v20 = vrot.slane %v6804_v4, 1  ;;  %v9294_v25 = vmov 0  ;;  %v789_v48 = vadd.s32 120, %v6740_v61  ;;  %6091 = vmatpush3.bf16.msra.mxu1 %v6420_v30  ;;  %v6423_v30 = vld [vmem:[%s8992_s4 + $0x110] sm:$0xff]  }
 0x136   : > { %v1324_v27 = vsel %vm9287_vm15, %v9286_v28, %v1312_v14  ;;  %v1321_v57 = vsel %vm9290_vm0, %v1314_v43, %v1315_v62  ;;  %vm9291_vm11 = vmmov %vm9290_vm0  ;;  %v1020_v14 = vand.u32 15, %v804_v54  ;;  %v791_v28 = vadd.s32 136, %v6740_v61 }
 0x137   : > { %v1322_v59 = vsel %vm9291_vm11, %v1313_v22, %v1314_v43  ;;  %vm7568_vm15 = vmpackc.low %vm9266_vm6, %vm1216_vm3  ;;  %v6422_v43 = vld [vmem:[%s8992_s4 + $0x118] sm:$0xff]   ;;  %v7577_v22 = vpack.c.bf16 %v1323_v31, %v1324_v27  ;;  %v9296_v4 = vmov 0  ;;  %vm9298_vm3 = vcmp.lt.s32.totalorder %v6740_v61, 7 }
 0x138   : > { %v9295_v25 = vsel %vm7568_vm15, 4294967295, %v9294_v25  ;;  %vm7582_vm0 = vmpackc.low %vm9266_vm6, %vm7550_vm1  ;;  %v1982_v7 = vsel %vm9298_vm3, %v1941_v26, %v1942_v21  ;;  %v9299_v44 = vrot.slane %v6792_v55, 1  ;;  %vm1235_vm10 = vcmp.lt.s32.totalorder %v901_v60, 15  ;;  %6092 = vmatprep.subr.bf16.mxu1 %v6422_v43 }
 0x139   : > { %v9297_v4 = vsel %vm7582_vm0, 4294967295, %v9296_v4  ;;  %vm9300_vm11 = vmmov %vm9298_vm3  ;;  %v1316_v56 = vrot.slane %v7126_v9, 7  ;;  %v7593_v27 = vpack.c.bf16 %v1321_v57, %v1322_v59  ;;  %5981 = vmatmul.mubr.msk.bf16.gmra.mxu0 %vm7568_vm15, %v7577_v22  ;;  %v9302_v55 = vmov 0  ;;  %6093 = vmatpush3.bf16.msra.mxu1 %v6422_v43 }
 0x13a   : > { %v1983_v54 = vsel %vm9300_vm11, %v9299_v44, %v1941_v26  ;;  %vm9301_vm14 = vmmov %vm9298_vm3  ;;  %v9307_v39 = vmov 0  ;;  %v915_v57 = vand.u32 15, %v789_v48  ;;  %v929_v59 = vand.u32 15, %v791_v28  ;;  %6094 = vmatprep.subr.bf16.mxu1 %v6423_v30 }
 0x13b   : > { %v1980_v31 = vsel %vm9301_vm14, %v1943_v20, %v1944_v10  ;;  %vm7603_vm1 = vmpackc.low %vm7562_vm2, %vm9266_vm6  ;;  %5984 = vmatprep.mubr.msk.bf16.mxu0 %vm7582_vm0, %v7593_v27  ;;  %v7610_v26 = vpack.c.bf16 %v1982_v7, %v1983_v54  ;;  %v1945_v51 = vrot.slane %v6842_v46, 1  ;;  %vm1220_vm2 = vcmp.ge.s32.totalorder %v1020_v14, 1  ;;  %v9314_v54 = vld [vmem:[#allocation15_spill] sm:$0xff]  ;;  %v9316_v14 = vld [vmem:[#allocation14_spill] sm:$0xff] }
 0x13c   : > { %v9303_v55 = vsel %vm7603_vm1, 4294967295, %v9302_v55  ;;  %vm9306_vm14 = vmmov %vm9298_vm3  ;;  %v1948_v7 = vrot.slane %v6977_v0, 1  ;;  %v1946_v46 = vrot.slane %v9314_v54, 1  ;;  %v9315_v0 = vld [vmem:[#allocation17_spill] sm:$0xff]  ;;  %vm7648_vm0 = vcmp.lt.s32.totalorder %v929_v59, 15 }
 0x13d   : > { %9304 = vst [vmem:[#allocation52_spill] sm:$0xff] %v9303_v55  ;;  %9305 = vst [vmem:[#allocation53_spill] sm:$0xff] %v7610_v26  ;;  %v1981_v60 = vsel %vm9306_vm14, %v1942_v21, %v1943_v20  ;;  %v1947_v21 = vrot.slane %v6859_v45, 1  ;;  %6013 = vmatmul.mubr.msk.bf16.gmra.mxu1 %vm7603_vm1, %v7610_v26  ;;  %v9311_v20 = vld [vmem:[#allocation19_spill] sm:$0xff]  ;;  %v9325_v59 = vld [vmem:[#allocation21_spill] sm:$0xff] }
 0x13e   : > { %vm7615_vm3 = vmpackc.low %vm1235_vm10, %vm9266_vm6  ;;  %v7623_v44 = vpack.c.bf16 %v1980_v31, %v1981_v60  ;;  %vm9312_vm10 = vcmp.lt.s32.totalorder %v6740_v61, 1  ;;  %v9318_v31 = vmov 0  ;;  %v6424_v60 = vld [vmem:[%s8992_s4 + $0x108] sm:$0xff]   ;;  %6095 = vmatpush3.bf16.msra.mxu1 %v6423_v30  ;;  %v1950_v30 = vrot.slane %v6923_v17, 1 }
 0x13f   : > { %v9308_v39 = vsel %vm7615_vm3, 4294967295, %v9307_v39  ;;  %v1319_v48 = vsel %vm9312_vm10, %v1316_v56, %v9311_v20  ;;  %vm9313_vm11 = vmmov %vm9312_vm10  ;;  %6096 = vmatprep.subr.bf16.mxu1 %v6424_v60  ;;  %v797_v17 = vadd.s32 184, %v6740_v61 }
 0x140   : > { %9309 = vst [vmem:[#allocation54_spill] sm:$0xff] %v9308_v39  ;;  %9310 = vst [vmem:[#allocation55_spill] sm:$0xff] %v7623_v44  ;;  %v1320_v28 = vsel %vm9313_vm11, %v1315_v62, %v1316_v56  ;;  %6016 = vmatprep.mubr.msk.bf16.mxu1 %vm7615_vm3, %v7623_v44  ;;  %v793_v56 = vadd.s32 152, %v6740_v61  ;;  %vm9323_vm11 = vcmp.lt.s32.totalorder %v6740_v61, 7  ;;  %v1952_v62 = vrot.slane %v7047_v16, 1 }
 0x141   : > { %vm9317_vm14 = vmmov %vm9312_vm10  ;;  %vm1237_vm10 = vcmp.lt.s32.totalorder %v915_v57, 15  ;;  %v7656_v20 = vpack.c.bf16 %v1319_v48, %v1320_v28  ;;  %v1978_v43 = vsel %vm9323_vm11, %v1945_v51, %v1946_v46  ;;  %v795_v57 = vadd.s32 168, %v6740_v61 }
 0x142   : > { %v2460_v45 = vsel %vm9317_vm14, %v9316_v14, %v9315_v0  ;;  %vm7644_vm1 = vmpackc.low %vm9266_vm6, %vm1220_vm2  ;;  %v9328_v48 = vmov 0  ;;  %v943_v28 = vand.u32 15, %v793_v56  ;;  %6097 = vmatpush3.bf16.msra.mxu1 %v6424_v60  ;;  %v799_v16 = vadd.s32 200, %v6740_v61  ;;  %v6428_v56 = vld [vmem:[%s8992_s4 + $0x170] sm:$0xff]  }
 0x143   : > { %v9319_v31 = vsel %vm7644_vm1, 4294967295, %v9318_v31  ;;  %vm9324_vm2 = vmmov %vm9323_vm11  ;;  %v5274_v0 = vpack.c.bf16 %v9325_v59, %v2460_v45  ;;  %5985 = vmatmul.mubr.msk.bf16.gmra.mxu0 %vm7644_vm1, %v7656_v20  ;;  %v1949_v45 = vrot.slane %v6979_v24, 1 }
 0x144   : > { %9320 = vst [vmem:[#allocation19_spill] sm:$0xff] %v9319_v31  ;;  %v1979_v54 = vsel %vm9324_vm2, %v1944_v10, %v1945_v51  ;;  %vm9326_vm14 = vmmov %vm9324_vm2  ;;  %v9345_v10 = vmov 0  ;;  %v9399_v31 = vld [vmem:[#allocation33_spill] sm:$0xff] }
 0x145   : > { %v1976_v14 = vsel %vm9326_vm14, %v1947_v21, %v1948_v7  ;;  %vm9327_vm3 = vmmov %vm9324_vm2  ;;  %6052 = vmatprep.mubr.msk.bf16.mxu0 %vm6935_vm7, %v5274_v0  ;;  %v7678_v51 = vpack.c.bf16 %v1978_v43, %v1979_v54  ;;  %v957_v43 = vand.u32 15, %v795_v57  ;;  %v1951_v54 = vrot.slane %v6946_v36, 1  ;;  %v9339_v0 = vld [vmem:[#allocation26_spill] sm:$0xff] }
 0x146   : > { %v1977_v39 = vsel %vm9327_vm3, %v1946_v46, %v1947_v21  ;;  %vm7672_vm15 = vmpackc.low %vm1237_vm10, %vm9266_vm6  ;;  %v9333_v21 = vmov 0  ;;  %v6425_v46 = vld [vmem:[%s8992_s4 + $0x100] sm:$0xff]  }
 0x147   : > { %v9329_v48 = vsel %vm7672_vm15, 4294967295, %v9328_v48  ;;  %9332 = vst [vmem:[#allocation17_spill] sm:$0xff] %v7678_v51  ;;  %vm7683_vm11 = vmpackc.low %vm7648_vm0, %vm9266_vm6  ;;  %v7692_v59 = vpack.c.bf16 %v1976_v14, %v1977_v39  ;;  %6017 = vmatmul.mubr.msk.bf16.gmra.mxu1 %vm7672_vm15, %v7678_v51  ;;  %vm1241_vm0 = vcmp.lt.s32.totalorder %v943_v28, 15  ;;  %6098 = vmatprep.subr.bf16.mxu1 %v6425_v46  ;;  %v7711_v39 = vld [vmem:[%s8992_s4 + $0x1b8] sm:$0xff]  }
 0x148   : > { %9330 = vst [vmem:[#allocation15_spill] sm:$0xff] %v9329_v48  ;;  %v9334_v21 = vsel %vm7683_vm11, 4294967295, %v9333_v21  ;;  %vm9336_vm3 = vmmov %vm9324_vm2  ;;  %6099 = vmatpush3.bf16.msra.mxu1 %v6425_v46  ;;  %v9343_v28 = vld [vmem:[#allocation30_spill] sm:$0xff]  ;;  %v985_v46 = vand.u32 15, %v799_v16 }
 0x149   : > { %9335 = vst [vmem:[#allocation14_spill] sm:$0xff] %v9334_v21  ;;  %6020 = vmatprep.mubr.msk.bf16.mxu1 %vm7683_vm11, %v7692_v59  ;;  %v1974_v24 = vsel %vm9336_vm3, %v1949_v45, %v1950_v30  ;;  %vm9337_vm10 = vmmov %vm9324_vm2  ;;  %vm1243_vm2 = vcmp.lt.s32.totalorder %v957_v43, 15  ;;  %v1973_v57 = vsel %vm9336_vm3, %v1950_v30, %v1951_v54  ;;  %v971_v30 = vand.u32 15, %v797_v17  ;;  %6180 = vmatprep.subr.bf16.mxu1 %v7711_v39  ;;  %v9416_v48 = vld [vmem:[#allocation30_spill] sm:$0xff] }
 0x14a   : > { %v1975_v36 = vsel %vm9337_vm10, %v1948_v7, %v1949_v45  ;;  %vm9338_vm14 = vmmov %vm9336_vm3  ;;  %v1956_v17 = vrot.slane %v7182_v50, 1  ;;  %v803_v50 = vadd.s32 232, %v6740_v61  ;;  %v9357_v45 = vmov 0 }
 0x14b   : > { %v1972_v60 = vsel %vm9338_vm14, %v1951_v54, %v1952_v62  ;;  %6053 = vmatmul.mubr.msk.bf16.vlgmr.msra.gmra.mxu0 %vm6954_vm8, %v9339_v0  ;;  %vm7724_vm10 = vmpackc.low %vm1241_vm0, %vm9266_vm6  ;;  %v7731_v43 = vpack.c.bf16 %v1974_v24, %v1975_v36  ;;  %v1954_v54 = vrot.slane %v7036_v18, 1  ;;  %v1953_v0 = vrot.slane %v7066_v5, 1  ;;  %v6429_v24 = vld [vmem:[%s8992_s4 + $0x168] sm:$0xff]  }
 0x14c   : > { %6056 = vmatprep.mubr.msk.bf16.mxu0 %vm6973_vm9, %v9343_v28  ;;  %vm7734_vm14 = vmpackc.low %vm1243_vm2, %vm9266_vm6  ;;  %6133 = vmatpush3.bf16.msra.mxu0 %v7359_v53  ;;  %v7741_v7 = vpack.c.bf16 %v1972_v60, %v1973_v57  ;;  %v1955_v36 = vrot.slane %v7064_v1, 1  ;;  %vm1245_vm0 = vcmp.lt.s32.totalorder %v971_v30, 15  ;;  %v801_v5 = vadd.s32 216, %v6740_v61  ;;  %v6431_v53 = vld [vmem:[%s8992_s4 + $0x160] sm:$0xff]   ;;  %v9351_v60 = vld [vmem:[#allocation32_spill] sm:$0xff] }
 0x14d   : > { %v9346_v10 = vsel %vm7734_vm14, 4294967295, %v9345_v10  ;;  %6134 = vmatprep.subr.bf16.mxu0 %v6428_v56  ;;  %vm9347_vm2 = vmmov %vm9336_vm3  ;;  %vm1247_vm9 = vcmp.lt.s32.totalorder %v985_v46, 15  ;;  %v9355_v30 = vld [vmem:[#allocation36_spill] sm:$0xff]  ;;  %v1957_v57 = vrot.slane %v7184_v13, 1  ;;  %v1013_v28 = vand.u32 15, %v803_v50 }
 0x14e   : > { %v1970_v18 = vsel %vm9347_vm2, %v1953_v0, %v1954_v54  ;;  %vm9348_vm3 = vmmov %vm9347_vm2 }
 0x14f   : > { %6021 = vmatmul.mubr.msk.bf16.gmra.mxu1 %vm7724_vm10, %v7731_v43  ;;  %v1971_v1 = vsel %vm9348_vm3, %v1952_v62, %v1953_v0  ;;  %vm9349_vm8 = vmmov %vm9347_vm2  ;;  %v9356_v0 = vld [vmem:[#allocation31_spill] sm:$0xff] }
 0x150   : > { %6024 = vmatprep.mubr.msk.bf16.mxu1 %vm7734_vm14, %v7741_v7  ;;  %6135 = vmatpush3.bf16.msra.mxu0 %v6428_v56  ;;  %v1968_v16 = vsel %vm9349_vm8, %v1955_v36, %v1956_v17  ;;  %vm9350_vm14 = vmmov %vm9347_vm2  ;;  %v7779_v46 = vpack.c.bf16 %v1970_v18, %v1971_v1  ;;  %v6432_v18 = vld [vmem:[%s8992_s4 + $0x158] sm:$0xff]   ;;  %v1959_v1 = vrot.slane %v7150_v33, 1  ;;  %v6434_v33 = vld [vmem:[%s8992_s4 + $0x150] sm:$0xff]  }
 0x151   : > { %6136 = vmatprep.subr.bf16.mxu0 %v6429_v24  ;;  %v1969_v56 = vsel %vm9350_vm14, %v1954_v54, %v1955_v36  ;;  %vm7772_vm2 = vmpackc.low %vm1245_vm0, %vm9266_vm6  ;;  %v999_v54 = vand.u32 15, %v801_v5  ;;  %v1958_v36 = vrot.slane %v7148_v35, 1  ;;  %v805_v35 = vadd.s32 248, %v6740_v61  ;;  %v6443_v61 = vld [vmem:[%s8992_s4 + $0x238] sm:$0xff]  }
 0x152   : > { %vm7782_vm8 = vmpackc.low %vm1247_vm9, %vm9266_vm6  ;;  %v9362_v5 = vrot.slane %v7126_v9, 1 }
 0x153   : > { %6057 = vmatmul.mubr.msk.bf16.gmra.mxu0 %vm7060_vm12, %v9351_v60  ;;  %v9358_v45 = vsel %vm7782_vm8, 4294967295, %v9357_v45  ;;  %v7788_v60 = vpack.c.bf16 %v1968_v16, %v1969_v56  ;;  %vm1249_vm9 = vcmp.lt.s32.totalorder %v999_v54, 15  ;;  %vm9360_vm14 = vmmov %vm9348_vm3  ;;  %v9365_v16 = vld [vmem:[#allocation38_spill] sm:$0xff]  ;;  %v1027_v54 = vand.u32 15, %v805_v35 }
 0x154   : > { %6060 = vmatprep.mubr.msk.bf16.mxu0 %vm7077_vm13, %v9355_v30  ;;  %9359 = vst [vmem:[#allocation21_spill] sm:$0xff] %v9358_v45  ;;  %6137 = vmatpush3.bf16.msra.mxu0 %v6429_v24  ;;  %v1966_v13 = vsel %vm9360_vm14, %v1957_v57, %v1958_v36  ;;  %vm9361_vm0 = vmmov %vm9348_vm3  ;;  %vm1251_vm3 = vcmp.lt.s32.totalorder %v1013_v28, 15  ;;  %v9367_v28 = vmov 0 }
 0x155   : > { %6138 = vmatprep.subr.bf16.mxu0 %v6431_v53  ;;  %v1967_v24 = vsel %vm9361_vm0, %v1956_v17, %v1957_v57  ;;  %vm9363_vm13 = vmmov %vm9361_vm0  ;;  %v9371_v57 = vmov 0 }
 0x156   : > { %v1964_v50 = vsel %vm9363_vm13, %v1959_v1, %v9362_v5  ;;  %vm9364_vm12 = vmmov %vm9361_vm0  ;;  %v7825_v9 = vpack.c.bf16 %v1966_v13, %v1967_v24  ;;  %v6442_v13 = vld [vmem:[%s8992_s4 + $0x1f8] sm:$0xff]   ;;  %v9378_v24 = vpack.c.bf16 %v7221_v41, %v7214_v12  ;;  %v6430_v5 = vld [vmem:[%s8992_s4 + $0x1b0] sm:$0xff]  }
 0x157   : > { %6025 = vmatmul.mubr.msk.bf16.gmra.mxu1 %vm7772_vm2, %v7779_v46  ;;  %vm7818_vm14 = vmpackc.low %vm1249_vm9, %vm9266_vm6  ;;  %vm9374_vm9 = vnez %v9219_v15  ;;  %v9382_v41 = vld [vmem:[#allocation4_spill] sm:$0xff]  ;;  %v9383_v12 = vld [vmem:[#allocation6_spill] sm:$0xff] }
 0x158   : > { %6028 = vmatprep.mubr.msk.bf16.mxu1 %vm7782_vm8, %v7788_v60  ;;  %6139 = vmatpush3.bf16.msra.mxu0 %v6431_v53  ;;  %v1965_v53 = vsel %vm9364_vm12, %v1958_v36, %v1959_v1  ;;  %v9368_v28 = vsel %vm7818_vm14, 4294967295, %v9367_v28  ;;  %vm7828_vm13 = vmpackc.low %vm1251_vm3, %vm9266_vm6  ;;  %v6435_v1 = vld [vmem:[%s8992_s4 + $0x148] sm:$0xff]   ;;  %vm1253_vm12 = vcmp.lt.s32.totalorder %v1027_v54, 15  ;;  %vm9377_vm3 = vnez %v9223_v40  ;;  %v9387_v54 = vld [vmem:[#allocation11_spill] sm:$0xff] }
 0x159   : > { %6140 = vmatprep.subr.bf16.mxu0 %v6432_v18  ;;  %9369 = vst [vmem:[#allocation26_spill] sm:$0xff] %v9368_v28  ;;  %v9372_v57 = vsel %vm7828_vm13, 4294967295, %v9371_v57  ;;  %v7832_v36 = vpack.c.bf16 %v1964_v50, %v1965_v53  ;;  %vm7850_vm0 = vmpackc.low %vm1253_vm12, %vm9266_vm6  ;;  %vm9380_vm6 = vnez %v9240_v32  ;;  %vm9381_vm12 = vnez %v9246_v42  ;;  %v6433_v50 = vld [vmem:[%s8992_s4 + $0x1a8] sm:$0xff]   ;;  %v9386_v53 = vld [vmem:[#allocation10_spill] sm:$0xff] }
 0x15a   : > { %9373 = vst [vmem:[#allocation36_spill] sm:$0xff] %v9372_v57  ;;  %v9426_v57 = vld [vmem:[#allocation45_spill] sm:$0xff]  ;;  %v9427_v28 = vld [vmem:[#allocation43_spill] sm:$0xff] }
 0x15b   : > { %6061 = vmatmul.mubr.msk.bf16.gmra.mxu0 %vm7160_vm4, %v9365_v16 }
 0x15c   : > { %6064 = vmatprep.mubr.msk.bf16.mxu0 %vm7174_vm5, %v7277_v49  ;;  %6141 = vmatpush3.bf16.msra.mxu0 %v6432_v18  ;;  %v6437_v18 = vld [vmem:[%s8992_s4 + $0x140] sm:$0xff]  }
 0x15d   : > { %6142 = vmatprep.subr.bf16.mxu0 %v6434_v33 }
 0x15f   : > { %6029 = vmatmul.mubr.msk.bf16.gmra.mxu1 %vm7818_vm14, %v7825_v9 }
 0x160   : > { %6032 = vmatprep.mubr.msk.bf16.mxu1 %vm7828_vm13, %v7832_v36  ;;  %6143 = vmatpush3.bf16.msra.mxu0 %v6434_v33  ;;  %v9379_v33 = vld [vmem:[#allocation3_spill] sm:$0xff] }
 0x161   : > { %6144 = vmatprep.subr.bf16.mxu0 %v6435_v1 }
 0x163   : > { %6065 = vmatmul.mubr.msk.bf16.gmra.mxu0 %vm9374_vm9, %v7296_v3 }
 0x164   : > { %6068 = vmatprep.mubr.msk.bf16.mxu0 %vm9377_vm3, %v7389_v34  ;;  %6145 = vmatpush3.bf16.msra.mxu0 %v6435_v1  ;;  %v6438_v1 = vld [vmem:[%s8992_s4 + $0x198] sm:$0xff]  }
 0x165   : > { %6146 = vmatprep.subr.bf16.mxu0 %v6437_v18 }
 0x167   : > { %6033 = vmatmul.mubr.msk.bf16.gmra.mxu1 %vm7850_vm0, %v9378_v24  ;;  %v9390_v24 = vld [vmem:[#allocation12_spill] sm:$0xff] }
 0x168   : > { %6100 = vmatprep.mubr.bf16.mxu1 %v9379_v33  ;;  %6147 = vmatpush3.bf16.msra.mxu0 %v6437_v18  ;;  %v6439_v18 = vld [vmem:[%s8992_s4 + $0x190] sm:$0xff]   ;;  %v9391_v33 = vld [vmem:[#allocation16_spill] sm:$0xff] }
 0x169   : > { %6228 = vmatprep.subr.bf16.mxu0 %v6442_v13 }
 0x16b   : > { %6069 = vmatmul.mubr.msk.bf16.gmra.mxu0 %vm9380_vm6, %v7400_v63  ;;  %vm9384_vm6 = vnez %v9268_v47 }
 0x16c   : > { %6072 = vmatprep.mubr.msk.bf16.mxu0 %vm9381_vm12, %v7483_v23  ;;  %vm9385_vm12 = vnez %v9272_v11 }
 0x16f   : > { %6101 = vmatmul.mubr.bf16.vlgmr.msra.gmra.mxu1 %v9382_v41 }
 0x170   : > { %6181 = vmatpush3.bf16.msra.mxu1 %v7711_v39  ;;  %6104 = vmatprep.mubr.bf16.mxu1 %v9383_v12  ;;  %v6436_v39 = vld [vmem:[%s8992_s4 + $0x1a0] sm:$0xff]  }
 0x171   : > { %6182 = vmatprep.subr.bf16.mxu1 %v6430_v5 }
 0x173   : > { %6073 = vmatmul.mubr.msk.bf16.gmra.mxu0 %vm9384_vm6, %v7501_v19  ;;  %vm9388_vm6 = vnez %v9295_v25 }
 0x174   : > { %6183 = vmatpush3.bf16.msra.mxu1 %v6430_v5  ;;  %6076 = vmatprep.mubr.msk.bf16.mxu0 %vm9385_vm12, %v7577_v22  ;;  %vm9389_vm12 = vnez %v9297_v4  ;;  %v6440_v5 = vld [vmem:[%s8992_s4 + $0x188] sm:$0xff]  }
 0x175   : > { %6184 = vmatprep.subr.bf16.mxu1 %v6433_v50 }
 0x177   : > { %6105 = vmatmul.mubr.bf16.gmra.mxu1 %v9386_v53 }
 0x178   : > { %6108 = vmatprep.mubr.bf16.mxu1 %v9387_v54  ;;  %6185 = vmatpush3.bf16.msra.mxu1 %v6433_v50  ;;  %v6441_v50 = vld [vmem:[%s8992_s4 + $0x180] sm:$0xff]  }
 0x179   : > { %6186 = vmatprep.subr.bf16.mxu1 %v6436_v39 }
 0x17b   : > { %6077 = vmatmul.mubr.msk.bf16.gmra.mxu0 %vm9388_vm6, %v7593_v27 }
 0x17c   : > { %6187 = vmatpush3.bf16.msra.mxu1 %v6436_v39  ;;  %6080 = vmatprep.mubr.msk.bf16.mxu0 %vm9389_vm12, %v7656_v20  ;;  %vm9392_vm12 = vnez %v9227_v52  ;;  %v9393_v39 = vld [vmem:[#allocation20_spill] sm:$0xff] }
 0x17d   : > { %6188 = vmatprep.subr.bf16.mxu1 %v6438_v1  ;;  %v9398_v52 = vld [vmem:[#allocation28_spill] sm:$0xff] }
 0x17f   : > { %6109 = vmatmul.mubr.bf16.gmra.mxu1 %v9390_v24 }
 0x180   : > { %6112 = vmatprep.mubr.bf16.mxu1 %v9391_v33  ;;  %6189 = vmatpush3.bf16.msra.mxu1 %v6438_v1  ;;  %v9394_v1 = vld [vmem:[#allocation27_spill] sm:$0xff] }
 0x181   : > { %6190 = vmatprep.subr.bf16.mxu1 %v6439_v18 }
 0x183   : > { %6081 = vmatmul.mubr.msk.bf16.gmra.mxu0 %vm7644_vm1, %v7236_v8 }
 0x184   : > { %6191 = vmatpush3.bf16.msra.mxu1 %v6439_v18  ;;  %6148 = vmatprep.mubr.msk.bf16.mxu0 %vm9392_vm12, %v7420_v29  ;;  %v6444_v18 = vld [vmem:[%s8992_s4 + $0x1f0] sm:$0xff]   ;;  %vm9395_vm12 = vnez %v9249_v37  ;;  %v9396_v29 = vld [vmem:[#allocation51_spill] sm:$0xff] }
 0x185   : > { %6192 = vmatprep.subr.bf16.mxu1 %v6440_v5  ;;  %vm9397_vm1 = vnez %v9396_v29  ;;  %v6448_v29 = vld [vmem:[%s8992_s4 + $0x1d8] sm:$0xff]   ;;  %v9404_v37 = vld [vmem:[#allocation39_spill] sm:$0xff] }
 0x187   : > { %6113 = vmatmul.mubr.bf16.gmra.mxu1 %v9393_v39 }
 0x188   : > { %6116 = vmatprep.mubr.bf16.mxu1 %v9394_v1  ;;  %6193 = vmatpush3.bf16.msra.mxu1 %v6440_v5  ;;  %v6445_v5 = vld [vmem:[%s8992_s4 + $0x1e8] sm:$0xff]  }
 0x189   : > { %6194 = vmatprep.subr.bf16.mxu1 %v6441_v50 }
 0x18b   : > { %6149 = vmatmul.mubr.msk.bf16.vlgmr.msra.gmra.mxu0 %vm9395_vm12, %v7440_v38 }
 0x18c   : > { %6195 = vmatpush3.bf16.msra.mxu1 %v6441_v50  ;;  %6152 = vmatprep.mubr.msk.bf16.mxu0 %vm9397_vm1, %v7522_v2  ;;  %v6447_v50 = vld [vmem:[%s8992_s4 + $0x1e0] sm:$0xff]   ;;  %vm9400_vm1 = vnez %v9279_v58  ;;  %v6450_v58 = vld [vmem:[%s8992_s4 + $0x1d0] sm:$0xff]  }
 0x18d   : > { %6229 = vmatpush3.bf16.msra.mxu0 %v6442_v13  ;;  %6276 = vmatprep.subr.bf16.mxu1 %v6443_v61  ;;  %v9401_v13 = vld [vmem:[#allocation13_spill] sm:$0xff] }
 0x18e   : > { %6230 = vmatprep.subr.bf16.mxu0 %v6444_v18  ;;  %vm9402_vm12 = vnez %v9401_v13  ;;  %v6451_v13 = vld [vmem:[%s8992_s4 + $0x1c8] sm:$0xff]  }
 0x18f   : > { %6117 = vmatmul.mubr.bf16.gmra.mxu1 %v9398_v52 }
 0x190   : > { %6120 = vmatprep.mubr.bf16.mxu1 %v9399_v31 }
 0x191   : > { %6231 = vmatpush3.bf16.msra.mxu0 %v6444_v18  ;;  %v9403_v18 = vld [vmem:[#allocation34_spill] sm:$0xff] }
 0x192   : > { %6232 = vmatprep.subr.bf16.mxu0 %v6445_v5 }
 0x193   : > { %6153 = vmatmul.mubr.msk.bf16.gmra.mxu0 %vm9400_vm1, %v7538_v6  ;;  %vm9405_vm1 = vnez %v9303_v55  ;;  %v6453_v55 = vld [vmem:[%s8992_s4 + $0x1c0] sm:$0xff]  }
 0x194   : > { %6156 = vmatprep.mubr.msk.bf16.mxu0 %vm9402_vm12, %v7610_v26  ;;  %v9409_v26 = vld [vmem:[#allocation47_spill] sm:$0xff] }
 0x195   : > { %6233 = vmatpush3.bf16.msra.mxu0 %v6445_v5  ;;  %v9406_v5 = vld [vmem:[#allocation54_spill] sm:$0xff] }
 0x196   : > { %6234 = vmatprep.subr.bf16.mxu0 %v6447_v50  ;;  %vm9407_vm12 = vnez %v9406_v5 }
 0x197   : > { %6121 = vmatmul.mubr.bf16.gmra.mxu1 %v9403_v18 }
 0x198   : > { %6124 = vmatprep.mubr.bf16.mxu1 %v9404_v37 }
 0x199   : > { %6235 = vmatpush3.bf16.msra.mxu0 %v6447_v50  ;;  %v9408_v50 = vld [vmem:[#allocation40_spill] sm:$0xff] }
 0x19a   : > { %6236 = vmatprep.subr.bf16.mxu0 %v6448_v29 }
 0x19b   : > { %6157 = vmatmul.mubr.msk.bf16.gmra.mxu0 %vm9405_vm1, %v7623_v44  ;;  %v6449_v44 = vld [vmem:[%s8992_s4 + $0x228] sm:$0xff]  }
 0x19c   : > { %6160 = vmatprep.mubr.msk.bf16.mxu0 %vm9407_vm12, %v7678_v51  ;;  %v9411_v51 = vld [vmem:[#allocation24_spill] sm:$0xff] }
 0x19d   : > { %6237 = vmatpush3.bf16.msra.mxu0 %v6448_v29  ;;  %v9410_v29 = vld [vmem:[#allocation41_spill] sm:$0xff] }
 0x19e   : > { %6238 = vmatprep.subr.bf16.mxu0 %v6450_v58 }
 0x19f   : > { %6125 = vmatmul.mubr.bf16.gmra.mxu1 %v9408_v50 }
 0x1a0   : > { %6128 = vmatprep.mubr.bf16.mxu1 %v9409_v26 }
 0x1a1   : > { %6239 = vmatpush3.bf16.msra.mxu0 %v6450_v58  ;;  %v9412_v58 = vld [vmem:[#allocation42_spill] sm:$0xff] }
 0x1a2   : > { %6240 = vmatprep.subr.bf16.mxu0 %v6451_v13  ;;  %v9413_v26 = vpack.c.bf16 %v9411_v51, %v9412_v58  ;;  %v9417_v51 = vld [vmem:[#allocation23_spill] sm:$0xff] }
 0x1a3   : > { %6161 = vmatmul.mubr.msk.bf16.gmra.mxu0 %vm7672_vm15, %v7692_v59  ;;  %v5910_v5 = vpop.f32.mrf.mxu1  ;;  %vm9418_vm15 = vnez %v9417_v51  ;;  %v9422_v51 = vld [vmem:[#allocation29_spill] sm:$0xff] }
 0x1a4   : > { %6164 = vmatprep.mubr.msk.bf16.mxu0 %vm7683_vm11, %v7731_v43  ;;  %vm9415_vm11 = vnez %v9346_v10 }
 0x1a5   : > { %6241 = vmatpush3.bf16.msra.mxu0 %v6451_v13  ;;  %v1594_v50 = vpop.f32.mrf.mxu1  ;;  %v6446_v13 = vld [vmem:[%s8992_s4 + $0x230] sm:$0xff]  }
 0x1a6   : > { %6242 = vmatprep.subr.bf16.mxu0 %v6453_v55 }
 0x1a7   : > { %6129 = vmatmul.mubr.bf16.gmra.mxu1 %v9410_v29  ;;  %v5911_v21 = vpop.f32.mrf.mxu1 }
 0x1a8   : > { %6196 = vmatprep.mubr.msk.bf16.mxu1 %vm6935_vm7, %v9413_v26  ;;  %v9420_v26 = vld [vmem:[#allocation25_spill] sm:$0xff] }
 0x1a9   : > { %6243 = vmatpush3.bf16.msra.mxu0 %v6453_v55  ;;  %v9419_v55 = vld [vmem:[#allocation32_spill] sm:$0xff]  ;;  %vm9421_vm7 = vnez %v9420_v26  ;;  %v1597_v58 = vpop.f32.mrf.mxu1 }
 0x1ab   : > { %6165 = vmatmul.mubr.msk.bf16.gmra.mxu0 %vm7724_vm10, %v7741_v7 }
 0x1ac   : > { %6168 = vmatprep.mubr.msk.bf16.mxu0 %vm9415_vm11, %v7779_v46 }
 0x1af   : > { %6197 = vmatmul.mubr.msk.bf16.vlgmr.msra.gmra.mxu1 %vm9418_vm15, %v9416_v48  ;;  %v5914_v48 = vpop.f32.mrf.mxu1  ;;  %vm9423_vm15 = vnez %v9422_v51  ;;  %v9425_v51 = vld [vmem:[#allocation44_spill] sm:$0xff] }
 0x1b0   : > { %6277 = vmatpush3.bf16.msra.mxu1 %v6443_v61  ;;  %6200 = vmatprep.mubr.msk.bf16.mxu1 %vm9421_vm7, %v9419_v55  ;;  %v6452_v61 = vld [vmem:[%s8992_s4 + $0x220] sm:$0xff]   ;;  %vm9424_vm7 = vnez %v9356_v0 }
 0x1b1   : > { %6278 = vmatprep.subr.bf16.mxu1 %v6446_v13  ;;  %v1610_v55 = vpop.f32.mrf.mxu1 }
 0x1b3   : > { %6169 = vmatmul.mubr.msk.bf16.gmra.mxu0 %vm7772_vm2, %v7788_v60  ;;  %v5915_v26 = vpop.f32.mrf.mxu1 }
 0x1b4   : > { %6279 = vmatpush3.bf16.msra.mxu1 %v6446_v13  ;;  %6172 = vmatprep.mubr.msk.bf16.mxu0 %vm7782_vm8, %v7825_v9  ;;  %v6454_v13 = vld [vmem:[%s8992_s4 + $0x218] sm:$0xff]  }
 0x1b5   : > { %6280 = vmatprep.subr.bf16.mxu1 %v6449_v44  ;;  %v1613_v45 = vpop.f32.mrf.mxu1 }
 0x1b7   : > { %6201 = vmatmul.mubr.msk.bf16.gmra.mxu1 %vm9423_vm15, %v9355_v30  ;;  %v6455_v30 = vld [vmem:[%s8992_s4 + $0x210] sm:$0xff]   ;;  %v5918_v0 = vpop.f32.mrf.mxu1  ;;  %vm9433_vm15 = vnez %v9297_v4  ;;  %v9434_v4 = vld [vmem:[#allocation18_spill] sm:$0xff] }
 0x1b8   : > { %6204 = vmatprep.mubr.msk.bf16.mxu1 %vm9424_vm7, %v9365_v16  ;;  %6281 = vmatpush3.bf16.msra.mxu1 %v6449_v44  ;;  %v6456_v44 = vld [vmem:[%s8992_s4 + $0x208] sm:$0xff]  }
 0x1b9   : > { %6282 = vmatprep.subr.bf16.mxu1 %v6452_v61  ;;  %v1626_v16 = vpop.f32.mrf.mxu1 }
 0x1bb   : > { %6173 = vmatmul.mubr.msk.bf16.gmra.mxu0 %vm7818_vm14, %v7832_v36 }
 0x1bc   : > { %6283 = vmatpush3.bf16.msra.mxu1 %v6452_v61  ;;  %6176 = vmatprep.mubr.msk.bf16.mxu0 %vm7828_vm13, %v9425_v51  ;;  %v5919_v61 = vpop.f32.mrf.mxu1  ;;  %v9428_v51 = vpack.c.bf16 %v9426_v57, %v9427_v28 }
 0x1bd   : > { %6284 = vmatprep.subr.bf16.mxu1 %v6454_v13 }
 0x1bf   : > { %6205 = vmatmul.mubr.msk.bf16.gmra.mxu1 %vm7160_vm4, %v7277_v49  ;;  %v1629_v49 = vpop.f32.mrf.mxu1  ;;  %vm9429_vm4 = vnez %v9240_v32 }
 0x1c0   : > { %6208 = vmatprep.mubr.msk.bf16.mxu1 %vm7174_vm5, %v7296_v3  ;;  %6285 = vmatpush3.bf16.msra.mxu1 %v6454_v13  ;;  %v6457_v3 = vld [vmem:[%s8992_s4 + $0x200] sm:$0xff]   ;;  %vm9430_vm5 = vnez %v9246_v42 }
 0x1c1   : > { %6286 = vmatprep.subr.bf16.mxu1 %v6455_v30  ;;  %v5922_v56 = vpop.f32.mrf.mxu1 }
 0x1c3   : > { %6177 = vmatmul.mubr.msk.bf16.gmra.mxu0 %vm7850_vm0, %v9428_v51  ;;  %v1642_v17 = vpop.f32.mrf.mxu1 }
 0x1c4   : > { %6287 = vmatpush3.bf16.msra.mxu1 %v6455_v30  ;;  %6244 = vmatprep.mubr.bf16.mxu0 %v9382_v41  ;;  %v5958_v41 = vpop.f32.mrf.mxu0 }
 0x1c5   : > { %6288 = vmatprep.subr.bf16.mxu1 %v6456_v44  ;;  %v5923_v57 = vpop.f32.mrf.mxu1  ;;  %v8050_v13 = vadd.f32 %v5958_v41, %v5910_v5 }
 0x1c6   : > { %v1803_v30 = vpop.f32.mrf.mxu0 }
 0x1c7   : > { %6209 = vmatmul.mubr.msk.bf16.gmra.mxu1 %vm9374_vm9, %v7389_v34  ;;  %v1645_v51 = vpop.f32.mrf.mxu1  ;;  %v8053_v15 = vadd.f32 %v1803_v30, %v1594_v50  ;;  %vm9431_vm9 = vnez %v9268_v47 }
 0x1c8   : > { %6212 = vmatprep.mubr.msk.bf16.mxu1 %vm9377_vm3, %v7400_v63  ;;  %6289 = vmatpush3.bf16.msra.mxu1 %v6456_v44  ;;  %v5959_v63 = vpop.f32.mrf.mxu0  ;;  %vm9432_vm3 = vnez %v9272_v11 }
 0x1c9   : > { %6290 = vmatprep.subr.bf16.mxu1 %v6457_v3  ;;  %v5926_v34 = vpop.f32.mrf.mxu1  ;;  %v8061_v40 = vadd.f32 %v5959_v63, %v5911_v21 }
 0x1ca   : > { %v1806_v5 = vpop.f32.mrf.mxu0 }
 0x1cb   : > { %6245 = vmatmul.mubr.bf16.vlgmr.msra.gmra.mxu0 %v9383_v12  ;;  %v1658_v12 = vpop.f32.mrf.mxu1  ;;  %v8063_v44 = vadd.f32 %v1806_v5, %v1597_v58 }
 0x1cc   : > { %6291 = vmatpush3.bf16.msra.mxu1 %v6457_v3  ;;  %6248 = vmatprep.mubr.bf16.mxu0 %v9386_v53  ;;  %v5962_v3 = vpop.f32.mrf.mxu0 }
 0x1cd   : > { %v5927_v53 = vpop.f32.mrf.mxu1  ;;  %v8066_v50 = vadd.f32 %v5962_v3, %v5914_v48 }
 0x1cf   : > { %6213 = vmatmul.mubr.msk.bf16.gmra.mxu1 %vm9429_vm4, %v7483_v23  ;;  %v8069_v32 = vpop.f32.mrf.mxu1  ;;  %v1819_v23 = vpop.f32.mrf.mxu0 }
 0x1d0   : > { %6216 = vmatprep.mubr.msk.bf16.mxu1 %vm9430_vm5, %v7501_v19  ;;  %v8071_v41 = vadd.f32 %v1819_v23, %v1610_v55 }
 0x1d1   : > { %v5930_v42 = vpop.f32.mrf.mxu1  ;;  %v5963_v19 = vpop.f32.mrf.mxu0 }
 0x1d2   : > { %v8079_v21 = vadd.f32 %v5963_v19, %v5915_v26 }
 0x1d3   : > { %6249 = vmatmul.mubr.bf16.gmra.mxu0 %v9387_v54  ;;  %v1674_v54 = vpop.f32.mrf.mxu1  ;;  %v1822_v58 = vpop.f32.mrf.mxu0 }
 0x1d4   : > { %6252 = vmatprep.mubr.bf16.mxu0 %v9390_v24  ;;  %v8081_v24 = vadd.f32 %v1822_v58, %v1613_v45 }
 0x1d5   : > { %v8083_v48 = vpop.f32.mrf.mxu1  ;;  %v5966_v55 = vpop.f32.mrf.mxu0 }
 0x1d6   : > { %v8086_v30 = vadd.f32 %v5966_v55, %v5918_v0 }
 0x1d7   : > { %6217 = vmatmul.mubr.msk.bf16.gmra.mxu1 %vm9431_vm9, %v7577_v22  ;;  %v8089_v47 = vpop.f32.mrf.mxu1  ;;  %v1835_v22 = vpop.f32.mrf.mxu0 }
 0x1d8   : > { %6220 = vmatprep.mubr.msk.bf16.mxu1 %vm9432_vm3, %v7593_v27  ;;  %v8091_v11 = vadd.f32 %v1835_v22, %v1626_v16 }
 0x1d9   : > { %v8093_v27 = vpop.f32.mrf.mxu1  ;;  %v5967_v45 = vpop.f32.mrf.mxu0 }
 0x1db   : > { %6253 = vmatmul.mubr.bf16.gmra.mxu0 %v9391_v33  ;;  %v8101_v33 = vadd.f32 %v5967_v45, %v5919_v61  ;;  %v8103_v26 = vpop.f32.mrf.mxu1 }
 0x1dc   : > { %6256 = vmatprep.mubr.bf16.mxu0 %v9393_v39  ;;  %v1838_v39 = vpop.f32.mrf.mxu0 }
 0x1dd   : > { %v8105_v0 = vadd.f32 %v1838_v39, %v1629_v49  ;;  %v8107_v16 = vpop.f32.mrf.mxu1  ;;  %v9436_v49 = vld [vmem:[#allocation19_spill] sm:$0xff] }
 0x1de   : > { %v5970_v63 = vpop.f32.mrf.mxu0 }
 0x1df   : > { %6221 = vmatmul.mubr.msk.bf16.gmra.mxu1 %vm9388_vm6, %v7656_v20  ;;  %v8110_v5 = vadd.f32 %v5970_v63, %v5922_v56  ;;  %v8113_v25 = vpop.f32.mrf.mxu1  ;;  %vm9437_vm6 = vnez %v9436_v49 }
 0x1e0   : > { %6224 = vmatprep.mubr.msk.bf16.mxu1 %vm9433_vm15, %v7236_v8  ;;  %v9435_v8 = vld [vmem:[#allocation9_spill] sm:$0xff]  ;;  %v1851_v61 = vpop.f32.mrf.mxu0 }
 0x1e1   : > { %v5487_v20 = vpack.c.bf16 %v9435_v8, %v9434_v4  ;;  %v8117_v3 = vadd.f32 %v1851_v61, %v1642_v17  ;;  %v8119_v23 = vpop.f32.mrf.mxu1  ;;  %v9440_v4 = vld [vmem:[#allocation50_spill] sm:$0xff] }
 0x1e2   : > { %v5971_v19 = vpop.f32.mrf.mxu0  ;;  %vm9441_vm4 = vnez %v9440_v4 }
 0x1e3   : > { %6257 = vmatmul.mubr.bf16.gmra.mxu0 %v9394_v1  ;;  %v9438_v1 = vld [vmem:[#allocation48_spill] sm:$0xff]  ;;  %v8126_v56 = vadd.f32 %v5971_v19, %v5923_v57 }
 0x1e4   : > { %6260 = vmatprep.mubr.bf16.mxu0 %v9398_v52  ;;  %vm9439_vm7 = vnez %v9438_v1  ;;  %v8128_v52 = vpop.f32.mrf.mxu1  ;;  %v1854_v58 = vpop.f32.mrf.mxu0  ;;  %v9444_v19 = vld [vmem:[#allocation40_spill] sm:$0xff] }
 0x1e5   : > { %v8130_v55 = vadd.f32 %v1854_v58, %v1645_v51 }
 0x1e6   : > { %v8132_v22 = vpop.f32.mrf.mxu1  ;;  %v5974_v17 = vpop.f32.mrf.mxu0 }
 0x1e7   : > { %6225 = vmatmul.mubr.msk.bf16.gmra.mxu1 %vm9437_vm6, %v5487_v20  ;;  %v8135_v45 = vadd.f32 %v5974_v17, %v5926_v34  ;;  %v9445_v17 = vld [vmem:[#allocation53_spill] sm:$0xff] }
 0x1e8   : > { %6292 = vmatprep.mubr.msk.bf16.mxu1 %vm9439_vm7, %v7440_v38  ;;  %v8138_v39 = vpop.f32.mrf.mxu1  ;;  %v1867_v63 = vpop.f32.mrf.mxu0 }
 0x1e9   : > { %v8140_v38 = vadd.f32 %v1867_v63, %v1658_v12  ;;  %v9446_v63 = vld [vmem:[#allocation8_spill] sm:$0xff] }
 0x1ea   : > { %v6006_v57 = vpop.f32.mrf.mxu1  ;;  %v5975_v51 = vpop.f32.mrf.mxu0  ;;  %vm9447_vm9 = vnez %v9446_v63 }
 0x1eb   : > { %6261 = vmatmul.mubr.bf16.gmra.mxu0 %v9399_v31  ;;  %v8146_v8 = vadd.f32 %v6006_v57, %v8050_v13  ;;  %v9442_v31 = vld [vmem:[#allocation51_spill] sm:$0xff]  ;;  %v8151_v34 = vadd.f32 %v5975_v51, %v5927_v53 }
 0x1ec   : > { %6264 = vmatprep.mubr.bf16.mxu0 %v9403_v18  ;;  %vm9443_vm5 = vnez %v9442_v31  ;;  %v2206_v18 = vpop.f32.mrf.mxu1  ;;  %v8153_v20 = vpop.f32.mrf.mxu0 }
 0x1ed   : > { %v8156_v12 = vadd.f32 %v2206_v18, %v8053_v15 }
 0x1ee   : > { %v6007_v61 = vpop.f32.mrf.mxu1  ;;  %v5978_v49 = vpop.f32.mrf.mxu0 }
 0x1ef   : > { %6293 = vmatmul.mubr.msk.bf16.vlgmr.msra.gmra.mxu1 %vm9441_vm4, %v7522_v2  ;;  %v8159_v2 = vadd.f32 %v6007_v61, %v8061_v40  ;;  %v8162_v13 = vadd.f32 %v5978_v49, %v5930_v42  ;;  %v9449_v42 = vld [vmem:[#allocation13_spill] sm:$0xff] }
 0x1f0   : > { %6296 = vmatprep.mubr.msk.bf16.mxu1 %vm9443_vm5, %v7538_v6  ;;  %v2209_v6 = vpop.f32.mrf.mxu1  ;;  %v1883_v53 = vpop.f32.mrf.mxu0  ;;  %vm9450_vm3 = vnez %v9449_v42 }
 0x1f1   : > { %v8166_v1 = vadd.f32 %v2209_v6, %v8063_v44  ;;  %v8168_v58 = vadd.f32 %v1883_v53, %v1674_v54 }
 0x1f2   : > { %v5979_v40 = vpop.f32.mrf.mxu0 }
 0x1f3   : > { %6265 = vmatmul.mubr.bf16.gmra.mxu0 %v9404_v37  ;;  %v6010_v15 = vpop.f32.mrf.mxu1  ;;  %v9448_v37 = vld [vmem:[#allocation55_spill] sm:$0xff]  ;;  %v8180_v4 = vadd.f32 %v5979_v40, %v8083_v48 }
 0x1f4   : > { %6268 = vmatprep.mubr.bf16.mxu0 %v9444_v19  ;;  %v8174_v57 = vadd.f32 %v6010_v15, %v8066_v50  ;;  %v8182_v51 = vpop.f32.mrf.mxu0  ;;  %v9451_v50 = vld [vmem:[#allocation47_spill] sm:$0xff]  ;;  %v9452_v15 = vld [vmem:[#allocation17_spill] sm:$0xff] }
 0x1f5   : > { %v2222_v44 = vpop.f32.mrf.mxu1 }
 0x1f6   : > { %v8185_v54 = vadd.f32 %v2222_v44, %v8071_v41 }
 0x1f7   : > { %6297 = vmatmul.mubr.msk.bf16.gmra.mxu1 %vm9447_vm9, %v9445_v17  ;;  %v6011_v31 = vpop.f32.mrf.mxu1 }
 0x1f8   : > { %6300 = vmatprep.mubr.msk.bf16.mxu1 %vm9450_vm3, %v9448_v37  ;;  %v8188_v61 = vadd.f32 %v6011_v31, %v8079_v21 }
 0x1f9   : > { %v5982_v18 = vpop.f32.mrf.mxu0  ;;  %v2225_v48 = vpop.f32.mrf.mxu1 }
 0x1fa   : > { %v8192_v49 = vadd.f32 %v5982_v18, %v8093_v27  ;;  %v8196_v6 = vadd.f32 %v2225_v48, %v8081_v24 }
 0x1fb   : > { %6269 = vmatmul.mubr.bf16.gmra.mxu0 %v9451_v50  ;;  %v1899_v19 = vpop.f32.mrf.mxu0 }
 0x1fc   : > { %6272 = vmatprep.mubr.bf16.mxu0 %v9410_v29  ;;  %v8199_v41 = vadd.f32 %v1899_v19, %v8103_v26  ;;  %v6458_v26 = vld [vmem:[%s8995_s7 + $0x38] sm:$0xff]   ;;  %v9456_v19 = vld [vmem:[#allocation15_spill] sm:$0xff] }
 0x1fd   : > { %v6014_v53 = vpop.f32.mrf.mxu1  ;;  %v5983_v21 = vpop.f32.mrf.mxu0  ;;  %6324 = vmatprep.subr.bf16.mxu0 %v6458_v26 }
 0x1fe   : > { %v8205_v63 = vadd.f32 %v6014_v53, %v8086_v30  ;;  %v8211_v29 = vadd.f32 %v5983_v21, %v8107_v16  ;;  %6325 = vmatpush3.bf16.msra.mxu0 %v6458_v26 }
 0x1ff   : > { %6301 = vmatmul.mubr.msk.bf16.gmra.mxu1 %vm9405_vm1, %v9452_v15  ;;  %v2238_v24 = vpop.f32.mrf.mxu1  ;;  %v8216_v40 = vpop.f32.mrf.mxu0  ;;  %vm9457_vm1 = vnez %v9456_v19 }
 0x200   : > { %6304 = vmatprep.mubr.msk.bf16.mxu1 %vm9407_vm12, %v7692_v59  ;;  %v8219_v37 = vadd.f32 %v2238_v24, %v8091_v11  ;;  %v9455_v59 = vmov 0.0|0.0  }
 0x201   : > { %v6015_v42 = vpop.f32.mrf.mxu1 }
 0x202   : > { %v8222_v44 = vadd.f32 %v6015_v42, %v8101_v33 }
 0x203   : > { %v5986_v30 = vpop.f32.mrf.mxu0  ;;  %6273 = vmatmul.mubr.bf16.gmra.mxu0 %v9455_v59  ;;  %v2241_v31 = vpop.f32.mrf.mxu1 }
 0x204   : > { %v8226_v16 = vadd.f32 %v5986_v30, %v8119_v23  ;;  %v8229_v50 = vadd.f32 %v2241_v31, %v8105_v0  ;;  %v9458_v23 = vld [vmem:[#allocation14_spill] sm:$0xff] }
 0x205   : > { %v1915_v18 = vpop.f32.mrf.mxu0  ;;  %vm9459_vm12 = vnez %v9458_v23 }
 0x206   : > { %v8232_v11 = vadd.f32 %v1915_v18, %v8128_v52  ;;  %v6459_v52 = vld [vmem:[%s8995_s7 + $0x30] sm:$0xff]  }
 0x207   : > { %v6018_v48 = vpop.f32.mrf.mxu1  ;;  %6305 = vmatmul.mubr.msk.bf16.gmra.mxu1 %vm9457_vm1, %v7731_v43  ;;  %v5987_v33 = vpop.f32.mrf.mxu0  ;;  %6326 = vmatprep.subr.bf16.mxu0 %v6459_v52 }
 0x208   : > { %v8238_v53 = vadd.f32 %v6018_v48, %v8110_v5  ;;  %6308 = vmatprep.mubr.msk.bf16.mxu1 %vm9459_vm12, %v7741_v7  ;;  %v8244_v15 = vadd.f32 %v5987_v33, %v8132_v22  ;;  %6327 = vmatpush3.bf16.msra.mxu0 %v6459_v52 }
 0x209   : > { %v2254_v0 = vpop.f32.mrf.mxu1  ;;  %v8249_v17 = vpop.f32.mrf.mxu0 }
 0x20a   : > { %v8252_v43 = vadd.f32 %v2254_v0, %v8117_v3  ;;  %v1919_v35 = vadd.f32 %v8249_v17, %v8138_v39 }
 0x20b   : > { %v6019_v21 = vpop.f32.mrf.mxu1  ;;  %v6054_v27 = vpop.f32.mrf.mxu0 }
 0x20c   : > { %v8255_v5 = vadd.f32 %v6019_v21, %v8126_v56  ;;  %v8258_v7 = vadd.f32 %v6054_v27, %v8146_v8 }
 0x20d   : > { %v2257_v22 = vpop.f32.mrf.mxu1  ;;  %v2608_v26 = vpop.f32.mrf.mxu0 }
 0x20e   : > { %v8261_v24 = vadd.f32 %v2257_v22, %v8130_v55  ;;  %v8264_v42 = vadd.f32 %v2608_v26, %v8156_v12  ;;  %v6460_v12 = vld [vmem:[%s8995_s7 + $0x28] sm:$0xff]  }
 0x20f   : > { %v6022_v3 = vpop.f32.mrf.mxu1  ;;  %6309 = vmatmul.mubr.msk.bf16.gmra.mxu1 %vm7724_vm10, %v7779_v46  ;;  %v6055_v30 = vpop.f32.mrf.mxu0  ;;  %6328 = vmatprep.subr.bf16.mxu0 %v6460_v12  ;;  %v9461_v26 = vld [vmem:[#allocation44_spill] sm:$0xff]  ;;  %vm9498_vm10 = vcmask 130048  }
 0x210   : > { %v8270_v56 = vadd.f32 %v6022_v3, %v8135_v45  ;;  %6312 = vmatprep.mubr.msk.bf16.mxu1 %vm9415_vm11, %v7788_v60  ;;  %v8276_v55 = vadd.f32 %v6055_v30, %v8159_v2  ;;  %v1871_v45 = vadd.f32 %v8153_v20, %v8069_v32  ;;  %6329 = vmatpush3.bf16.msra.mxu0 %v6460_v12  ;;  %v6462_v12 = vld [vmem:[%s8995_s7 + $0x18] sm:$0xff]  }
 0x211   : > { %v2270_v8 = vpop.f32.mrf.mxu1  ;;  %v8284_v14 = vpop.f32.mrf.mxu0 }
 0x212   : > { %v8282_v59 = vadd.f32 %v2270_v8, %v8140_v38 }
 0x213   : > { %v6023_v46 = vpop.f32.mrf.mxu1  ;;  %v6058_v60 = vpop.f32.mrf.mxu0 }
 0x214   : > { %v8289_v10 = vadd.f32 %v6023_v46, %v8151_v34  ;;  %v8292_v2 = vadd.f32 %v6058_v60, %v8174_v57  ;;  %v9466_v46 = vld [vmem:[#allocation49_spill] sm:$0xff] }
 0x215   : > { %v2273_v31 = vpop.f32.mrf.mxu1  ;;  %v2624_v38 = vpop.f32.mrf.mxu0  ;;  %v9468_v60 = vld [vmem:[#allocation5_spill] sm:$0xff] }
 0x216   : > { %v8294_v18 = vadd.f32 %v2273_v31, %v1871_v45  ;;  %v8297_v48 = vadd.f32 %v2624_v38, %v8185_v54  ;;  %v6461_v54 = vld [vmem:[%s8995_s7 + $0x20] sm:$0xff]   ;;  %vm9469_vm11 = vcmp.lt.s32.totalorder %v9468_v60, 7 }
 0x217   : > { %v6026_v19 = vpop.f32.mrf.mxu1  ;;  %6313 = vmatmul.mubr.msk.bf16.gmra.mxu1 %vm7772_vm2, %v7825_v9  ;;  %v6059_v34 = vpop.f32.mrf.mxu0  ;;  %6330 = vmatprep.subr.bf16.mxu0 %v6461_v54  ;;  %v9467_v45 = vld [vmem:[#allocation7_spill] sm:$0xff]  ;;  %vm9499_vm2 = vmmov %vm9498_vm10 }
 0x218   : > { %v8303_v32 = vadd.f32 %v6026_v19, %v8162_v13  ;;  %6316 = vmatprep.mubr.msk.bf16.mxu1 %vm7782_vm8, %v7832_v36  ;;  %v8309_v57 = vadd.f32 %v6059_v34, %v8188_v61  ;;  %v1887_v13 = vadd.f32 %v8182_v51, %v8089_v47  ;;  %6331 = vmatpush3.bf16.msra.mxu0 %v6461_v54  ;;  %v9463_v51 = vld [vmem:[#allocation46_spill] sm:$0xff]  ;;  %vm9500_vm8 = vmmov %vm9499_vm2 }
 0x219   : > { %v2286_v33 = vpop.f32.mrf.mxu1  ;;  %v8317_v62 = vpop.f32.mrf.mxu0  ;;  %6332 = vmatprep.subr.bf16.mxu0 %v6462_v12 }
 0x21a   : > { %v8315_v23 = vadd.f32 %v2286_v33, %v8168_v58 }
 0x21b   : > { %v6027_v9 = vpop.f32.mrf.mxu1  ;;  %v6062_v61 = vpop.f32.mrf.mxu0 }
 0x21c   : > { %v8322_v36 = vadd.f32 %v6027_v9, %v8180_v4  ;;  %v8325_v0 = vadd.f32 %v6062_v61, %v8205_v63  ;;  %v9464_v63 = vpack.c.bf16 %v9463_v51, %v9427_v28  ;;  %6333 = vmatpush3.bf16.msra.mxu0 %v6462_v12 }
 0x21d   : > { %v2289_v52 = vpop.f32.mrf.mxu1  ;;  %v2640_v58 = vpop.f32.mrf.mxu0 }
 0x21e   : > { %v8327_v21 = vadd.f32 %v2289_v52, %v1887_v13  ;;  %v8330_v27 = vadd.f32 %v2640_v58, %v8219_v37  ;;  %v6463_v52 = vld [vmem:[%s8995_s7 + $0x10] sm:$0xff]  }
 0x21f   : > { %v6030_v22 = vpop.f32.mrf.mxu1  ;;  %6317 = vmatmul.mubr.msk.bf16.gmra.mxu1 %vm7818_vm14, %v9461_v26  ;;  %v6063_v4 = vpop.f32.mrf.mxu0  ;;  %6334 = vmatprep.subr.bf16.mxu0 %v6463_v52  ;;  %vm9501_vm14 = vmmov %vm9499_vm2 }
 0x220   : > { %v8336_v47 = vadd.f32 %v6030_v22, %v8192_v49  ;;  %6320 = vmatprep.mubr.msk.bf16.mxu1 %vm7828_vm13, %v9464_v63  ;;  %v8344_v8 = vadd.f32 %v6063_v4, %v8222_v44  ;;  %v4150_v49 = vsel %vm9469_vm11, %v9467_v45, %v9466_v46  ;;  %v1903_v44 = vadd.f32 %v8216_v40, %v8113_v25  ;;  %vm9502_vm13 = vmmov %vm9499_vm2 }
 0x221   : > { %v2302_v37 = vpop.f32.mrf.mxu1  ;;  %v8356_v28 = vpop.f32.mrf.mxu0  ;;  %v5583_v54 = vpack.c.bf16 %v4150_v49, %v9467_v45  ;;  %6335 = vmatpush3.bf16.msra.mxu0 %v6463_v52 }
 0x222   : > { %v8354_v31 = vadd.f32 %v2302_v37, %v8199_v41 }
 0x223   : > { %v6031_v38 = vpop.f32.mrf.mxu1  ;;  %v6066_v34 = vpop.f32.mrf.mxu0 }
 0x224   : > { %v8361_v19 = vadd.f32 %v6031_v38, %v8211_v29  ;;  %v8364_v20 = vadd.f32 %v6066_v34, %v8238_v53 }
 0x225   : > { %v2305_v33 = vpop.f32.mrf.mxu1  ;;  %v2656_v9 = vpop.f32.mrf.mxu0 }
 0x226   : > { %v8367_v41 = vadd.f32 %v2305_v33, %v1903_v44  ;;  %v8370_v13 = vadd.f32 %v2656_v9, %v8252_v43 }
 0x227   : > { %v6034_v61 = vpop.f32.mrf.mxu1  ;;  %6321 = vmatmul.mubr.msk.bf16.gmra.mxu1 %vm7850_vm0, %v5583_v54  ;;  %v6067_v29 = vpop.f32.mrf.mxu0  ;;  %vm9503_vm0 = vmmov %vm9499_vm2 }
 0x228   : > { %v8375_v25 = vadd.f32 %v6034_v61, %v8226_v16  ;;  %v8378_v40 = vadd.f32 %v6067_v29, %v8255_v5  ;;  %vm9504_vm15 = vmmov %vm9503_vm0 }
 0x229   : > { %v2318_v53 = vpop.f32.mrf.mxu1  ;;  %v8386_v43 = vpop.f32.mrf.mxu0  ;;  %vm9505_vm6 = vmmov %vm9503_vm0 }
 0x22a   : > { %v8384_v58 = vadd.f32 %v2318_v53, %v8232_v11  ;;  %vm9506_vm7 = vmmov %vm9503_vm0 }
 0x22b   : > { %v6035_v22 = vpop.f32.mrf.mxu1  ;;  %v6070_v5 = vpop.f32.mrf.mxu0  ;;  %vm9507_vm4 = vmmov %vm9503_vm0 }
 0x22c   : > { %v8391_v16 = vadd.f32 %v6035_v22, %v8244_v15  ;;  %v8394_v26 = vadd.f32 %v6070_v5, %v8270_v56  ;;  %vm9508_vm5 = vmmov %vm9503_vm0 }
 0x22d   : > { %v2321_v3 = vpop.f32.mrf.mxu1  ;;  %v2672_v11 = vpop.f32.mrf.mxu0  ;;  %vm9509_vm9 = vmmov %vm9503_vm0 }
 0x22e   : > { %v8396_v4 = vadd.f32 %v2321_v3, %v1919_v35  ;;  %v8399_v51 = vadd.f32 %v2672_v11, %v8282_v59  ;;  %v2736_v59 = vadd.f32 %v8284_v14, %v8166_v1  ;;  %vm9510_vm3 = vmmov %vm9503_vm0 }
 0x22f   : > { %v6102_v63 = vpop.f32.mrf.mxu1  ;;  %v6071_v30 = vpop.f32.mrf.mxu0  ;;  %vm9511_vm1 = vmmov %vm9503_vm0 }
 0x230   : > { %v8402_v37 = vadd.f32 %v6102_v63, %v8258_v7  ;;  %v8405_v39 = vadd.f32 %v6071_v30, %v8289_v10  ;;  %vm9512_vm12 = vmmov %vm9503_vm0 }
 0x231   : > { %v2882_v15 = vpop.f32.mrf.mxu1  ;;  %v2675_v17 = vpop.f32.mrf.mxu0  ;;  %vm9513_vm11 = vmmov %vm9503_vm0 }
 0x232   : > { %v8408_v56 = vadd.f32 %v2882_v15, %v8264_v42  ;;  %v8411_v12 = vadd.f32 %v2675_v17, %v8294_v18  ;;  %v6464_v42 = vld [vmem:[%s8995_s7 + $0x8] sm:$0xff]  }
 0x233   : > { %v6103_v46 = vpop.f32.mrf.mxu1  ;;  %v6074_v45 = vpop.f32.mrf.mxu0  ;;  %6336 = vmatprep.subr.bf16.mxu0 %v6464_v42 }
 0x234   : > { %v8416_v60 = vadd.f32 %v6103_v46, %v8276_v55  ;;  %v8419_v7 = vadd.f32 %v6074_v45, %v8303_v32  ;;  %6337 = vmatpush3.bf16.msra.mxu0 %v6464_v42 }
 0x235   : > { %v2885_v10 = vpop.f32.mrf.mxu1  ;;  %v2688_v49 = vpop.f32.mrf.mxu0 }
 0x236   : > { %v8421_v38 = vadd.f32 %v2885_v10, %v2736_v59  ;;  %v8427_v18 = vadd.f32 %v2688_v49, %v8315_v23  ;;  %v2740_v23 = vadd.f32 %v8317_v62, %v8196_v6  ;;  %v2748_v49 = vadd.f32 %v8386_v43, %v8261_v24 }
 0x237   : > { %v6106_v44 = vpop.f32.mrf.mxu1  ;;  %v6075_v1 = vpop.f32.mrf.mxu0 }
 0x238   : > { %v8430_v14 = vadd.f32 %v6106_v44, %v8292_v2  ;;  %v8433_v55 = vadd.f32 %v6075_v1, %v8322_v36 }
 0x239   : > { %v2898_v32 = vpop.f32.mrf.mxu1  ;;  %v2691_v34 = vpop.f32.mrf.mxu0 }
 0x23a   : > { %v3013_v33 = vadd.f32 %v2898_v32, %v8297_v48  ;;  %v8437_v54 = vadd.f32 %v2691_v34, %v8327_v21  ;;  %v6465_v48 = vld [vmem:[%s8995_s7] sm:$0xff]  }
 0x23b   : > { %v6107_v9 = vpop.f32.mrf.mxu1  ;;  %v6078_v61 = vpop.f32.mrf.mxu0  ;;  %6338 = vmatprep.subr.bf16.mxu0 %v6465_v48 }
 0x23c   : > { %v3016_v2 = vadd.f32 %v6107_v9, %v8309_v57  ;;  %v8443_v29 = vadd.f32 %v6078_v61, %v8336_v47  ;;  %6339 = vmatpush3.bf16.msra.mxu0 %v6465_v48 }
 0x23d   : > { %v2901_v36 = vpop.f32.mrf.mxu1  ;;  %v2704_v53 = vpop.f32.mrf.mxu0 }
 0x23e   : > { %v8445_v52 = vadd.f32 %v2901_v36, %v2740_v23  ;;  %v8451_v21 = vadd.f32 %v2704_v53, %v8354_v31  ;;  %v2744_v31 = vadd.f32 %v8356_v28, %v8229_v50 }
 0x23f   : > { %v6110_v22 = vpop.f32.mrf.mxu1  ;;  %v6079_v35 = vpop.f32.mrf.mxu0 }
 0x240   : > { %v3019_v6 = vadd.f32 %v6110_v22, %v8325_v0  ;;  %v8455_v57 = vadd.f32 %v6079_v35, %v8361_v19 }
 0x241   : > { %v2914_v62 = vpop.f32.mrf.mxu1  ;;  %v2707_v47 = vpop.f32.mrf.mxu0 }
 0x242   : > { %v3017_v5 = vadd.f32 %v2914_v62, %v8330_v27  ;;  %v8459_v3 = vadd.f32 %v2707_v47, %v8367_v41 }
 0x243   : > { %v6111_v11 = vpop.f32.mrf.mxu1  ;;  %v6082_v63 = vpop.f32.mrf.mxu0 }
 0x244   : > { %v3020_v30 = vadd.f32 %v6111_v11, %v8344_v8  ;;  %v8465_v0 = vadd.f32 %v6082_v63, %v8375_v25 }
 0x245   : > { %v2917_v19 = vpop.f32.mrf.mxu1  ;;  %v2720_v15 = vpop.f32.mrf.mxu0 }
 0x246   : > { %v8467_v17 = vadd.f32 %v2917_v19, %v2744_v31  ;;  %v8470_v46 = vadd.f32 %v2720_v15, %v8384_v58 }
 0x247   : > { %v6114_v27 = vpop.f32.mrf.mxu1  ;;  %v6083_v41 = vpop.f32.mrf.mxu0 }
 0x248   : > { %v3023_v59 = vadd.f32 %v6114_v27, %v8364_v20  ;;  %v8474_v45 = vadd.f32 %v6083_v41, %v8391_v16 }
 0x249   : > { %v2930_v50 = vpop.f32.mrf.mxu1  ;;  %v2723_v28 = vpop.f32.mrf.mxu0 }
 0x24a   : > { %v3021_v8 = vadd.f32 %v2930_v50, %v8370_v13  ;;  %v8478_v25 = vadd.f32 %v2723_v28, %v8396_v4 }
 0x24b   : > { %v6115_v10 = vpop.f32.mrf.mxu1  ;;  %v6150_v42 = vpop.f32.mrf.mxu0 }
 0x24c   : > { %v3024_v58 = vadd.f32 %v6115_v10, %v8378_v40  ;;  %v8484_v44 = vadd.f32 %v6150_v42, %v8402_v37 }
 0x24d   : > { %v2933_v20 = vpop.f32.mrf.mxu1  ;;  %v3252_v1 = vpop.f32.mrf.mxu0 }
 0x24e   : > { %v8486_v16 = vadd.f32 %v2933_v20, %v2748_v49  ;;  %v8489_v32 = vadd.f32 %v3252_v1, %v8408_v56 }
 0x24f   : > { %v6118_v13 = vpop.f32.mrf.mxu1  ;;  %v8492_v34 = vpop.f32.mrf.mxu0 }
 0x250   : > { %v3027_v4 = vadd.f32 %v6118_v13, %v8394_v26 }
 0x251   : > { %v2946_v9 = vpop.f32.mrf.mxu1  ;;  %v8495_v40 = vpop.f32.mrf.mxu0 }
 0x252   : > { %v3025_v24 = vadd.f32 %v2946_v9, %v8399_v51 }
 0x253   : > { %v6119_v43 = vpop.f32.mrf.mxu1  ;;  %v6154_v23 = vpop.f32.mrf.mxu0 }
 0x254   : > { %v3028_v37 = vadd.f32 %v6119_v43, %v8405_v39  ;;  %v8499_v61 = vadd.f32 %v6154_v23, %v8430_v14 }
 0x255   : > { %v2949_v36 = vpop.f32.mrf.mxu1  ;;  %v3268_v53 = vpop.f32.mrf.mxu0 }
 0x256   : > { %v8502_v56 = vadd.f32 %v2949_v36, %v8411_v12  ;;  %v8504_v26 = vadd.f32 %v3268_v53, %v3013_v33 }
 0x257   : > { %v6122_v48 = vpop.f32.mrf.mxu1  ;;  %v6155_v51 = vpop.f32.mrf.mxu0 }
 0x258   : > { %v3031_v22 = vadd.f32 %v6122_v48, %v8419_v7  ;;  %v8507_v35 = vadd.f32 %v6155_v51, %v3016_v2 }
 0x259   : > { %v2962_v62 = vpop.f32.mrf.mxu1  ;;  %v8510_v47 = vpop.f32.mrf.mxu0 }
 0x25a   : > { %v3029_v39 = vadd.f32 %v2962_v62, %v8427_v18 }
 0x25b   : > { %v6123_v14 = vpop.f32.mrf.mxu1  ;;  %v6158_v31 = vpop.f32.mrf.mxu0 }
 0x25c   : > { %v3032_v11 = vadd.f32 %v6123_v14, %v8433_v55  ;;  %v8513_v12 = vadd.f32 %v6158_v31, %v3019_v6 }
 0x25d   : > { %v2965_v63 = vpop.f32.mrf.mxu1  ;;  %v3284_v19 = vpop.f32.mrf.mxu0 }
 0x25e   : > { %v8516_v33 = vadd.f32 %v2965_v63, %v8437_v54  ;;  %v8518_v7 = vadd.f32 %v3284_v19, %v3017_v5 }
 0x25f   : > { %v6126_v2 = vpop.f32.mrf.mxu1  ;;  %v6159_v27 = vpop.f32.mrf.mxu0 }
 0x260   : > { %v3035_v15 = vadd.f32 %v6126_v2, %v8443_v29  ;;  %v8521_v18 = vadd.f32 %v6159_v27, %v3020_v30 }
 0x261   : > { %v2978_v41 = vpop.f32.mrf.mxu1  ;;  %v8524_v55 = vpop.f32.mrf.mxu0 }
 0x262   : > { %v3033_v50 = vadd.f32 %v2978_v41, %v8451_v21 }
 0x263   : > { %v6127_v6 = vpop.f32.mrf.mxu1  ;;  %v6162_v10 = vpop.f32.mrf.mxu0 }
 0x264   : > { %v3036_v28 = vadd.f32 %v6127_v6, %v8455_v57  ;;  %v8527_v54 = vadd.f32 %v6162_v10, %v3023_v59 }
 0x265   : > { %v2981_v49 = vpop.f32.mrf.mxu1  ;;  %v3300_v42 = vpop.f32.mrf.mxu0 }
 0x266   : > { %v8530_v5 = vadd.f32 %v2981_v49, %v8459_v3  ;;  %v8532_v29 = vadd.f32 %v3300_v42, %v3021_v8 }
 0x267   : > { %v6130_v30 = vpop.f32.mrf.mxu1  ;;  %v6163_v1 = vpop.f32.mrf.mxu0 }
 0x268   : > { %9470 = vst [vmem:[#allocation31_spill] sm:$0xff] %v8530_v5  ;;  %v3039_v20 = vadd.f32 %v6130_v30, %v8465_v0  ;;  %v3394_v21 = vadd.f32 %v6163_v1, %v3024_v58 }
 0x269   : > { %v2994_v13 = vpop.f32.mrf.mxu1  ;;  %v8536_v43 = vpop.f32.mrf.mxu0 }
 0x26a   : > { %v3037_v9 = vadd.f32 %v2994_v13, %v8470_v46 }
 0x26b   : > { %v6131_v57 = vpop.f32.mrf.mxu1  ;;  %v6166_v23 = vpop.f32.mrf.mxu0 }
 0x26c   : > { %v3040_v59 = vadd.f32 %v6131_v57, %v8474_v45  ;;  %v3397_v36 = vadd.f32 %v6166_v23, %v3027_v4 }
 0x26d   : > { %v2997_v3 = vpop.f32.mrf.mxu1  ;;  %v3316_v8 = vpop.f32.mrf.mxu0 }
 0x26e   : > { %v8540_v53 = vadd.f32 %v2997_v3, %v8478_v25  ;;  %v3395_v48 = vadd.f32 %v3316_v8, %v3025_v24 }
 0x26f   : > { %v6198_v51 = vpop.f32.mrf.mxu1  ;;  %v6167_v0 = vpop.f32.mrf.mxu0 }
 0x270   : > { %9471 = vst [vmem:[#allocation38_spill] sm:$0xff] %v8540_v53  ;;  %v8543_v58 = vadd.f32 %v6198_v51, %v8484_v44  ;;  %v3398_v62 = vadd.f32 %v6167_v0, %v3028_v37 }
 0x271   : > { %v3654_v46 = vpop.f32.mrf.mxu1  ;;  %v8545_v14 = vpop.f32.mrf.mxu0 }
 0x272   : > { %v8548_v31 = vadd.f32 %v3654_v46, %v8489_v32 }
 0x273   : > { %v8550_v45 = vpop.f32.mrf.mxu1  ;;  %v6170_v4 = vpop.f32.mrf.mxu0 }
 0x274   : > { %v3401_v63 = vadd.f32 %v6170_v4, %v3031_v22 }
 0x275   : > { %v8552_v25 = vpop.f32.mrf.mxu1  ;;  %v3332_v19 = vpop.f32.mrf.mxu0 }
 0x276   : > { %v3399_v24 = vadd.f32 %v3332_v19, %v3029_v39 }
 0x277   : > { %v6202_v2 = vpop.f32.mrf.mxu1  ;;  %v6171_v27 = vpop.f32.mrf.mxu0 }
 0x278   : > { %v8555_v44 = vadd.f32 %v6202_v2, %v8499_v61  ;;  %v3402_v37 = vadd.f32 %v6171_v27, %v3032_v11 }
 0x279   : > { %v3670_v41 = vpop.f32.mrf.mxu1  ;;  %v8557_v6 = vpop.f32.mrf.mxu0 }
 0x27a   : > { %v8560_v32 = vadd.f32 %v3670_v41, %v8504_v26 }
 0x27b   : > { %v6203_v10 = vpop.f32.mrf.mxu1  ;;  %v6174_v49 = vpop.f32.mrf.mxu0 }
 0x27c   : > { %v8563_v22 = vadd.f32 %v6203_v10, %v8507_v35  ;;  %v3405_v42 = vadd.f32 %v6174_v49, %v3035_v15 }
 0x27d   : > { %v8565_v30 = vpop.f32.mrf.mxu1  ;;  %v3348_v39 = vpop.f32.mrf.mxu0 }
 0x27e   : > { %v3403_v1 = vadd.f32 %v3348_v39, %v3033_v50 }
 0x27f   : > { %v6206_v13 = vpop.f32.mrf.mxu1  ;;  %v6175_v61 = vpop.f32.mrf.mxu0 }
 0x280   : > { %v8568_v11 = vadd.f32 %v6206_v13, %v8513_v12  ;;  %v3406_v57 = vadd.f32 %v6175_v61, %v3036_v28 }
 0x281   : > { %v3686_v23 = vpop.f32.mrf.mxu1  ;;  %v8570_v3 = vpop.f32.mrf.mxu0 }
 0x282   : > { %9472 = vst [vmem:[#allocation35_spill] sm:$0xff] %v8570_v3  ;;  %v8573_v26 = vadd.f32 %v3686_v23, %v8518_v7 }
 0x283   : > { %v6207_v8 = vpop.f32.mrf.mxu1  ;;  %v6178_v35 = vpop.f32.mrf.mxu0 }
 0x284   : > { %v8576_v15 = vadd.f32 %v6207_v8, %v8521_v18  ;;  %v3409_v51 = vadd.f32 %v6178_v35, %v3039_v20 }
 0x285   : > { %v8578_v0 = vpop.f32.mrf.mxu1  ;;  %v3364_v50 = vpop.f32.mrf.mxu0 }
 0x286   : > { %v3407_v46 = vadd.f32 %v3364_v50, %v3037_v9 }
 0x287   : > { %v6210_v4 = vpop.f32.mrf.mxu1  ;;  %v6179_v12 = vpop.f32.mrf.mxu0 }
 0x288   : > { %v8581_v28 = vadd.f32 %v6210_v4, %v8527_v54  ;;  %v3410_v19 = vadd.f32 %v6179_v12, %v3040_v59 }
 0x289   : > { %v3702_v2 = vpop.f32.mrf.mxu1  ;;  %v8583_v27 = vpop.f32.mrf.mxu0 }
 0x28a   : > { %9473 = vst [vmem:[#allocation37_spill] sm:$0xff] %v8583_v27  ;;  %v8586_v7 = vadd.f32 %v3702_v2, %v8532_v29 }
 0x28b   : > { %v6211_v41 = vpop.f32.mrf.mxu1  ;;  %v6246_v20 = vpop.f32.mrf.mxu0 }
 0x28c   : > { %v8588_v18 = vadd.f32 %v6211_v41, %v3394_v21 }
 0x28d   : > { %v8590_v10 = vpop.f32.mrf.mxu1  ;;  %v3928_v49 = vpop.f32.mrf.mxu0 }
 0x28f   : > { %v6214_v9 = vpop.f32.mrf.mxu1  ;;  %v6247_v13 = vpop.f32.mrf.mxu0 }
 0x290   : > { %v8592_v39 = vadd.f32 %v6214_v9, %v3397_v36 }
 0x291   : > { %v3718_v54 = vpop.f32.mrf.mxu1  ;;  %v3931_v59 = vpop.f32.mrf.mxu0 }
 0x292   : > { %v8594_v61 = vadd.f32 %v3718_v54, %v3395_v48 }
 0x293   : > { %v6215_v23 = vpop.f32.mrf.mxu1  ;;  %v6250_v29 = vpop.f32.mrf.mxu0 }
 0x294   : > { %v8596_v8 = vadd.f32 %v6215_v23, %v3398_v62 }
 0x295   : > { %v8598_v35 = vpop.f32.mrf.mxu1  ;;  %v3944_v21 = vpop.f32.mrf.mxu0 }
 0x297   : > { %v6218_v50 = vpop.f32.mrf.mxu1  ;;  %v8602_v12 = vpop.f32.mrf.mxu0 }
 0x298   : > { %v8600_v4 = vadd.f32 %v6218_v50, %v3401_v63 }
 0x299   : > { %v3734_v2 = vpop.f32.mrf.mxu1  ;;  %v8606_v41 = vpop.f32.mrf.mxu0 }
 0x29a   : > { %v8604_v36 = vadd.f32 %v3734_v2, %v3399_v24 }
 0x29b   : > { %v6219_v48 = vpop.f32.mrf.mxu1  ;;  %v8610_v54 = vpop.f32.mrf.mxu0 }
 0x29c   : > { %9474 = vst [vmem:[#allocation3_spill] sm:$0xff] %v8604_v36  ;;  %v8608_v9 = vadd.f32 %v6219_v48, %v3402_v37 }
 0x29d   : > { %v8612_v62 = vpop.f32.mrf.mxu1  ;;  %v8614_v23 = vpop.f32.mrf.mxu0 }
 0x29e   : > { %9475 = vst [vmem:[#allocation4_spill] sm:$0xff] %v8608_v9  ;;  %9476 = vst [vmem:[#allocation6_spill] sm:$0xff] %v8612_v62 }
 0x29f   : > { %v6222_v27 = vpop.f32.mrf.mxu1  ;;  %v8618_v63 = vpop.f32.mrf.mxu0 }
 0x2a0   : > { %v8616_v53 = vadd.f32 %v6222_v27, %v3405_v42 }
 0x2a1   : > { %v3750_v50 = vpop.f32.mrf.mxu1  ;;  %v8622_v24 = vpop.f32.mrf.mxu0 }
 0x2a2   : > { %9477 = vst [vmem:[#allocation10_spill] sm:$0xff] %v8616_v53  ;;  %v8620_v3 = vadd.f32 %v3750_v50, %v3403_v1 }
 0x2a3   : > { %v6223_v2 = vpop.f32.mrf.mxu1  ;;  %v8626_v37 = vpop.f32.mrf.mxu0 }
 0x2a4   : > { %9478 = vst [vmem:[#allocation11_spill] sm:$0xff] %v8620_v3  ;;  %v8624_v5 = vadd.f32 %v6223_v2, %v3406_v57 }
 0x2a5   : > { %v8628_v48 = vpop.f32.mrf.mxu1  ;;  %v8630_v9 = vpop.f32.mrf.mxu0 }
 0x2a6   : > { %9479 = vst [vmem:[#allocation12_spill] sm:$0xff] %v8624_v5  ;;  %v3382_v5 = vadd.f32 %v8492_v34, %v8416_v60 }
 0x2a7   : > { %v6226_v62 = vpop.f32.mrf.mxu1  ;;  %v8634_v42 = vpop.f32.mrf.mxu0 }
 0x2a8   : > { %v8632_v36 = vadd.f32 %v6226_v62, %v3409_v51  ;;  %v4057_v51 = vadd.f32 %v6246_v20, %v8543_v58 }
 0x2a9   : > { %v3766_v27 = vpop.f32.mrf.mxu1  ;;  %v8638_v1 = vpop.f32.mrf.mxu0 }
 0x2aa   : > { %9480 = vst [vmem:[#allocation16_spill] sm:$0xff] %v8632_v36  ;;  %v8636_v53 = vadd.f32 %v3766_v27, %v3407_v46  ;;  %v8652_v46 = vld [vmem:[%s8993_s5] ss:$0 sm:$0xff]  ;;  %v3380_v27 = vadd.f32 %v8495_v40, %v8421_v38 }
 0x2ab   : > { %v6227_v50 = vpop.f32.mrf.mxu1  ;;  %v8642_v57 = vpop.f32.mrf.mxu0  ;;  %v8665_v36 = vld [vmem:[%s8994_s6] ss:$0 sm:$0xff] }
 0x2ac   : > { %9481 = vst [vmem:[#allocation20_spill] sm:$0xff] %v8636_v53  ;;  %v8640_v3 = vadd.f32 %v6227_v50, %v3410_v19  ;;  %v3784_v19 = vadd.f32 %v8550_v45, %v3382_v5  ;;  %v4055_v50 = vadd.f32 %v3928_v49, %v8548_v31  ;;  %v3782_v60 = vadd.f32 %v8552_v25, %v3380_v27 }
 0x2ad   : > { %v8644_v2 = vpop.f32.mrf.mxu1 }
 0x2ae   : > { %9482 = vst [vmem:[#allocation27_spill] sm:$0xff] %v8640_v3  ;;  %9483 = vst [vmem:[#allocation28_spill] sm:$0xff] %v8644_v2  ;;  %v8658_v3 = vpop.f32.mrf.mxu0  ;;  %v4058_v34 = vadd.f32 %v6247_v13, %v3784_v19  ;;  %v4056_v40 = vadd.f32 %v3931_v59, %v3782_v60 }
 0x2af   : > { %v6294_v62 = vpop.f32.mrf.mxu1 }
 0x2b0   : > { %v4427_v2 = vadd.f32 %v6294_v62, %v4057_v51  ;;  %v8667_v5 = vpop.f32.mrf.mxu0  ;;  %v4061_v51 = vadd.f32 %v6250_v29, %v8555_v44  ;;  %v4059_v62 = vadd.f32 %v3944_v21, %v8560_v32 }
 0x2b1   : > { %v4298_v53 = vpop.f32.mrf.mxu1 }
 0x2b2   : > { %v4466_v58 = vmul.f32 %v8652_v46, %v4427_v2  ;;  %v4425_v20 = vadd.f32 %v4298_v53, %v4055_v50  ;;  %v3384_v2 = vadd.f32 %v8510_v47, %v8445_v52  ;;  %v8676_v59 = vpop.f32.mrf.mxu0  ;;  %v4062_v47 = vadd.f32 %v8602_v12, %v8563_v22 }
 0x2b3   : > { %v6295_v38 = vpop.f32.mrf.mxu1  ;;  %v3388_v22 = vadd.f32 %v8524_v55, %v8467_v17 }
 0x2b4   : > { %v4464_v31 = vmul.f32 %v8652_v46, %v4425_v20  ;;  %v4428_v45 = vadd.f32 %v6295_v38, %v4058_v34  ;;  %v4505_v25 = vadd.f32 %v8665_v36, %v4466_v58  ;;  %v3786_v29 = vadd.f32 %v8565_v30, %v3384_v2 }
 0x2b5   : > { %v4301_v49 = vpop.f32.mrf.mxu1 }
 0x2b6   : > { %v4467_v13 = vmul.f32 %v8652_v46, %v4428_v45  ;;  %v4426_v53 = vadd.f32 %v4301_v49, %v4056_v40  ;;  %v4503_v19 = vadd.f32 %v8665_v36, %v4464_v31  ;;  %v4537_v58 = vmax.f32 %v4505_v25, 0.0  ;;  %v8687_v45 = vpop.f32.mrf.mxu0 }
 0x2b7   : > { %v6298_v27 = vpop.f32.mrf.mxu1  ;;  %v4060_v40 = vadd.f32 %v8606_v41, %v3786_v29  ;;  %v4066_v29 = vadd.f32 %v8618_v63, %v8576_v15  ;;  %v4069_v15 = vadd.f32 %v8626_v37, %v8581_v28 }
 0x2b8   : > { %v4506_v50 = vadd.f32 %v8665_v36, %v4467_v13  ;;  %v4465_v60 = vmul.f32 %v8652_v46, %v4426_v53  ;;  %v4431_v44 = vadd.f32 %v6298_v27, %v4061_v51  ;;  %v4535_v31 = vmax.f32 %v4503_v19, 0.0 }
 0x2b9   : > { %v4314_v34 = vpop.f32.mrf.mxu1  ;;  %v4065_v53 = vadd.f32 %v8610_v54, %v8568_v11  ;;  %v4063_v19 = vadd.f32 %v8614_v23, %v8573_v26  ;;  %v3790_v11 = vadd.f32 %v8578_v0, %v3388_v22 }
 0x2ba   : > { %v4538_v20 = vmax.f32 %v4506_v50, 0.0  ;;  %v4504_v38 = vadd.f32 %v8665_v36, %v4465_v60  ;;  %v4429_v52 = vadd.f32 %v4314_v34, %v4059_v62  ;;  %v4470_v32 = vmul.f32 %v8652_v46, %v4431_v44  ;;  %v8698_v50 = vpop.f32.mrf.mxu0 }
 0x2bb   : > { %v6299_v21 = vpop.f32.mrf.mxu1 }
 0x2bc   : > { %v4568_v49 = vpack.c.bf16 %v4538_v20, %v4537_v58  ;;  %v4536_v51 = vmax.f32 %v4504_v38, 0.0  ;;  %v4468_v30 = vmul.f32 %v8652_v46, %v4429_v52  ;;  %v4432_v25 = vadd.f32 %v6299_v21, %v4062_v47  ;;  %v8709_v0 = vpop.f32.mrf.mxu0 }
 0x2bd   : > { %v4317_v13 = vpop.f32.mrf.mxu1  ;;  %v4509_v12 = vadd.f32 %v8665_v36, %v4470_v32  ;;  %v4064_v52 = vadd.f32 %v8622_v24, %v3790_v11  ;;  %v3392_v24 = vadd.f32 %v8536_v43, %v8486_v16 }
 0x2be   : > { %v4430_v2 = vadd.f32 %v4317_v13, %v4060_v40  ;;  %v4567_v62 = vpack.c.bf16 %v4536_v51, %v4535_v31  ;;  %v4471_v41 = vmul.f32 %v8652_v46, %v4432_v25  ;;  %v4507_v54 = vadd.f32 %v8665_v36, %v4468_v30 }
 0x2bf   : > { %v6302_v27 = vpop.f32.mrf.mxu1  ;;  %v4541_v58 = vmax.f32 %v4509_v12, 0.0  ;;  %v4067_v25 = vadd.f32 %v8630_v9, %v8586_v7  ;;  %v3794_v12 = vadd.f32 %v8590_v10, %v3392_v24  ;;  %v4070_v9 = vadd.f32 %v8634_v42, %v8588_v18 }
 0x2c0   : > { %v4469_v60 = vmul.f32 %v8652_v46, %v4430_v2  ;;  %v4435_v44 = vadd.f32 %v6302_v27, %v4065_v53  ;;  %6340 = vmatprep.mubr.bf16.mxu0 %v4567_v62  ;;  %v4510_v17 = vadd.f32 %v8665_v36, %v4471_v41  ;;  %v4539_v40 = vmax.f32 %v4507_v54, 0.0  ;;  %v8720_v2 = vpop.f32.mrf.mxu0 }
 0x2c1   : > { %v4330_v55 = vpop.f32.mrf.mxu1  ;;  %6341 = vmatmul.mubr.bf16.vlgmr.msra.gmra.mxu0 %v4568_v49  ;;  %v3396_v18 = vadd.f32 %v8545_v14, %v8502_v56 }
 0x2c2   : > { %v4508_v34 = vadd.f32 %v8665_v36, %v4469_v60  ;;  %v4474_v26 = vmul.f32 %v8652_v46, %v4435_v44  ;;  %v4433_v23 = vadd.f32 %v4330_v55, %v4063_v19  ;;  %v4542_v20 = vmax.f32 %v4510_v17, 0.0  ;;  %v8731_v11 = vpop.f32.mrf.mxu0 }
 0x2c3   : > { %v6303_v38 = vpop.f32.mrf.mxu1  ;;  %v4068_v44 = vadd.f32 %v8638_v1, %v3794_v12 }
 0x2c4   : > { %v4540_v47 = vmax.f32 %v4508_v34, 0.0  ;;  %v4472_v32 = vmul.f32 %v8652_v46, %v4433_v23  ;;  %v4436_v21 = vadd.f32 %v6303_v38, %v4066_v29  ;;  %v4570_v31 = vpack.c.bf16 %v4542_v20, %v4541_v58 }
 0x2c5   : > { %v4333_v49 = vpop.f32.mrf.mxu1  ;;  %v4513_v63 = vadd.f32 %v8665_v36, %v4474_v26  ;;  %v4073_v26 = vadd.f32 %v8642_v57, %v8592_v39  ;;  %v4071_v38 = vadd.f32 %v8658_v3, %v8594_v61  ;;  %v3798_v39 = vadd.f32 %v8598_v35, %v3396_v18 }
 0x2c6   : > { %v4475_v51 = vmul.f32 %v8652_v46, %v4436_v21  ;;  %v4434_v30 = vadd.f32 %v4333_v49, %v4064_v52  ;;  %v4569_v53 = vpack.c.bf16 %v4540_v47, %v4539_v40  ;;  %v4511_v62 = vadd.f32 %v8665_v36, %v4472_v32  ;;  %v8742_v52 = vpop.f32.mrf.mxu0 }
 0x2c7   : > { %v6306_v13 = vpop.f32.mrf.mxu1  ;;  %v4545_v27 = vmax.f32 %v4513_v63, 0.0  ;;  %v4074_v21 = vadd.f32 %v8667_v5, %v8596_v8  ;;  %v4072_v63 = vadd.f32 %v8676_v59, %v3798_v39  ;;  %v4077_v8 = vadd.f32 %v8687_v45, %v8600_v4  ;;  %v9484_v59 = vld [vmem:[#allocation3_spill] sm:$0xff] }
 0x2c8   : > { %v4514_v22 = vadd.f32 %v8665_v36, %v4475_v51  ;;  %v4473_v28 = vmul.f32 %v8652_v46, %v4434_v30  ;;  %v4439_v37 = vadd.f32 %v6306_v13, %v4069_v15  ;;  %6344 = vmatprep.mubr.bf16.mxu0 %v4569_v53  ;;  %v4543_v54 = vmax.f32 %v4511_v62, 0.0  ;;  %v6271_v35 = vpop.f32.mrf.mxu0 }
 0x2c9   : > { %v4346_v41 = vpop.f32.mrf.mxu1  ;;  %6345 = vmatmul.mubr.bf16.gmra.mxu0 %v4570_v31 }
 0x2ca   : > { %v4546_v16 = vmax.f32 %v4514_v22, 0.0  ;;  %v4512_v43 = vadd.f32 %v8665_v36, %v4473_v28  ;;  %v4437_v7 = vadd.f32 %v4346_v41, %v4067_v25  ;;  %v4478_v19 = vmul.f32 %v8652_v46, %v4439_v37 }
 0x2cb   : > { %v6307_v60 = vpop.f32.mrf.mxu1  ;;  %v3400_v28 = vadd.f32 %v8557_v6, %v8516_v33  ;;  %v4075_v37 = vadd.f32 %v8698_v50, %v9484_v59  ;;  %v9486_v50 = vld [vmem:[#allocation4_spill] sm:$0xff] }
 0x2cc   : > { %v4572_v10 = vpack.c.bf16 %v4546_v16, %v4545_v27  ;;  %v4544_v17 = vmax.f32 %v4512_v43, 0.0  ;;  %v4476_v55 = vmul.f32 %v8652_v46, %v4437_v7  ;;  %v4440_v29 = vadd.f32 %v6307_v60, %v4070_v9  ;;  %v4027_v27 = vpop.f32.mrf.mxu0  ;;  %v9485_v7 = vld [vmem:[#allocation6_spill] sm:$0xff] }
 0x2cd   : > { %v4349_v34 = vpop.f32.mrf.mxu1  ;;  %v4517_v42 = vadd.f32 %v8665_v36, %v4478_v19  ;;  %v3802_v9 = vadd.f32 %v9485_v7, %v3400_v28 }
 0x2ce   : > { %v4438_v23 = vadd.f32 %v4349_v34, %v4068_v44  ;;  %v4571_v58 = vpack.c.bf16 %v4544_v17, %v4543_v54  ;;  %v4479_v1 = vmul.f32 %v8652_v46, %v4440_v29  ;;  %v4515_v57 = vadd.f32 %v8665_v36, %v4476_v55  ;;  %v6274_v29 = vpop.f32.mrf.mxu0 }
 0x2cf   : > { %v6310_v20 = vpop.f32.mrf.mxu1  ;;  %v4549_v31 = vmax.f32 %v4517_v42, 0.0  ;;  %v4078_v54 = vadd.f32 %v8709_v0, %v9486_v50  ;;  %v4076_v55 = vadd.f32 %v8720_v2, %v3802_v9  ;;  %v9489_v0 = vld [vmem:[#allocation35_spill] sm:$0xff]  ;;  %v9495_v9 = vld [vmem:[#allocation20_spill] sm:$0xff] }
 0x2d0   : > { %v4477_v47 = vmul.f32 %v8652_v46, %v4438_v23  ;;  %v4443_v32 = vadd.f32 %v6310_v20, %v4073_v26  ;;  %6348 = vmatprep.mubr.bf16.mxu0 %v4571_v58  ;;  %v4518_v56 = vadd.f32 %v8665_v36, %v4479_v1  ;;  %v4547_v25 = vmax.f32 %v4515_v57, 0.0  ;;  %v9487_v1 = vld [vmem:[#allocation10_spill] sm:$0xff] }
 0x2d1   : > { %v4362_v14 = vpop.f32.mrf.mxu1  ;;  %6349 = vmatmul.mubr.bf16.gmra.mxu0 %v4572_v10  ;;  %v4081_v20 = vadd.f32 %v8731_v11, %v9487_v1 }
 0x2d2   : > { %v4516_v40 = vadd.f32 %v8665_v36, %v4477_v47  ;;  %v4482_v3 = vmul.f32 %v8652_v46, %v4443_v32  ;;  %v4441_v61 = vadd.f32 %v4362_v14, %v4071_v38  ;;  %v4550_v49 = vmax.f32 %v4518_v56, 0.0  ;;  %v9488_v32 = vld [vmem:[#allocation31_spill] sm:$0xff] }
 0x2d3   : > { %v6311_v15 = vpop.f32.mrf.mxu1  ;;  %v3404_v39 = vadd.f32 %v9489_v0, %v9488_v32  ;;  %v9490_v14 = vld [vmem:[#allocation11_spill] sm:$0xff] }
 0x2d4   : > { %v4548_v51 = vmax.f32 %v4516_v40, 0.0  ;;  %v4480_v30 = vmul.f32 %v8652_v46, %v4441_v61  ;;  %v4444_v24 = vadd.f32 %v6311_v15, %v4074_v21  ;;  %v4574_v13 = vpack.c.bf16 %v4550_v49, %v4549_v31  ;;  %v4040_v40 = vpop.f32.mrf.mxu0 }
 0x2d5   : > { %v4365_v53 = vpop.f32.mrf.mxu1  ;;  %v4521_v5 = vadd.f32 %v8665_v36, %v4482_v3  ;;  %v4079_v21 = vadd.f32 %v8742_v52, %v9490_v14  ;;  %v3806_v11 = vadd.f32 %v8628_v48, %v3404_v39 }
 0x2d6   : > { %v4483_v62 = vmul.f32 %v8652_v46, %v4444_v24  ;;  %v4442_v22 = vadd.f32 %v4365_v53, %v4072_v63  ;;  %v4573_v41 = vpack.c.bf16 %v4548_v51, %v4547_v25  ;;  %v4519_v16 = vadd.f32 %v8665_v36, %v4480_v30  ;;  %v9491_v63 = vld [vmem:[#allocation12_spill] sm:$0xff] }
 0x2d7   : > { %v6314_v12 = vpop.f32.mrf.mxu1  ;;  %v4553_v60 = vmax.f32 %v4521_v5, 0.0  ;;  %v4082_v51 = vadd.f32 %v6271_v35, %v9491_v63  ;;  %v6275_v5 = vpop.f32.mrf.mxu0 }
 0x2d8   : > { %v4522_v43 = vadd.f32 %v8665_v36, %v4483_v62  ;;  %v4481_v4 = vmul.f32 %v8652_v46, %v4442_v22  ;;  %v4447_v45 = vadd.f32 %v6314_v12, %v4077_v8  ;;  %6352 = vmatprep.mubr.bf16.mxu0 %v4573_v41  ;;  %v4551_v34 = vmax.f32 %v4519_v16, 0.0  ;;  %v9492_v12 = vld [vmem:[#allocation16_spill] sm:$0xff] }
 0x2d9   : > { %v4378_v19 = vpop.f32.mrf.mxu1  ;;  %6353 = vmatmul.mubr.bf16.gmra.mxu0 %v4574_v13  ;;  %v4080_v8 = vadd.f32 %v4027_v27, %v3806_v11  ;;  %v4085_v35 = vadd.f32 %v6274_v29, %v9492_v12  ;;  %v4083_v27 = vadd.f32 %v4040_v40, %v9495_v9 }
 0x2da   : > { %v4554_v44 = vmax.f32 %v4522_v43, 0.0  ;;  %v4520_v33 = vadd.f32 %v8665_v36, %v4481_v4  ;;  %v4445_v6 = vadd.f32 %v4378_v19, %v4075_v37  ;;  %v4486_v10 = vmul.f32 %v8652_v46, %v4447_v45  ;;  %v9493_v4 = vld [vmem:[#allocation38_spill] sm:$0xff]  ;;  %v9494_v45 = vld [vmem:[#allocation37_spill] sm:$0xff] }
 0x2db   : > { %v6315_v17 = vpop.f32.mrf.mxu1  ;;  %v3408_v7 = vadd.f32 %v9494_v45, %v9493_v4 }
 0x2dc   : > { %v4576_v26 = vpack.c.bf16 %v4554_v44, %v4553_v60  ;;  %v4552_v23 = vmax.f32 %v4520_v33, 0.0  ;;  %v4484_v58 = vmul.f32 %v8652_v46, %v4445_v6  ;;  %v4448_v18 = vadd.f32 %v6315_v17, %v4078_v54  ;;  %v4043_v44 = vpop.f32.mrf.mxu0 }
 0x2dd   : > { %v4381_v42 = vpop.f32.mrf.mxu1  ;;  %v4525_v57 = vadd.f32 %v8665_v36, %v4486_v10  ;;  %v9496_v10 = vld [vmem:[#allocation28_spill] sm:$0xff] }
 0x2de   : > { %v4446_v38 = vadd.f32 %v4381_v42, %v4076_v55  ;;  %v4575_v47 = vpack.c.bf16 %v4552_v23, %v4551_v34  ;;  %v4487_v2 = vmul.f32 %v8652_v46, %v4448_v18  ;;  %v4523_v31 = vadd.f32 %v8665_v36, %v4484_v58  ;;  %v9497_v58 = vld [vmem:[#allocation27_spill] sm:$0xff] }
 0x2df   : > { %v6318_v56 = vpop.f32.mrf.mxu1  ;;  %v4557_v52 = vmax.f32 %v4525_v57, 0.0  ;;  %v3810_v17 = vadd.f32 %v9496_v10, %v3408_v7  ;;  %v4086_v18 = vadd.f32 %v6275_v5, %v9497_v58  ;;  %v4886_v5 = vld [vmem:[%s6554_s22] sm:$0xff] }
 0x2e0   : > { %v4485_v3 = vmul.f32 %v8652_v46, %v4446_v38  ;;  %v4451_v61 = vadd.f32 %v6318_v56, %v4081_v20  ;;  %6356 = vmatprep.mubr.bf16.mxu0 %v4575_v47  ;;  %v4526_v49 = vadd.f32 %v8665_v36, %v4487_v2  ;;  %v4555_v28 = vmax.f32 %v4523_v31, 0.0  ;;  %v4890_v10 = vld [vmem:[%s6554_s22 + $0x20] sm:$0xff] }
 0x2e1   : > { %v4394_v15 = vpop.f32.mrf.mxu1  ;;  %6357 = vmatmul.mubr.bf16.gmra.mxu0 %v4576_v26  ;;  %v4084_v42 = vadd.f32 %v4043_v44, %v3810_v17  ;;  %v4892_v44 = vld [vmem:[%s6554_s22 + $0x30] sm:$0xff] }
 0x2e2   : > { %v4524_v30 = vadd.f32 %v8665_v36, %v4485_v3  ;;  %v4490_v24 = vmul.f32 %v8652_v46, %v4451_v61  ;;  %v4449_v25 = vadd.f32 %v4394_v15, %v4079_v21  ;;  %v4558_v13 = vmax.f32 %v4526_v49, 0.0 }
 0x2e3   : > { %v6319_v53 = vpop.f32.mrf.mxu1 }
 0x2e4   : > { %v4556_v62 = vmax.f32 %v4524_v30, 0.0  ;;  %v4488_v48 = vmul.f32 %v8652_v46, %v4449_v25  ;;  %v4452_v22 = vadd.f32 %v6319_v53, %v4082_v51  ;;  %v4578_v59 = vpack.c.bf16 %v4558_v13, %v4557_v52  ;;  %v4888_v52 = vld [vmem:[%s6554_s22 + $0x10] sm:$0xff] }
 0x2e5   : > { %v4397_v37 = vpop.f32.mrf.mxu1  ;;  %v4529_v41 = vadd.f32 %v8665_v36, %v4490_v24 }
 0x2e6   : > { %v4491_v16 = vmul.f32 %v8652_v46, %v4452_v22  ;;  %v4450_v43 = vadd.f32 %v4397_v37, %v4080_v8  ;;  %v4577_v60 = vpack.c.bf16 %v4556_v62, %v4555_v28  ;;  %v4527_v33 = vadd.f32 %v8665_v36, %v4488_v48 }
 0x2e7   : > { %v6322_v19 = vpop.f32.mrf.mxu1  ;;  %v4561_v29 = vmax.f32 %v4529_v41, 0.0 }
 0x2e8   : > { %v4530_v6 = vadd.f32 %v8665_v36, %v4491_v16  ;;  %v4489_v50 = vmul.f32 %v8652_v46, %v4450_v43  ;;  %v4455_v54 = vadd.f32 %v6322_v19, %v4085_v35  ;;  %6360 = vmatprep.mubr.bf16.mxu0 %v4577_v60  ;;  %v4559_v38 = vmax.f32 %v4527_v33, 0.0  ;;  %v4887_v43 = vld [vmem:[%s6554_s22 + $0x8] sm:$0xff] }
 0x2e9   : > { %v4410_v55 = vpop.f32.mrf.mxu1  ;;  %6361 = vmatmul.mubr.bf16.gmra.mxu0 %v4578_v59  ;;  %v4889_v59 = vld [vmem:[%s6554_s22 + $0x18] sm:$0xff] }
 0x2ea   : > { %v4562_v34 = vmax.f32 %v4530_v6, 0.0  ;;  %v4528_v26 = vadd.f32 %v8665_v36, %v4489_v50  ;;  %v4453_v23 = vadd.f32 %v4410_v55, %v4083_v27  ;;  %v4494_v1 = vmul.f32 %v8652_v46, %v4455_v54 }
 0x2eb   : > { %v6323_v20 = vpop.f32.mrf.mxu1 }
 0x2ec   : > { %v4580_v47 = vpack.c.bf16 %v4562_v34, %v4561_v29  ;;  %v4560_v32 = vmax.f32 %v4528_v26, 0.0  ;;  %v4492_v0 = vmul.f32 %v8652_v46, %v4453_v23  ;;  %v4456_v39 = vadd.f32 %v6323_v20, %v4086_v18  ;;  %v4893_v26 = vld [vmem:[%s6554_s22 + $0x38] sm:$0xff]  ;;  %v4891_v20 = vld [vmem:[%s6554_s22 + $0x28] sm:$0xff] }
 0x2ed   : > { %v4413_v57 = vpop.f32.mrf.mxu1  ;;  %v4533_v14 = vadd.f32 %v8665_v36, %v4494_v1 }
 0x2ee   : > { %v4454_v2 = vadd.f32 %v4413_v57, %v4084_v42  ;;  %v4579_v56 = vpack.c.bf16 %v4560_v32, %v4559_v38  ;;  %v4495_v21 = vmul.f32 %v8652_v46, %v4456_v39  ;;  %v4531_v40 = vadd.f32 %v8665_v36, %v4492_v0  ;;  %v4896_v57 = vld [vmem:[%s6554_s22 + $0x50] sm:$0xff] }
 0x2ef   : > { %v4565_v31 = vmax.f32 %v4533_v14, 0.0 }
 0x2f0   : > { %v4493_v3 = vmul.f32 %v8652_v46, %v4454_v2  ;;  %6364 = vmatprep.mubr.bf16.mxu0 %v4579_v56  ;;  %v4534_v61 = vadd.f32 %v8665_v36, %v4495_v21  ;;  %v4563_v15 = vmax.f32 %v4531_v40, 0.0  ;;  %v8811_v46 = vld [vmem:[%s8996_s8] ss:$0 sm:$0xff] }
 0x2f1   : > { %6365 = vmatmul.mubr.bf16.gmra.mxu0 %v4580_v47 }
 0x2f2   : > { %v4532_v11 = vadd.f32 %v8665_v36, %v4493_v3  ;;  %v4566_v49 = vmax.f32 %v4534_v61, 0.0  ;;  %v8816_v36 = vld [vmem:[%s8997_s9] ss:$0 sm:$0xff] }
 0x2f3   : > { %v4894_v3 = vld [vmem:[%s6554_s22 + $0x40] sm:$0xff] }
 0x2f4   : > { %v4564_v63 = vmax.f32 %v4532_v11, 0.0  ;;  %v4582_v51 = vpack.c.bf16 %v4566_v49, %v4565_v31 }
 0x2f6   : > { %v4581_v30 = vpack.c.bf16 %v4564_v63, %v4563_v15  ;;  %v4897_v63 = vld [vmem:[%s6554_s22 + $0x58] sm:$0xff] }
 0x2f8   : > { %6368 = vmatprep.mubr.bf16.mxu0 %v4581_v30 }
 0x2f9   : > { %6369 = vmatmul.mubr.bf16.gmra.mxu0 %v4582_v51 }
 0x381   : > { %v6342_v24 = vpop.f32.mrf.mxu0 }
 0x382   : > { %v4817_v25 = vmul.f32 %v6342_v24, %v8811_v46 }
 0x383   : > { %v4681_v13 = vpop.f32.mrf.mxu0 }
 0x384   : > { %v4856_v53 = vadd.f32 %v8816_v36, %v4817_v25  ;;  %v4815_v8 = vmul.f32 %v8811_v46, %v4681_v13  ;;  %v4895_v13 = vld [vmem:[%s6554_s22 + $0x48] sm:$0xff] }
 0x385   : > { %v6343_v62 = vpop.f32.mrf.mxu0 }
 0x386   : > { %v4920_v48 = vadd.f32 %v4888_v52, %v4856_v53  ;;  %v4854_v22 = vadd.f32 %v8816_v36, %v4815_v8  ;;  %v4818_v28 = vmul.f32 %v6343_v62, %v8811_v46 }
 0x387   : > { %v4684_v37 = vpop.f32.mrf.mxu0 }
 0x388   : > { %v4952_v12 = vmax.f32 %v4920_v48, 0.0  ;;  %v4918_v35 = vadd.f32 %v4886_v5, %v4854_v22  ;;  %v4857_v41 = vadd.f32 %v8816_v36, %v4818_v28  ;;  %v4816_v16 = vmul.f32 %v8811_v46, %v4684_v37  ;;  %v4900_v22 = vld [vmem:[%s6554_s22 + $0x70] sm:$0xff] }
 0x389   : > { %v6346_v9 = vpop.f32.mrf.mxu0 }
 0x38a   : > { %4984 = vst.msk [vmem:[%s8830_s17 + $0x10] sm:$0xff] %vm9498_vm10, %v4952_v12  ;;  %v4950_v4 = vmax.f32 %v4918_v35, 0.0  ;;  %v4921_v45 = vadd.f32 %v4889_v59, %v4857_v41  ;;  %v4855_v7 = vadd.f32 %v8816_v36, %v4816_v16  ;;  %v4821_v27 = vmul.f32 %v6346_v9, %v8811_v46  ;;  %v4898_v41 = vld [vmem:[%s6554_s22 + $0x60] sm:$0xff]  ;;  %v4901_v9 = vld [vmem:[%s6554_s22 + $0x78] sm:$0xff]  ;;  %vm9514_vm10 = vmmov %vm9503_vm0 }
 0x38b   : > { %v4697_v33 = vpop.f32.mrf.mxu0 }
 0x38c   : > { %4982 = vst.msk [vmem:[%s8830_s17] sm:$0xff] %vm9499_vm2, %v4950_v4  ;;  %v4953_v19 = vmax.f32 %v4921_v45, 0.0  ;;  %v4919_v60 = vadd.f32 %v4887_v43, %v4855_v7  ;;  %v4860_v6 = vadd.f32 %v8816_v36, %v4821_v27  ;;  %v4819_v50 = vmul.f32 %v8811_v46, %v4697_v33  ;;  %vm9515_vm2 = vmmov %vm9503_vm0 }
 0x38d   : > { %v6347_v17 = vpop.f32.mrf.mxu0 }
 0x38e   : > { %4985 = vst.msk [vmem:[%s8830_s17 + $0x18] sm:$0xff] %vm9500_vm8, %v4953_v19  ;;  %v4951_v54 = vmax.f32 %v4919_v60, 0.0  ;;  %v4924_v55 = vadd.f32 %v4892_v44, %v4860_v6  ;;  %v4858_v29 = vadd.f32 %v8816_v36, %v4819_v50  ;;  %v4822_v34 = vmul.f32 %v6347_v17, %v8811_v46  ;;  %v4899_v6 = vld [vmem:[%s6554_s22 + $0x68] sm:$0xff]  ;;  %vm9516_vm8 = vmmov %vm9503_vm0 }
 0x38f   : > { %v4700_v23 = vpop.f32.mrf.mxu0 }
 0x390   : > { %4983 = vst.msk [vmem:[%s8830_s17 + $0x8] sm:$0xff] %vm9501_vm14, %v4951_v54  ;;  %v4956_v58 = vmax.f32 %v4924_v55, 0.0  ;;  %v4922_v18 = vadd.f32 %v4890_v10, %v4858_v29  ;;  %v4861_v42 = vadd.f32 %v8816_v36, %v4822_v34  ;;  %v4820_v1 = vmul.f32 %v8811_v46, %v4700_v23  ;;  %v4904_v29 = vld [vmem:[%s6554_s22 + $0x90] sm:$0xff]  ;;  %vm9517_vm14 = vmmov %vm9503_vm0 }
 0x391   : > { %v6350_v38 = vpop.f32.mrf.mxu0 }
 0x392   : > { %4988 = vst.msk [vmem:[%s8830_s17 + $0x30] sm:$0xff] %vm9502_vm13, %v4956_v58  ;;  %v4954_v47 = vmax.f32 %v4922_v18, 0.0  ;;  %v4925_v32 = vadd.f32 %v4893_v26, %v4861_v42  ;;  %v4859_v0 = vadd.f32 %v8816_v36, %v4820_v1  ;;  %v4825_v39 = vmul.f32 %v6350_v38, %v8811_v46  ;;  %v4902_v42 = vld [vmem:[%s6554_s22 + $0x80] sm:$0xff]  ;;  %vm9518_vm13 = vmmov %vm9503_vm0 }
 0x393   : > { %v4713_v2 = vpop.f32.mrf.mxu0 }
 0x394   : > { %4986 = vst.msk [vmem:[%s8830_s17 + $0x20] sm:$0xff] %vm9503_vm0, %v4954_v47  ;;  %v4957_v56 = vmax.f32 %v4925_v32, 0.0  ;;  %v4923_v14 = vadd.f32 %v4891_v20, %v4859_v0  ;;  %v4864_v21 = vadd.f32 %v8816_v36, %v4825_v39  ;;  %v4823_v40 = vmul.f32 %v8811_v46, %v4713_v2  ;;  %v4905_v0 = vld [vmem:[%s6554_s22 + $0x98] sm:$0xff] }
 0x395   : > { %v6351_v61 = vpop.f32.mrf.mxu0 }
 0x396   : > { %4989 = vst.msk [vmem:[%s8830_s17 + $0x38] sm:$0xff] %vm9504_vm15, %v4957_v56  ;;  %v4955_v11 = vmax.f32 %v4923_v14, 0.0  ;;  %v4928_v31 = vadd.f32 %v4896_v57, %v4864_v21  ;;  %v4862_v49 = vadd.f32 %v8816_v36, %v4823_v40  ;;  %v4826_v15 = vmul.f32 %v6351_v61, %v8811_v46  ;;  %v4903_v21 = vld [vmem:[%s6554_s22 + $0x88] sm:$0xff]  ;;  %vm9519_vm15 = vmmov %vm9503_vm0 }
 0x397   : > { %v4716_v51 = vpop.f32.mrf.mxu0 }
 0x398   : > { %4987 = vst.msk [vmem:[%s8830_s17 + $0x28] sm:$0xff] %vm9505_vm6, %v4955_v11  ;;  %v4960_v30 = vmax.f32 %v4928_v31, 0.0  ;;  %v4926_v24 = vadd.f32 %v4894_v3, %v4862_v49  ;;  %v4865_v25 = vadd.f32 %v8816_v36, %v4826_v15  ;;  %v4824_v52 = vmul.f32 %v8811_v46, %v4716_v51  ;;  %v4908_v49 = vld [vmem:[%s6554_s22 + $0xb0] sm:$0xff]  ;;  %vm9520_vm6 = vmmov %vm9503_vm0 }
 0x399   : > { %v6354_v53 = vpop.f32.mrf.mxu0 }
 0x39a   : > { %4992 = vst.msk [vmem:[%s8830_s17 + $0x50] sm:$0xff] %vm9506_vm7, %v4960_v30  ;;  %v4958_v8 = vmax.f32 %v4926_v24, 0.0  ;;  %v4929_v5 = vadd.f32 %v4897_v63, %v4865_v25  ;;  %v4863_v62 = vadd.f32 %v8816_v36, %v4824_v52  ;;  %v4829_v48 = vmul.f32 %v6354_v53, %v8811_v46  ;;  %v4906_v25 = vld [vmem:[%s6554_s22 + $0xa0] sm:$0xff]  ;;  %vm9521_vm7 = vmmov %vm9503_vm0 }
 0x39b   : > { %v4729_v28 = vpop.f32.mrf.mxu0 }
 0x39c   : > { %4990 = vst.msk [vmem:[%s8830_s17 + $0x40] sm:$0xff] %vm9507_vm4, %v4958_v8  ;;  %v4961_v59 = vmax.f32 %v4929_v5, 0.0  ;;  %v4927_v37 = vadd.f32 %v4895_v13, %v4863_v62  ;;  %v4868_v12 = vadd.f32 %v8816_v36, %v4829_v48  ;;  %v4827_v35 = vmul.f32 %v8811_v46, %v4729_v28  ;;  %v4909_v62 = vld [vmem:[%s6554_s22 + $0xb8] sm:$0xff]  ;;  %vm9522_vm4 = vmmov %vm9503_vm0 }
 0x39d   : > { %v6355_v16 = vpop.f32.mrf.mxu0 }
 0x39e   : > { %4993 = vst.msk [vmem:[%s8830_s17 + $0x58] sm:$0xff] %vm9508_vm5, %v4961_v59  ;;  %v4959_v43 = vmax.f32 %v4927_v37, 0.0  ;;  %v4932_v4 = vadd.f32 %v4900_v22, %v4868_v12  ;;  %v4866_v45 = vadd.f32 %v8816_v36, %v4827_v35  ;;  %v4830_v7 = vmul.f32 %v6355_v16, %v8811_v46  ;;  %v4907_v12 = vld [vmem:[%s6554_s22 + $0xa8] sm:$0xff]  ;;  %vm9523_vm5 = vmmov %vm9503_vm0 }
 0x39f   : > { %v4732_v27 = vpop.f32.mrf.mxu0 }
 0x3a0   : > { %4991 = vst.msk [vmem:[%s8830_s17 + $0x48] sm:$0xff] %vm9509_vm9, %v4959_v43  ;;  %v4964_v19 = vmax.f32 %v4932_v4, 0.0  ;;  %v4930_v60 = vadd.f32 %v4898_v41, %v4866_v45  ;;  %v4869_v44 = vadd.f32 %v8816_v36, %v4830_v7  ;;  %v4828_v33 = vmul.f32 %v8811_v46, %v4732_v27  ;;  %v4912_v45 = vld [vmem:[%s6554_s22 + $0xd0] sm:$0xff]  ;;  %vm9524_vm9 = vmmov %vm9503_vm0 }
 0x3a1   : > { %v6358_v50 = vpop.f32.mrf.mxu0 }
 0x3a2   : > { %4996 = vst.msk [vmem:[%s8830_s17 + $0x70] sm:$0xff] %vm9510_vm3, %v4964_v19  ;;  %v4962_v54 = vmax.f32 %v4930_v60, 0.0  ;;  %v4933_v10 = vadd.f32 %v4901_v9, %v4869_v44  ;;  %v4867_v17 = vadd.f32 %v8816_v36, %v4828_v33  ;;  %v4833_v55 = vmul.f32 %v6358_v50, %v8811_v46  ;;  %v4910_v44 = vld [vmem:[%s6554_s22 + $0xc0] sm:$0xff]  ;;  %vm9525_vm3 = vmmov %vm9503_vm0 }
 0x3a3   : > { %v4745_v34 = vpop.f32.mrf.mxu0 }
 0x3a4   : > { %4994 = vst.msk [vmem:[%s8830_s17 + $0x60] sm:$0xff] %vm9511_vm1, %v4962_v54  ;;  %v4965_v26 = vmax.f32 %v4933_v10, 0.0  ;;  %v4931_v23 = vadd.f32 %v4899_v6, %v4867_v17  ;;  %v4872_v58 = vadd.f32 %v8816_v36, %v4833_v55  ;;  %v4831_v18 = vmul.f32 %v8811_v46, %v4745_v34  ;;  %v4913_v17 = vld [vmem:[%s6554_s22 + $0xd8] sm:$0xff]  ;;  %vm9526_vm1 = vmmov %vm9503_vm0 }
 0x3a5   : > { %v6359_v1 = vpop.f32.mrf.mxu0 }
 0x3a6   : > { %4997 = vst.msk [vmem:[%s8830_s17 + $0x78] sm:$0xff] %vm9512_vm12, %v4965_v26  ;;  %v4963_v20 = vmax.f32 %v4931_v23, 0.0  ;;  %v4936_v38 = vadd.f32 %v4904_v29, %v4872_v58  ;;  %v4870_v47 = vadd.f32 %v8816_v36, %v4831_v18  ;;  %v4834_v32 = vmul.f32 %v6359_v1, %v8811_v46  ;;  %v4911_v58 = vld [vmem:[%s6554_s22 + $0xc8] sm:$0xff]  ;;  %vm9527_vm12 = vmmov %vm9503_vm0 }
 0x3a7   : > { %v4748_v39 = vpop.f32.mrf.mxu0 }
 0x3a8   : > { %4995 = vst.msk [vmem:[%s8830_s17 + $0x68] sm:$0xff] %vm9513_vm11, %v4963_v20  ;;  %v4968_v57 = vmax.f32 %v4936_v38, 0.0  ;;  %v4934_v2 = vadd.f32 %v4902_v42, %v4870_v47  ;;  %v4873_v56 = vadd.f32 %v8816_v36, %v4834_v32  ;;  %v4832_v14 = vmul.f32 %v8811_v46, %v4748_v39  ;;  %v4916_v47 = vld [vmem:[%s6554_s22 + $0xf0] sm:$0xff]  ;;  %vm9528_vm11 = vmmov %vm9503_vm0 }
 0x3a9   : > { %v6362_v40 = vpop.f32.mrf.mxu0 }
 0x3aa   : > { %5000 = vst.msk [vmem:[%s8830_s17 + $0x90] sm:$0xff] %vm9514_vm10, %v4968_v57  ;;  %v4966_v3 = vmax.f32 %v4934_v2, 0.0  ;;  %v4937_v61 = vadd.f32 %v4905_v0, %v4873_v56  ;;  %v4871_v11 = vadd.f32 %v8816_v36, %v4832_v14  ;;  %v4837_v31 = vmul.f32 %v6362_v40, %v8811_v46  ;;  %v4914_v56 = vld [vmem:[%s6554_s22 + $0xe0] sm:$0xff] }
 0x3ab   : > { %v4761_v15 = vpop.f32.mrf.mxu0 }
 0x3ac   : > { %4998 = vst.msk [vmem:[%s8830_s17 + $0x80] sm:$0xff] %vm9515_vm2, %v4966_v3  ;;  %v4969_v63 = vmax.f32 %v4937_v61, 0.0  ;;  %v4935_v51 = vadd.f32 %v4903_v21, %v4871_v11  ;;  %v4876_v30 = vadd.f32 %v8816_v36, %v4837_v31  ;;  %v4835_v24 = vmul.f32 %v8811_v46, %v4761_v15  ;;  %v4917_v11 = vld [vmem:[%s6554_s22 + $0xf8] sm:$0xff] }
 0x3ad   : > { %v6363_v52 = vpop.f32.mrf.mxu0 }
 0x3ae   : > { %5001 = vst.msk [vmem:[%s8830_s17 + $0x98] sm:$0xff] %vm9516_vm8, %v4969_v63  ;;  %v4967_v13 = vmax.f32 %v4935_v51, 0.0  ;;  %v4940_v53 = vadd.f32 %v4908_v49, %v4876_v30  ;;  %v4874_v8 = vadd.f32 %v8816_v36, %v4835_v24  ;;  %v4838_v5 = vmul.f32 %v6363_v52, %v8811_v46  ;;  %v4915_v30 = vld [vmem:[%s6554_s22 + $0xe8] sm:$0xff] }
 0x3af   : > { %v4764_v48 = vpop.f32.mrf.mxu0 }
 0x3b0   : > { %4999 = vst.msk [vmem:[%s8830_s17 + $0x88] sm:$0xff] %vm9517_vm14, %v4967_v13  ;;  %v4972_v22 = vmax.f32 %v4940_v53, 0.0  ;;  %v4938_v28 = vadd.f32 %v4906_v25, %v4874_v8  ;;  %v4877_v59 = vadd.f32 %v8816_v36, %v4838_v5  ;;  %v4836_v37 = vmul.f32 %v8811_v46, %v4764_v48 }
 0x3b1   : > { %v6366_v35 = vpop.f32.mrf.mxu0 }
 0x3b2   : > { %5004 = vst.msk [vmem:[%s8830_s17 + $0xb0] sm:$0xff] %vm9518_vm13, %v4972_v22  ;;  %v4970_v41 = vmax.f32 %v4938_v28, 0.0  ;;  %v4941_v16 = vadd.f32 %v4909_v62, %v4877_v59  ;;  %v4875_v43 = vadd.f32 %v8816_v36, %v4836_v37  ;;  %v4841_v4 = vmul.f32 %v6366_v35, %v8811_v46 }
 0x3b3   : > { %v4777_v7 = vpop.f32.mrf.mxu0 }
 0x3b4   : > { %5002 = vst.msk [vmem:[%s8830_s17 + $0xa0] sm:$0xff] %vm9503_vm0, %v4970_v41  ;;  %v4973_v9 = vmax.f32 %v4941_v16, 0.0  ;;  %v4939_v27 = vadd.f32 %v4907_v12, %v4875_v43  ;;  %v4880_v19 = vadd.f32 %v8816_v36, %v4841_v4  ;;  %v4839_v60 = vmul.f32 %v8811_v46, %v4777_v7 }
 0x3b5   : > { %v6367_v33 = vpop.f32.mrf.mxu0 }
 0x3b6   : > { %5005 = vst.msk [vmem:[%s8830_s17 + $0xb8] sm:$0xff] %vm9519_vm15, %v4973_v9  ;;  %v4971_v6 = vmax.f32 %v4939_v27, 0.0  ;;  %v4944_v50 = vadd.f32 %v4912_v45, %v4880_v19  ;;  %v4878_v54 = vadd.f32 %v8816_v36, %v4839_v60  ;;  %v4842_v10 = vmul.f32 %v6367_v33, %v8811_v46 }
 0x3b7   : > { %v4780_v55 = vpop.f32.mrf.mxu0 }
 0x3b8   : > { %5003 = vst.msk [vmem:[%s8830_s17 + $0xa8] sm:$0xff] %vm9520_vm6, %v4971_v6  ;;  %v4976_v29 = vmax.f32 %v4944_v50, 0.0  ;;  %v4942_v34 = vadd.f32 %v4910_v44, %v4878_v54  ;;  %v4881_v26 = vadd.f32 %v8816_v36, %v4842_v10  ;;  %v4840_v23 = vmul.f32 %v8811_v46, %v4780_v55 }
 0x3b9   : > { %v6370_v18 = vpop.f32.mrf.mxu0 }
 0x3ba   : > { %5008 = vst.msk [vmem:[%s8830_s17 + $0xd0] sm:$0xff] %vm9521_vm7, %v4976_v29  ;;  %v4974_v42 = vmax.f32 %v4942_v34, 0.0  ;;  %v4945_v1 = vadd.f32 %v4913_v17, %v4881_v26  ;;  %v4879_v20 = vadd.f32 %v8816_v36, %v4840_v23  ;;  %v4845_v38 = vmul.f32 %v6370_v18, %v8811_v46 }
 0x3bb   : > { %v4793_v32 = vpop.f32.mrf.mxu0 }
 0x3bc   : > { %5006 = vst.msk [vmem:[%s8830_s17 + $0xc0] sm:$0xff] %vm9522_vm4, %v4974_v42  ;;  %v4977_v0 = vmax.f32 %v4945_v1, 0.0  ;;  %v4943_v39 = vadd.f32 %v4911_v58, %v4879_v20  ;;  %v4884_v57 = vadd.f32 %v8816_v36, %v4845_v38  ;;  %v4843_v2 = vmul.f32 %v8811_v46, %v4793_v32 }
 0x3bd   : > { %v6371_v14 = vpop.f32.mrf.mxu0 }
 0x3be   : > { %5009 = vst.msk [vmem:[%s8830_s17 + $0xd8] sm:$0xff] %vm9523_vm5, %v4977_v0  ;;  %v4975_v21 = vmax.f32 %v4943_v39, 0.0  ;;  %v4948_v40 = vadd.f32 %v4916_v47, %v4884_v57  ;;  %v4882_v3 = vadd.f32 %v8816_v36, %v4843_v2  ;;  %v4846_v61 = vmul.f32 %v6371_v14, %v8811_v46 }
 0x3bf   : > { %v4796_v31 = vpop.f32.mrf.mxu0 }
 0x3c0   : > { %5007 = vst.msk [vmem:[%s8830_s17 + $0xc8] sm:$0xff] %vm9524_vm9, %v4975_v21  ;;  %v4980_v49 = vmax.f32 %v4948_v40, 0.0  ;;  %v4946_v15 = vadd.f32 %v4914_v56, %v4882_v3  ;;  %v4885_v63 = vadd.f32 %v8816_v36, %v4846_v61  ;;  %v4844_v51 = vmul.f32 %v8811_v46, %v4796_v31 }
 0x3c2   : > { %5012 = vst.msk [vmem:[%s8830_s17 + $0xf0] sm:$0xff] %vm9525_vm3, %v4980_v49  ;;  %v4978_v24 = vmax.f32 %v4946_v15, 0.0  ;;  %v4949_v25 = vadd.f32 %v4917_v11, %v4885_v63  ;;  %v4883_v52 = vadd.f32 %v8816_v36, %v4844_v51 }
 0x3c4   : > { %5010 = vst.msk [vmem:[%s8830_s17 + $0xe0] sm:$0xff] %vm9526_vm1, %v4978_v24  ;;  %v4981_v13 = vmax.f32 %v4949_v25, 0.0  ;;  %v4947_v53 = vadd.f32 %v4915_v30, %v4883_v52 }
 0x3c6   : > { %5013 = vst.msk [vmem:[%s8830_s17 + $0xf8] sm:$0xff] %vm9527_vm12, %v4981_v13  ;;  %v4979_v8 = vmax.f32 %v4947_v53, 0.0 }
 0x3c8   : > { %5011 = vst.msk [vmem:[%s8830_s17 + $0xe8] sm:$0xff] %vm9528_vm11, %v4979_v8 }
 0x3c9 PF: > { %s20_s13 = sadd.s32 1, %s6472_s13  }
 0x3ca   : > { %p17_p4 = scmp.ge.s32.totalorder %s20_s13, 4  }
 0x3cc   :  { %19 = sbr.rel (!%p17_p4) target bundleno = 1 (0x1), region = 98 }

</bundles_post_ra>
